<compile_context>
chip_gen: v6e
topology: v6e:2x2x1
jax: 0.10.0
libtpu: 0.0.40
codegen_flags: <defaults>
</compile_context>

<pallas_src>
import jax
import jax.numpy as jnp
from jax import lax
from jax.experimental import pallas as pl
from jax.experimental.pallas import tpu as pltpu


def _inconv_fused_kernel(x_ref, w_ref, shift_ref, o_ref, acc_ref):
    """relu( conv3x3(x) * bn_scale + bn_shift ) for one batch tile.

    x_ref:     (tile_b, H+2, W+2, C_in_pad)  bf16  zero-padded NHWC slab (halo + lane pad)
    w_ref:     (9, C_in_pad, C_out)          bf16  BN-scale-folded weight, tap-major (ky,kx)
    shift_ref: (1, C_out)                    f32   folded BatchNorm bias
    o_ref:     (tile_b, H*W, C_out)          f32   lane-dense channels-last output
    acc_ref:   (tile_b*H*W, C_out)           f32   VMEM accumulator scratch
    """
    tb, hp2, wp2, cin = x_ref.shape
    h, w = hp2 - 2, wp2 - 2
    rows = tb * h * w
    cout = o_ref.shape[-1]

    acc_ref[...] = jnp.zeros_like(acc_ref)
    # conv3x3 as 9 shifted (rows, C_in_pad) @ (C_in_pad, C_out) MXU matmuls —
    # the im2col gather is just 9 static halo-shifted slices of the VMEM slab.
    for tap in range(9):
        ky, kx = tap // 3, tap % 3
        patch = x_ref[:, pl.ds(ky, h), pl.ds(kx, w), :].reshape(rows, cin)
        acc_ref[...] += jnp.dot(patch, w_ref[tap],
                                preferred_element_type=jnp.float32)

    y = acc_ref[...] + shift_ref[...]                      # folded BN bias (1, C_out)
    o_ref[...] = jnp.maximum(y, 0.0).reshape(tb, h * w, cout).astype(o_ref.dtype)


def map_extractor_forward(x, conv_weight, bn_gamma, bn_beta, bn_mean, bn_var,
                          *, reshape_to, eps=1e-5, tile_b=None,
                          channels_last=False):
    """Forward of MapExtractor: reshape -> conv3x3 (no bias) -> BatchNorm2d -> ReLU.

    `reshape_to` parameterizes the hard-coded torch.reshape target
    (the original module uses (20, 591, 16, 16)).
    """
    B, C_in, H, W = reshape_to
    x = jnp.reshape(x, (B, C_in, H, W)).astype(jnp.float32)

    C_out = conv_weight.shape[0]
    LANE = 128
    C_in_pad = pl.cdiv(C_in, LANE) * LANE          # lane-align channels (591->640, 4->128)

    # ---- layout / weight plumbing (cheap, one pass) --------------------------
    # NCHW -> NHWC, add 1-pixel spatial halo + channel lane padding, cast bf16.
    x_nhwc = jnp.transpose(x, (0, 2, 3, 1))                                  # (B,H,W,Cin)
    x_pad = jnp.pad(x_nhwc,
                    ((0, 0), (1, 1), (1, 1), (0, C_in_pad - C_in))
                    ).astype(jnp.bfloat16)                                   # (B,H+2,W+2,Cin_p)

    # Fold BatchNorm (inference / running-stats mode) into the conv weight:
    #   bn(conv(x)) = scale * conv(x) + shift, scale = gamma / sqrt(var + eps)
    # TODO(synk): training-mode BatchNorm2d batch statistics are not computed
    # in-kernel; eval/running-stats normalization is used instead.
    scale = bn_gamma / jnp.sqrt(bn_var + eps)                                # (C_out,)
    w = jnp.transpose(conv_weight.astype(jnp.float32), (2, 3, 1, 0))         # (3,3,Cin,Cout)
    w = w * scale[None, None, None, :]
    w = jnp.pad(w, ((0, 0), (0, 0), (0, C_in_pad - C_in), (0, 0)))
    w = w.reshape(9, C_in_pad, C_out).astype(jnp.bfloat16)                   # (9,Cin_p,Cout)
    shift = (bn_beta - scale * bn_mean).reshape(1, C_out).astype(jnp.float32)

    # Batch tiling: 2 images per step -> 512-row MXU matmuls; keep grid >= 2
    # so both v7x TensorCores get work when possible.
    if tile_b is None:
        tile_b = 2 if (B % 2 == 0 and B >= 4) else 1
    if B % tile_b != 0:
        tile_b = 1
    grid = (B // tile_b,)

    out_flat = pl.pallas_call(
        _inconv_fused_kernel,
        out_shape=jax.ShapeDtypeStruct((B, H * W, C_out), jnp.float32),
        grid_spec=pltpu.PrefetchScalarGridSpec(
            num_scalar_prefetch=0,
            grid=grid,
            in_specs=[
                # padded NHWC activation slab (batch-tiled, full spatial + channels)
                pl.BlockSpec((tile_b, H + 2, W + 2, C_in_pad),
                             lambda i: (i, 0, 0, 0)),
                # BN-folded weight: resident across grid steps
                pl.BlockSpec((9, C_in_pad, C_out), lambda i: (0, 0, 0)),
                # BN-folded bias row: resident
                pl.BlockSpec((1, C_out), lambda i: (0, 0)),
            ],
            out_specs=pl.BlockSpec((tile_b, H * W, C_out), lambda i: (i, 0, 0)),
            scratch_shapes=[pltpu.VMEM((tile_b * H * W, C_out), jnp.float32)],
        ),
        compiler_params=pltpu.CompilerParams(
            dimension_semantics=("parallel",),
            vmem_limit_bytes=32 * 1024 * 1024),
    )(x_pad, w, shift)

    out_nhwc = out_flat.reshape(B, H, W, C_out)
    if channels_last:
        return out_nhwc
    # Module contract is NCHW; one transpose pass (skip it via channels_last=True
    # if the consumer accepts channels-last).
    return jnp.transpose(out_nhwc, (0, 3, 1, 2))


def map_extractor_reference(x, conv_weight, bn_gamma, bn_beta, bn_mean, bn_var,
                            *, reshape_to, eps=1e-5):
    """Pure-JAX f32 reference reproducing the PyTorch forward (eval-mode BN)."""
    B, C_in, H, W = reshape_to
    x = jnp.reshape(x, (B, C_in, H, W)).astype(jnp.float32)
    out = lax.conv_general_dilated(
        x, conv_weight.astype(jnp.float32),
        window_strides=(1, 1), padding=((1, 1), (1, 1)),
        dimension_numbers=('NCHW', 'OIHW', 'NCHW'))
    scale = bn_gamma / jnp.sqrt(bn_var + eps)
    shift = bn_beta - scale * bn_mean
    out = out * scale[None, :, None, None] + shift[None, :, None, None]
    return jnp.maximum(out, 0.0)


if __name__ == "__main__":
    # Small shapes consistent with the module: the real forward hard-codes
    # torch.reshape(x, (20, 591, 16, 16)) feeding inconv(., 256); here we use a
    # small reshape target (2, 4, 16, 16) and keep the 256 output channels.
    B, C_in, H, W = 2, 4, 16, 16
    C_out = 256

    key = jax.random.PRNGKey(0)
    k_x, k_w, k_g, k_b, k_m, k_v = jax.random.split(key, 6)

    x = jax.random.normal(k_x, (B, C_in * H * W), dtype=jnp.float32)  # pre-reshape input
    # nn.Conv2d(C_in, C_out, 3, padding=1, bias=False).weight -> (C_out, C_in, 3, 3)
    conv_weight = jax.random.normal(k_w, (C_out, C_in, 3, 3), dtype=jnp.float32) * 0.05
    bn_gamma = 1.0 + 0.1 * jax.random.normal(k_g, (C_out,), dtype=jnp.float32)
    bn_beta = 0.1 * jax.random.normal(k_b, (C_out,), dtype=jnp.float32)
    bn_mean = 0.1 * jax.random.normal(k_m, (C_out,), dtype=jnp.float32)
    bn_var = jnp.abs(jax.random.normal(k_v, (C_out,), dtype=jnp.float32)) + 0.5

    out = map_extractor_forward(x, conv_weight, bn_gamma, bn_beta, bn_mean,
                                bn_var, reshape_to=(B, C_in, H, W))
    out = jax.block_until_ready(out)

    ref = map_extractor_reference(x, conv_weight, bn_gamma, bn_beta, bn_mean,
                                  bn_var, reshape_to=(B, C_in, H, W))
    assert out.shape == (B, C_out, H, W)
    err = jnp.max(jnp.abs(out - ref))
    # bf16 MXU operands (f32 accumulate) -> tolerance loosened vs. pure-f32 check.
    assert jnp.allclose(out, ref, atol=3e-2, rtol=3e-2), f"max err {err}"
    print("KERNEL_OK")
</pallas_src>

<mosaic_0001>
module attributes {stable_mosaic.version = 11 : i64} {
  func.func @_inconv_fused_kernel(%arg0: i32, %arg1: memref<1x18x18x128xbf16, #tpu.memory_space<vmem>>, %arg2: memref<9x128x256xbf16, #tpu.memory_space<vmem>>, %arg3: memref<1x256xf32, #tpu.memory_space<vmem>>, %arg4: memref<1x256x256xf32, #tpu.memory_space<vmem>>, %arg5: memref<256x256xf32, #tpu.memory_space<vmem>>) attributes {dimension_semantics = [#tpu.dimension_semantics<parallel>], iteration_bounds = array<i64: 2>, scalar_prefetch = 0 : i64, scratch_operands = 1 : i64, tpu.core_type = #tpu.core_type<tc>, window_params = [{transform_indices = @transform_0, window_bounds = array<i64: 1, 18, 18, 128>}, {pipeline_mode = #tpu.pipeline_mode<synchronous>, transform_indices = @transform_1, window_bounds = array<i64: 9, 128, 256>}, {pipeline_mode = #tpu.pipeline_mode<synchronous>, transform_indices = @transform_2, window_bounds = array<i64: 1, 256>}, {transform_indices = @transform_3, window_bounds = array<i64: 1, 256, 256>}]} {
    %cst = arith.constant 0.000000e+00 : f32
    %0 = vector.broadcast %cst : f32 to vector<256x256xf32>
    %c0 = arith.constant 0 : index
    %c0_0 = arith.constant 0 : index
    %1 = vector.load %arg5[%c0, %c0_0] : memref<256x256xf32, #tpu.memory_space<vmem>>, vector<256x256xf32>
    tpu.vector_store %arg5[%c0, %c0_0], %0 {strides = array<i32>} : memref<256x256xf32, #tpu.memory_space<vmem>>, vector<256x256xf32>,
    %c0_1 = arith.constant 0 : index
    %c0_2 = arith.constant 0 : index
    %c0_3 = arith.constant 0 : index
    %c0_4 = arith.constant 0 : index
    %2 = vector.load %arg1[%c0_1, %c0_2, %c0_3, %c0_4] : memref<1x18x18x128xbf16, #tpu.memory_space<vmem>>, vector<1x16x16x128xbf16>
    %3 = vector.shape_cast %2 : vector<1x16x16x128xbf16> to vector<256x128xbf16>
    %c0_5 = arith.constant 0 : index
    %c0_6 = arith.constant 0 : index
    %4 = vector.load %arg5[%c0_5, %c0_6] : memref<256x256xf32, #tpu.memory_space<vmem>>, vector<256x256xf32>
    %c0_7 = arith.constant 0 : index
    %c0_8 = arith.constant 0 : index
    %c0_9 = arith.constant 0 : index
    %5 = vector.load %arg2[%c0_7, %c0_8, %c0_9] : memref<9x128x256xbf16, #tpu.memory_space<vmem>>, vector<1x128x256xbf16>
    %6 = vector.shape_cast %5 : vector<1x128x256xbf16> to vector<128x256xbf16>
    %cst_10 = arith.constant dense<0.000000e+00> : vector<256x256xf32>
    %7 = tpu.matmul %3, %6, %cst_10 {dimension_numbers = #tpu.dot_dimension_numbers<[1], [0], [0], [1], [0, 0, 1, 1], [], []>} : vector<256x128xbf16>, vector<128x256xbf16>, vector<256x256xf32> -> vector<256x256xf32>
    %8 = arith.addf %4, %7 : vector<256x256xf32>
    %c0_11 = arith.constant 0 : index
    %c0_12 = arith.constant 0 : index
    %9 = vector.load %arg5[%c0_11, %c0_12] : memref<256x256xf32, #tpu.memory_space<vmem>>, vector<256x256xf32>
    tpu.vector_store %arg5[%c0_11, %c0_12], %8 {strides = array<i32>} : memref<256x256xf32, #tpu.memory_space<vmem>>, vector<256x256xf32>,
    %c0_13 = arith.constant 0 : index
    %c0_14 = arith.constant 0 : index
    %c1 = arith.constant 1 : index
    %c0_15 = arith.constant 0 : index
    %10 = vector.load %arg1[%c0_13, %c0_14, %c1, %c0_15] : memref<1x18x18x128xbf16, #tpu.memory_space<vmem>>, vector<1x16x16x128xbf16>
    %11 = vector.shape_cast %10 : vector<1x16x16x128xbf16> to vector<256x128xbf16>
    %c0_16 = arith.constant 0 : index
    %c0_17 = arith.constant 0 : index
    %12 = vector.load %arg5[%c0_16, %c0_17] : memref<256x256xf32, #tpu.memory_space<vmem>>, vector<256x256xf32>
    %c1_18 = arith.constant 1 : index
    %c0_19 = arith.constant 0 : index
    %c0_20 = arith.constant 0 : index
    %13 = vector.load %arg2[%c1_18, %c0_19, %c0_20] : memref<9x128x256xbf16, #tpu.memory_space<vmem>>, vector<1x128x256xbf16>
    %14 = vector.shape_cast %13 : vector<1x128x256xbf16> to vector<128x256xbf16>
    %cst_21 = arith.constant dense<0.000000e+00> : vector<256x256xf32>
    %15 = tpu.matmul %11, %14, %cst_21 {dimension_numbers = #tpu.dot_dimension_numbers<[1], [0], [0], [1], [0, 0, 1, 1], [], []>} : vector<256x128xbf16>, vector<128x256xbf16>, vector<256x256xf32> -> vector<256x256xf32>
    %16 = arith.addf %12, %15 : vector<256x256xf32>
    %c0_22 = arith.constant 0 : index
    %c0_23 = arith.constant 0 : index
    %17 = vector.load %arg5[%c0_22, %c0_23] : memref<256x256xf32, #tpu.memory_space<vmem>>, vector<256x256xf32>
    tpu.vector_store %arg5[%c0_22, %c0_23], %16 {strides = array<i32>} : memref<256x256xf32, #tpu.memory_space<vmem>>, vector<256x256xf32>,
    %c0_24 = arith.constant 0 : index
    %c0_25 = arith.constant 0 : index
    %c2 = arith.constant 2 : index
    %c0_26 = arith.constant 0 : index
    %18 = vector.load %arg1[%c0_24, %c0_25, %c2, %c0_26] : memref<1x18x18x128xbf16, #tpu.memory_space<vmem>>, vector<1x16x16x128xbf16>
    %19 = vector.shape_cast %18 : vector<1x16x16x128xbf16> to vector<256x128xbf16>
    %c0_27 = arith.constant 0 : index
    %c0_28 = arith.constant 0 : index
    %20 = vector.load %arg5[%c0_27, %c0_28] : memref<256x256xf32, #tpu.memory_space<vmem>>, vector<256x256xf32>
    %c2_29 = arith.constant 2 : index
    %c0_30 = arith.constant 0 : index
    %c0_31 = arith.constant 0 : index
    %21 = vector.load %arg2[%c2_29, %c0_30, %c0_31] : memref<9x128x256xbf16, #tpu.memory_space<vmem>>, vector<1x128x256xbf16>
    %22 = vector.shape_cast %21 : vector<1x128x256xbf16> to vector<128x256xbf16>
    %cst_32 = arith.constant dense<0.000000e+00> : vector<256x256xf32>
    %23 = tpu.matmul %19, %22, %cst_32 {dimension_numbers = #tpu.dot_dimension_numbers<[1], [0], [0], [1], [0, 0, 1, 1], [], []>} : vector<256x128xbf16>, vector<128x256xbf16>, vector<256x256xf32> -> vector<256x256xf32>
    %24 = arith.addf %20, %23 : vector<256x256xf32>
    %c0_33 = arith.constant 0 : index
    %c0_34 = arith.constant 0 : index
    %25 = vector.load %arg5[%c0_33, %c0_34] : memref<256x256xf32, #tpu.memory_space<vmem>>, vector<256x256xf32>
    tpu.vector_store %arg5[%c0_33, %c0_34], %24 {strides = array<i32>} : memref<256x256xf32, #tpu.memory_space<vmem>>, vector<256x256xf32>,
    %c0_35 = arith.constant 0 : index
    %c1_36 = arith.constant 1 : index
    %c0_37 = arith.constant 0 : index
    %c0_38 = arith.constant 0 : index
    %26 = vector.load %arg1[%c0_35, %c1_36, %c0_37, %c0_38] : memref<1x18x18x128xbf16, #tpu.memory_space<vmem>>, vector<1x16x16x128xbf16>
    %27 = vector.shape_cast %26 : vector<1x16x16x128xbf16> to vector<256x128xbf16>
    %c0_39 = arith.constant 0 : index
    %c0_40 = arith.constant 0 : index
    %28 = vector.load %arg5[%c0_39, %c0_40] : memref<256x256xf32, #tpu.memory_space<vmem>>, vector<256x256xf32>
    %c3 = arith.constant 3 : index
    %c0_41 = arith.constant 0 : index
    %c0_42 = arith.constant 0 : index
    %29 = vector.load %arg2[%c3, %c0_41, %c0_42] : memref<9x128x256xbf16, #tpu.memory_space<vmem>>, vector<1x128x256xbf16>
    %30 = vector.shape_cast %29 : vector<1x128x256xbf16> to vector<128x256xbf16>
    %cst_43 = arith.constant dense<0.000000e+00> : vector<256x256xf32>
    %31 = tpu.matmul %27, %30, %cst_43 {dimension_numbers = #tpu.dot_dimension_numbers<[1], [0], [0], [1], [0, 0, 1, 1], [], []>} : vector<256x128xbf16>, vector<128x256xbf16>, vector<256x256xf32> -> vector<256x256xf32>
    %32 = arith.addf %28, %31 : vector<256x256xf32>
    %c0_44 = arith.constant 0 : index
    %c0_45 = arith.constant 0 : index
    %33 = vector.load %arg5[%c0_44, %c0_45] : memref<256x256xf32, #tpu.memory_space<vmem>>, vector<256x256xf32>
    tpu.vector_store %arg5[%c0_44, %c0_45], %32 {strides = array<i32>} : memref<256x256xf32, #tpu.memory_space<vmem>>, vector<256x256xf32>,
    %c0_46 = arith.constant 0 : index
    %c1_47 = arith.constant 1 : index
    %c1_48 = arith.constant 1 : index
    %c0_49 = arith.constant 0 : index
    %34 = vector.load %arg1[%c0_46, %c1_47, %c1_48, %c0_49] : memref<1x18x18x128xbf16, #tpu.memory_space<vmem>>, vector<1x16x16x128xbf16>
    %35 = vector.shape_cast %34 : vector<1x16x16x128xbf16> to vector<256x128xbf16>
    %c0_50 = arith.constant 0 : index
    %c0_51 = arith.constant 0 : index
    %36 = vector.load %arg5[%c0_50, %c0_51] : memref<256x256xf32, #tpu.memory_space<vmem>>, vector<256x256xf32>
    %c4 = arith.constant 4 : index
    %c0_52 = arith.constant 0 : index
    %c0_53 = arith.constant 0 : index
    %37 = vector.load %arg2[%c4, %c0_52, %c0_53] : memref<9x128x256xbf16, #tpu.memory_space<vmem>>, vector<1x128x256xbf16>
    %38 = vector.shape_cast %37 : vector<1x128x256xbf16> to vector<128x256xbf16>
    %cst_54 = arith.constant dense<0.000000e+00> : vector<256x256xf32>
    %39 = tpu.matmul %35, %38, %cst_54 {dimension_numbers = #tpu.dot_dimension_numbers<[1], [0], [0], [1], [0, 0, 1, 1], [], []>} : vector<256x128xbf16>, vector<128x256xbf16>, vector<256x256xf32> -> vector<256x256xf32>
    %40 = arith.addf %36, %39 : vector<256x256xf32>
    %c0_55 = arith.constant 0 : index
    %c0_56 = arith.constant 0 : index
    %41 = vector.load %arg5[%c0_55, %c0_56] : memref<256x256xf32, #tpu.memory_space<vmem>>, vector<256x256xf32>
    tpu.vector_store %arg5[%c0_55, %c0_56], %40 {strides = array<i32>} : memref<256x256xf32, #tpu.memory_space<vmem>>, vector<256x256xf32>,
    %c0_57 = arith.constant 0 : index
    %c1_58 = arith.constant 1 : index
    %c2_59 = arith.constant 2 : index
    %c0_60 = arith.constant 0 : index
    %42 = vector.load %arg1[%c0_57, %c1_58, %c2_59, %c0_60] : memref<1x18x18x128xbf16, #tpu.memory_space<vmem>>, vector<1x16x16x128xbf16>
    %43 = vector.shape_cast %42 : vector<1x16x16x128xbf16> to vector<256x128xbf16>
    %c0_61 = arith.constant 0 : index
    %c0_62 = arith.constant 0 : index
    %44 = vector.load %arg5[%c0_61, %c0_62] : memref<256x256xf32, #tpu.memory_space<vmem>>, vector<256x256xf32>
    %c5 = arith.constant 5 : index
    %c0_63 = arith.constant 0 : index
    %c0_64 = arith.constant 0 : index
    %45 = vector.load %arg2[%c5, %c0_63, %c0_64] : memref<9x128x256xbf16, #tpu.memory_space<vmem>>, vector<1x128x256xbf16>
    %46 = vector.shape_cast %45 : vector<1x128x256xbf16> to vector<128x256xbf16>
    %cst_65 = arith.constant dense<0.000000e+00> : vector<256x256xf32>
    %47 = tpu.matmul %43, %46, %cst_65 {dimension_numbers = #tpu.dot_dimension_numbers<[1], [0], [0], [1], [0, 0, 1, 1], [], []>} : vector<256x128xbf16>, vector<128x256xbf16>, vector<256x256xf32> -> vector<256x256xf32>
    %48 = arith.addf %44, %47 : vector<256x256xf32>
    %c0_66 = arith.constant 0 : index
    %c0_67 = arith.constant 0 : index
    %49 = vector.load %arg5[%c0_66, %c0_67] : memref<256x256xf32, #tpu.memory_space<vmem>>, vector<256x256xf32>
    tpu.vector_store %arg5[%c0_66, %c0_67], %48 {strides = array<i32>} : memref<256x256xf32, #tpu.memory_space<vmem>>, vector<256x256xf32>,
    %c0_68 = arith.constant 0 : index
    %c2_69 = arith.constant 2 : index
    %c0_70 = arith.constant 0 : index
    %c0_71 = arith.constant 0 : index
    %50 = vector.load %arg1[%c0_68, %c2_69, %c0_70, %c0_71] : memref<1x18x18x128xbf16, #tpu.memory_space<vmem>>, vector<1x16x16x128xbf16>
    %51 = vector.shape_cast %50 : vector<1x16x16x128xbf16> to vector<256x128xbf16>
    %c0_72 = arith.constant 0 : index
    %c0_73 = arith.constant 0 : index
    %52 = vector.load %arg5[%c0_72, %c0_73] : memref<256x256xf32, #tpu.memory_space<vmem>>, vector<256x256xf32>
    %c6 = arith.constant 6 : index
    %c0_74 = arith.constant 0 : index
    %c0_75 = arith.constant 0 : index
    %53 = vector.load %arg2[%c6, %c0_74, %c0_75] : memref<9x128x256xbf16, #tpu.memory_space<vmem>>, vector<1x128x256xbf16>
    %54 = vector.shape_cast %53 : vector<1x128x256xbf16> to vector<128x256xbf16>
    %cst_76 = arith.constant dense<0.000000e+00> : vector<256x256xf32>
    %55 = tpu.matmul %51, %54, %cst_76 {dimension_numbers = #tpu.dot_dimension_numbers<[1], [0], [0], [1], [0, 0, 1, 1], [], []>} : vector<256x128xbf16>, vector<128x256xbf16>, vector<256x256xf32> -> vector<256x256xf32>
    %56 = arith.addf %52, %55 : vector<256x256xf32>
    %c0_77 = arith.constant 0 : index
    %c0_78 = arith.constant 0 : index
    %57 = vector.load %arg5[%c0_77, %c0_78] : memref<256x256xf32, #tpu.memory_space<vmem>>, vector<256x256xf32>
    tpu.vector_store %arg5[%c0_77, %c0_78], %56 {strides = array<i32>} : memref<256x256xf32, #tpu.memory_space<vmem>>, vector<256x256xf32>,
    %c0_79 = arith.constant 0 : index
    %c2_80 = arith.constant 2 : index
    %c1_81 = arith.constant 1 : index
    %c0_82 = arith.constant 0 : index
    %58 = vector.load %arg1[%c0_79, %c2_80, %c1_81, %c0_82] : memref<1x18x18x128xbf16, #tpu.memory_space<vmem>>, vector<1x16x16x128xbf16>
    %59 = vector.shape_cast %58 : vector<1x16x16x128xbf16> to vector<256x128xbf16>
    %c0_83 = arith.constant 0 : index
    %c0_84 = arith.constant 0 : index
    %60 = vector.load %arg5[%c0_83, %c0_84] : memref<256x256xf32, #tpu.memory_space<vmem>>, vector<256x256xf32>
    %c7 = arith.constant 7 : index
    %c0_85 = arith.constant 0 : index
    %c0_86 = arith.constant 0 : index
    %61 = vector.load %arg2[%c7, %c0_85, %c0_86] : memref<9x128x256xbf16, #tpu.memory_space<vmem>>, vector<1x128x256xbf16>
    %62 = vector.shape_cast %61 : vector<1x128x256xbf16> to vector<128x256xbf16>
    %cst_87 = arith.constant dense<0.000000e+00> : vector<256x256xf32>
    %63 = tpu.matmul %59, %62, %cst_87 {dimension_numbers = #tpu.dot_dimension_numbers<[1], [0], [0], [1], [0, 0, 1, 1], [], []>} : vector<256x128xbf16>, vector<128x256xbf16>, vector<256x256xf32> -> vector<256x256xf32>
    %64 = arith.addf %60, %63 : vector<256x256xf32>
    %c0_88 = arith.constant 0 : index
    %c0_89 = arith.constant 0 : index
    %65 = vector.load %arg5[%c0_88, %c0_89] : memref<256x256xf32, #tpu.memory_space<vmem>>, vector<256x256xf32>
    tpu.vector_store %arg5[%c0_88, %c0_89], %64 {strides = array<i32>} : memref<256x256xf32, #tpu.memory_space<vmem>>, vector<256x256xf32>,
    %c0_90 = arith.constant 0 : index
    %c2_91 = arith.constant 2 : index
    %c2_92 = arith.constant 2 : index
    %c0_93 = arith.constant 0 : index
    %66 = vector.load %arg1[%c0_90, %c2_91, %c2_92, %c0_93] : memref<1x18x18x128xbf16, #tpu.memory_space<vmem>>, vector<1x16x16x128xbf16>
    %67 = vector.shape_cast %66 : vector<1x16x16x128xbf16> to vector<256x128xbf16>
    %c0_94 = arith.constant 0 : index
    %c0_95 = arith.constant 0 : index
    %68 = vector.load %arg5[%c0_94, %c0_95] : memref<256x256xf32, #tpu.memory_space<vmem>>, vector<256x256xf32>
    %c8 = arith.constant 8 : index
    %c0_96 = arith.constant 0 : index
    %c0_97 = arith.constant 0 : index
    %69 = vector.load %arg2[%c8, %c0_96, %c0_97] : memref<9x128x256xbf16, #tpu.memory_space<vmem>>, vector<1x128x256xbf16>
    %70 = vector.shape_cast %69 : vector<1x128x256xbf16> to vector<128x256xbf16>
    %cst_98 = arith.constant dense<0.000000e+00> : vector<256x256xf32>
    %71 = tpu.matmul %67, %70, %cst_98 {dimension_numbers = #tpu.dot_dimension_numbers<[1], [0], [0], [1], [0, 0, 1, 1], [], []>} : vector<256x128xbf16>, vector<128x256xbf16>, vector<256x256xf32> -> vector<256x256xf32>
    %72 = arith.addf %68, %71 : vector<256x256xf32>
    %c0_99 = arith.constant 0 : index
    %c0_100 = arith.constant 0 : index
    %73 = vector.load %arg5[%c0_99, %c0_100] : memref<256x256xf32, #tpu.memory_space<vmem>>, vector<256x256xf32>
    tpu.vector_store %arg5[%c0_99, %c0_100], %72 {strides = array<i32>} : memref<256x256xf32, #tpu.memory_space<vmem>>, vector<256x256xf32>,
    %c0_101 = arith.constant 0 : index
    %c0_102 = arith.constant 0 : index
    %74 = vector.load %arg5[%c0_101, %c0_102] : memref<256x256xf32, #tpu.memory_space<vmem>>, vector<256x256xf32>
    %c0_103 = arith.constant 0 : index
    %c0_104 = arith.constant 0 : index
    %75 = vector.load %arg3[%c0_103, %c0_104] : memref<1x256xf32, #tpu.memory_space<vmem>>, vector<1x256xf32>
    %76 = vector.broadcast %75 : vector<1x256xf32> to vector<256x256xf32>
    %77 = arith.addf %74, %76 : vector<256x256xf32>
    %cst_105 = arith.constant 0.000000e+00 : f32
    %78 = vector.broadcast %cst_105 : f32 to vector<256x256xf32>
    %79 = arith.maximumf %77, %78 : vector<256x256xf32>
    %80 = vector.shape_cast %79 : vector<256x256xf32> to vector<1x256x256xf32>
    %c0_106 = arith.constant 0 : index
    %c0_107 = arith.constant 0 : index
    %c0_108 = arith.constant 0 : index
    %81 = vector.load %arg4[%c0_106, %c0_107, %c0_108] : memref<1x256x256xf32, #tpu.memory_space<vmem>>, vector<1x256x256xf32>
    tpu.vector_store %arg4[%c0_106, %c0_107, %c0_108], %80 {strides = array<i32>} : memref<1x256x256xf32, #tpu.memory_space<vmem>>, vector<1x256x256xf32>,
    return
  }
  func.func @transform_0(%arg0: i32) -> (i32, i32, i32, i32) {
    %c0_i32 = arith.constant 0 : i32
    %c0_i32_0 = arith.constant 0 : i32
    %c0_i32_1 = arith.constant 0 : i32
    %c0_i32_2 = arith.constant 0 : i32
    return %arg0, %c0_i32, %c0_i32_0, %c0_i32_1 : i32, i32, i32, i32
  }
  func.func @transform_1(%arg0: i32) -> (i32, i32, i32) {
    %c0_i32 = arith.constant 0 : i32
    %c0_i32_0 = arith.constant 0 : i32
    %c0_i32_1 = arith.constant 0 : i32
    %c0_i32_2 = arith.constant 0 : i32
    return %c0_i32, %c0_i32_0, %c0_i32_1 : i32, i32, i32
  }
  func.func @transform_2(%arg0: i32) -> (i32, i32) {
    %c0_i32 = arith.constant 0 : i32
    %c0_i32_0 = arith.constant 0 : i32
    %c0_i32_1 = arith.constant 0 : i32
    return %c0_i32, %c0_i32_0 : i32, i32
  }
  func.func @transform_3(%arg0: i32) -> (i32, i32, i32) {
    %c0_i32 = arith.constant 0 : i32
    %c0_i32_0 = arith.constant 0 : i32
    %c0_i32_1 = arith.constant 0 : i32
    return %arg0, %c0_i32, %c0_i32_0 : i32, i32, i32
  }
}

</mosaic_0001>

<bundles_post_ra>
// kernel: tpu_custom_call.1
= control target key start
LH: loop header
LB: loop body
LE: loop exit
PB: predicated region body
PF: predicated region fallthrough
CT: control target
= control target key end

     0   :  { %8 = vsyncpa [#allocation4], 0  ;;  %s10937_s0 = inlined_call_operand.vmem [shape: bf16[2,18,18,128], index: 0, kind: input, shape index: {}]   ;;  %s10938_s1 = inlined_call_operand.hbm [shape: bf16[9,128,256], index: 1, kind: input, shape index: {}]   ;;  %s10939_s2 = inlined_call_operand.vmem [shape: f32[1,256], index: 2, kind: input, shape index: {}]   ;;  %s10940_s3 = inlined_call_operand.hbm [shape: f32[2,256,256], index: 3, kind: output, shape index: {}]  }
   0x1   :  { %9 = vsyncpa [#allocation5], 0 }
   0x2   :  { %11 = vsyncpa [#allocation5 + $0x1], 0  ;;  %s8699_s12 = smov 0   ;;  %s8701_s13 = smov 0  }
   0x3   :  { %s8703_s14 = smov 0   ;;  %s8705_s15 = smov 0  }
   0x4 LB: > { %s8720_s16 = sadd.s32 4294967295, %s8670_s15   ;;  %s7638_s17 = sadd.s32 4294967294, %s8670_s15   ;;  %s8670_s15 = sphi %s8705_s15, %s11197_s15   ;;  %s8666_s14 = sphi %s8703_s14, %s11196_s14   ;;  %s8662_s13 = sphi %s8701_s13, %s11195_s13   ;;  %s8658_s12 = sphi %s8699_s12, %s11194_s12  }
   0x5   : > { %s8724_s18 = sadd.s32 1, %s8670_s15   ;;  %s92_s19 = sadd.s32 1, %s8666_s14 }
   0x6   : > { %s89_s20 = ssub.s32 %s8670_s15, %s8724_s18  ;;  %p102_p0 = scmp.ne.s32.totalorder %s8666_s14, %s8662_s13 }
   0x7   : > { %p90_p1 = scmp.eq.s32.totalorder %s89_s20, 0  ;;  %p103_p2 = scmp.eq.s32.totalorder %s8720_s16, 1 }
   0x8   : > { %p108_p3 = scmp.ne.s32.totalorder %s8662_s13, %s8658_s12  ;;  %p109_p4 = scmp.eq.s32.totalorder %s7638_s17, 1 }
   0x9   : > { %s8735_s21 = scalar_select %p90_p1, %s8666_s14, %s92_s19  }
   0xa   : > { %p8737_p5 = por %p103_p2, %p102_p0  ;;  %p8741_p6 = por %p109_p4, %p108_p3 }
   0xb   : > { %p7639_p7 = scmp.ge.s32.totalorder %s8670_s15, 1  ;;  %p116_p8 = scmp.lt.s32.totalorder %s8670_s15, 3 }
   0xc   : > { %s10944_s23 = scalar_select %p8741_p6, 1, 0 }
   0xd   : > { %p8275_p9 = scmp.eq.s32.totalorder %s8720_s16, 0  ;;  %p8748_p10 = pnand %p7639_p7, %p116_p8 }
   0xe   : > { %s8672_s25 = smov [#allocation3]  }
   0xf   : > { %s128_s26 = sshll.u32 %s8672_s25, 4  ;;  %p8267_p11 = pneg %p8748_p10  ;;  %s129_s26 = int_to_ptr.vmem [resolvable:$true] %s128_s26 }
  0x10   : > { %s8591_s27 = scalar_lea.vmem %s129_s26, 18432  ;;  %p8599_p3 = scmp.lt.s32.totalorder %s129_s26, %s129_s26 }
  0x11   : > { %p8268_p12 = pnand %p8275_p9, %p8267_p11  ;;  %p8592_p0 = scmp.ne.s32.totalorder %s129_s26, %s8591_s27 }
  0x12   : > { %p8600_p4 = scmp.lt.s32.totalorder %s8591_s27, %s8591_s27 }
  0x13   : > { %p8582_p13 = pneg %p8268_p12 }
  0x14   : > { %p8601_p6 = por %p8600_p4, %p8599_p3 }
  0x15   : > { %p8594_p1 = pnand %p8592_p0, %p8582_p13 }
  0x17   : > { %p8595_p2 = pneg %p8594_p1 }
  0x19   : > { %p8602_p7 = pnand %p8601_p6, %p8595_p2 }
  0x1b   : > { %8605 = shalt.err (!%p8602_p7)
}
  0x1c   : > { %s8673_s28 = smov 128   ;;  %s8674_s29 = smov 8  }
  0x1d   : > { %8270 = dma.hbm_to_vmem [thread:$0]  (!%p8268_p12), %s10938_s1, 18432, %s129_s26, [#allocation4], %s8673_s28, %s8673_s28, %s8674_s29  }
  0x1e   : > { %155 = sbr.rel (%p8748_p10) target bundleno = 859 (0x35b), region = 32 }
  0x23   : > { %8649 = dma.done.wait (%p8275_p9), [#allocation4], 18432  }
  0x24   : > { %8651 = vsyncadd (%p8275_p9), [#allocation4], 4294948864  ;;  %v10941_v0 = vmov 0   ;;  %p179_p6 = scmp.lt.s32.totalorder %s8720_s16, 1  ;;  %v8316_v1 = vld [vmem:[#allocation3 + $0x74] ss:$8 sps:$4 sm:$0xff]  }
  0x25   : > { %569 = vmatprep.mubr.bf16.mxu0 %v10941_v0  ;;  %649 = vmatprep.mubr.bf16.mxu1 %v10941_v0  ;;  %v8318_v2 = vld [vmem:[#allocation3 + $0x70] ss:$8 sps:$4 sm:$0xff]   ;;  %v8319_v3 = vld [vmem:[#allocation3 + $0x64] ss:$8 sps:$4 sm:$0xff]   ;;  %v8321_v4 = vld [vmem:[#allocation3 + $0x60] ss:$8 sps:$4 sm:$0xff]  }
  0x26   : > { %s180_s5 = scalar_select %p179_p6, %s8720_s16, 1  ;;  %537 = vmatprep.subr.bf16.mxu0 %v8316_v1  ;;  %8244 = vmatprep.subr.bf16.mxu1 %v8316_v1  ;;  %v8322_v5 = vld [vmem:[#allocation3 + $0x54] ss:$8 sps:$4 sm:$0xff]   ;;  %v8324_v6 = vld [vmem:[#allocation3 + $0x50] ss:$8 sps:$4 sm:$0xff]   ;;  %vm1935_vm0 = vcmask 1042432  }
  0x27   : > { %538 = vmatpush1.bf16.msra.mxu0 %v8318_v2  ;;  %8252 = vmatpush1.bf16.msra.mxu1 %v8318_v2  ;;  %v8325_v7 = vld [vmem:[#allocation3 + $0x44] ss:$8 sps:$4 sm:$0xff]   ;;  %v8327_v8 = vld [vmem:[#allocation3 + $0x40] ss:$8 sps:$4 sm:$0xff]   ;;  %v8328_v9 = vld [vmem:[#allocation3 + $0x34] ss:$8 sps:$4 sm:$0xff]  }
  0x28   : > { %539 = vmatprep.subr.bf16.mxu0 %v8319_v3  ;;  %8245 = vmatprep.subr.bf16.mxu1 %v8319_v3  ;;  %s8260_s6 = smul.u32 216, %s180_s5  ;;  %v8330_v10 = vld [vmem:[#allocation3 + $0x30] ss:$8 sps:$4 sm:$0xff]   ;;  %v8331_v11 = vld [vmem:[#allocation3 + $0x24] ss:$8 sps:$4 sm:$0xff]   ;;  %vm1936_vm1 = vcmask 1046532  }
  0x29   : > { %v8333_v12 = vld [vmem:[#allocation3 + $0x20] ss:$8 sps:$4 sm:$0xff]   ;;  %v8334_v13 = vld [vmem:[#allocation3 + $0x14] ss:$8 sps:$4 sm:$0xff]   ;;  %v8336_v14 = vld [vmem:[#allocation3 + $0x10] ss:$8 sps:$4 sm:$0xff]  }
  0x2a   : > { %s8772_s9 = scalar_lea.vmem %s10937_s0, %s8260_s6  ;;  %v8337_v15 = vld [vmem:[#allocation3 + $0x4] ss:$8 sps:$4 sm:$0xff]   ;;  %v8339_v16 = vld [vmem:[#allocation3] ss:$8 sps:$4 sm:$0xff]   ;;  %v8344_v17 = vld [vmem:[#allocation3 + $0xf4] ss:$8 sps:$4 sm:$0xff]  }
  0x2b   : > { %540 = vmatpush1.bf16.msra.mxu0 %v8321_v4  ;;  %8253 = vmatpush1.bf16.msra.mxu1 %v8321_v4  ;;  %v8340_v18 = vld [vmem:[%s8772_s9] sm:$0xff]   ;;  %v8347_v19 = vld [vmem:[#allocation3 + $0x174] ss:$8 sps:$4 sm:$0xff]   ;;  %v8342_v21 = vld [vmem:[#allocation3 + $0xf0] ss:$8 sps:$4 sm:$0xff]   ;;  %s176_s17 = sand.u32 1, %s8662_s13  }
  0x2c   : > { %541 = vmatprep.subr.bf16.mxu0 %v8322_v5  ;;  %8246 = vmatprep.subr.bf16.mxu1 %v8322_v5  ;;  %v8341_v20 = vld [vmem:[%s8772_s9 + $0x60] sm:$0xff]   ;;  %v8345_v22 = vld [vmem:[#allocation3 + $0x170] ss:$8 sps:$4 sm:$0xff]   ;;  %v8360_v27 = vld [vmem:[#allocation3 + $0xd4] ss:$8 sps:$4 sm:$0xff]   ;;  %s7644_s19 = sshll.u32 %s176_s17, 9 }
  0x2d   : > { %v8350_v23 = vld [vmem:[#allocation3 + $0xe0] ss:$8 sps:$4 sm:$0xff]   ;;  %v8352_v24 = vld [vmem:[#allocation3 + $0xe4] ss:$8 sps:$4 sm:$0xff]   ;;  %v8363_v28 = vld [vmem:[#allocation3 + $0x154] ss:$8 sps:$4 sm:$0xff]  }
  0x2e   : > { %v8355_v25 = vld [vmem:[#allocation3 + $0x164] ss:$8 sps:$4 sm:$0xff]   ;;  %v8353_v26 = vld [vmem:[#allocation3 + $0x160] ss:$8 sps:$4 sm:$0xff]   ;;  %v8358_v31 = vld [vmem:[#allocation3 + $0xd0] ss:$8 sps:$4 sm:$0xff]  }
  0x2f   : > { %542 = vmatpush1.bf16.msra.mxu0 %v8324_v6  ;;  %8254 = vmatpush1.bf16.msra.mxu1 %v8324_v6  ;;  %v8348_v29 = vld [vmem:[%s8772_s9 + $0xc] sm:$0xff]   ;;  %v8366_v35 = vld [vmem:[#allocation3 + $0xc0] ss:$8 sps:$4 sm:$0xff]   ;;  %v8376_v37 = vld [vmem:[#allocation3 + $0xb4] ss:$8 sps:$4 sm:$0xff]   ;;  %s10698_s20 = scalar_lea.vmem [#allocation6], %s7644_s19 }
  0x30   : > { %543 = vmatprep.subr.bf16.mxu0 %v8325_v7  ;;  %8247 = vmatprep.subr.bf16.mxu1 %v8325_v7  ;;  %v8349_v30 = vld [vmem:[%s8772_s9 + $0x6c] sm:$0xff]   ;;  %v8369_v36 = vld [vmem:[#allocation3 + $0x140] ss:$8 sps:$4 sm:$0xff]   ;;  %v8379_v38 = vld [vmem:[#allocation3 + $0x134] ss:$8 sps:$4 sm:$0xff]   ;;  %s8243_s24 = sshll.u32 %s8720_s16, 13 }
  0x31   : > { %v8361_v32 = vld [vmem:[#allocation3 + $0x150] ss:$8 sps:$4 sm:$0xff]   ;;  %v8368_v33 = vld [vmem:[#allocation3 + $0xc4] ss:$8 sps:$4 sm:$0xff]   ;;  %v8382_v45 = vld [vmem:[#allocation3 + $0xa0] ss:$8 sps:$4 sm:$0xff]   ;;  %s10889_s28 = scalar_lea.hbm %s10940_s3, %s8243_s24 }
  0x32   : > { %v8371_v34 = vld [vmem:[#allocation3 + $0x144] ss:$8 sps:$4 sm:$0xff]   ;;  %v8356_v39 = vld [vmem:[%s8772_s9 + $0x18] sm:$0xff]   ;;  %v8385_v46 = vld [vmem:[#allocation3 + $0x120] ss:$8 sps:$4 sm:$0xff]   ;;  %s7564_s25 = sshll.u32 %s10698_s20, 4  ;;  %s10891_s25 = int_to_ptr.vmem [resolvable:$true] %s7564_s25 }
  0x33   : > { %544 = vmatpush1.bf16.msra.mxu0 %v8327_v8  ;;  %8255 = vmatpush1.bf16.msra.mxu1 %v8327_v8  ;;  %v8357_v40 = vld [vmem:[%s8772_s9 + $0x78] sm:$0xff]   ;;  %v8384_v43 = vld [vmem:[#allocation3 + $0xa4] ss:$8 sps:$4 sm:$0xff]   ;;  %v8398_v55 = vld [vmem:[#allocation3 + $0x80] ss:$8 sps:$4 sm:$0xff]   ;;  %s10897_s16 = scalar_lea.sflag [#allocation5], %s176_s17 }
  0x34   : > { %545 = vmatprep.subr.bf16.mxu0 %v8328_v9  ;;  %8248 = vmatprep.subr.bf16.mxu1 %v8328_v9  ;;  %v8374_v41 = vld [vmem:[#allocation3 + $0xb0] ss:$8 sps:$4 sm:$0xff]   ;;  %v8387_v44 = vld [vmem:[#allocation3 + $0x124] ss:$8 sps:$4 sm:$0xff]   ;;  %v8392_v47 = vld [vmem:[#allocation3 + $0x94] ss:$8 sps:$4 sm:$0xff]  }
  0x35   : > { %v8377_v42 = vld [vmem:[#allocation3 + $0x130] ss:$8 sps:$4 sm:$0xff]   ;;  %v8395_v48 = vld [vmem:[#allocation3 + $0x114] ss:$8 sps:$4 sm:$0xff]   ;;  %v8364_v49 = vld [vmem:[%s8772_s9 + $0x24] sm:$0xff]   ;;  %s8606_s29 = scalar_lea.vmem %s10891_s25, 8192 }
  0x36   : > { %v8365_v50 = vld [vmem:[%s8772_s9 + $0x84] sm:$0xff]   ;;  %v8390_v51 = vld [vmem:[#allocation3 + $0x90] ss:$8 sps:$4 sm:$0xff]   ;;  %v8406_v57 = vld [vmem:[#allocation3 + $0x1f4] ss:$8 sps:$4 sm:$0xff]   ;;  %p8607_p8 = scmp.ne.s32.totalorder %s10891_s25, %s8606_s29  ;;  %s8676_s30 = smov [#allocation6]  }
  0x37   : > { %546 = vmatpush1.bf16.msra.mxu0 %v8330_v10  ;;  %8256 = vmatpush1.bf16.msra.mxu1 %v8330_v10  ;;  %v8393_v52 = vld [vmem:[#allocation3 + $0x110] ss:$8 sps:$4 sm:$0xff]   ;;  %v8400_v53 = vld [vmem:[#allocation3 + $0x84] ss:$8 sps:$4 sm:$0xff]   ;;  %v8401_v56 = vld [vmem:[#allocation3 + $0x100] ss:$8 sps:$4 sm:$0xff]  }
  0x38   : > { %547 = vmatprep.subr.bf16.mxu0 %v8331_v11  ;;  %8249 = vmatprep.subr.bf16.mxu1 %v8331_v11  ;;  %v8403_v54 = vld [vmem:[#allocation3 + $0x104] ss:$8 sps:$4 sm:$0xff]   ;;  %v8409_v58 = vld [vmem:[#allocation3 + $0x274] ss:$8 sps:$4 sm:$0xff]   ;;  %v858_v63 = vld [vmem:[%s8772_s9] sm:$0xf]  ;;  %p8608_p9 = pnand %p8607_p8, %p8737_p5 }
  0x39   : > { %v8372_v59 = vld [vmem:[%s8772_s9 + $0x30] sm:$0xff]   ;;  %v8380_v61 = vld [vmem:[%s8772_s9 + $0x3c] sm:$0xff]   ;;  %v859_v1 = vld [vmem:[%s8772_s9 + $0x4] sm:$0xf]  ;;  %v910_v2 = vshrl.u32 %v858_v63, 16  ;;  %v913_v3 = vshll.u32 %v858_v63, 16 }
  0x3a   : > { %v8373_v60 = vld [vmem:[%s8772_s9 + $0x90] sm:$0xff]   ;;  %v8381_v62 = vld [vmem:[%s8772_s9 + $0x9c] sm:$0xff]   ;;  %v919_v4 = vshll.u32 %v859_v1, 16  ;;  %v923_v5 = vshrl.u32 %v859_v1, 16  ;;  %v8388_v6 = vld [vmem:[%s8772_s9 + $0x48] sm:$0xff]   ;;  %p8609_p10 = pneg %p8608_p9  ;;  %s8610_s4 = sshll.u32 %s8676_s30, 4  ;;  %s8611_s4 = int_to_ptr.vmem [resolvable:$false] %s8610_s4 }
  0x3b   : > { %548 = vmatpush1.bf16.msra.mxu0 %v8333_v12  ;;  %8257 = vmatpush1.bf16.msra.mxu1 %v8333_v12  ;;  %v8389_v7 = vld [vmem:[%s8772_s9 + $0xa8] sm:$0xff]   ;;  %v1840_v8 = vld [vmem:[%s8772_s9 + $0x4] sm:$0xf]  ;;  %v912_v10 = vrot.slane %v910_v2, 4  ;;  %v915_v11 = vrot.slane %v913_v3, 5  ;;  %vm8816_vm4 = vmor %vm1935_vm0, %vm1936_vm1  ;;  %s8612_s5 = scalar_lea.vmem %s8611_s4, 16384  ;;  %p8613_p11 = scmp.lt.s32.totalorder %s10891_s25, %s8611_s4 }
  0x3c   : > { %549 = vmatprep.subr.bf16.mxu0 %v8334_v13  ;;  %8250 = vmatprep.subr.bf16.mxu1 %v8334_v13  ;;  %v860_v9 = vld [vmem:[%s8772_s9 + $0x8] sm:$0x1]  ;;  %v861_v12 = vld [vmem:[%s8772_s9 + $0xc] sm:$0xf]  ;;  %v8805_v13 = vrot.slane %v919_v4, 5  ;;  %p8614_p12 = scmp.lt.s32.totalorder %s8612_s5, %s8606_s29 }
  0x3d   : > { %vm906_vm2 = vsmask.f32 3328  ;;  %vm907_vm3 = vsmask.f32 7440  ;;  %v8404_v63 = vld [vmem:[#allocation3 + $0x1f0] ss:$8 sps:$4 sm:$0xff]  }
  0x3e   : > { %vm8828_vm5 = vmor %vm906_vm2, %vm907_vm3  ;;  %v8407_v1 = vld [vmem:[#allocation3 + $0x270] ss:$8 sps:$4 sm:$0xff]   ;;  %p8615_p13 = por %p8614_p12, %p8613_p11 }
  0x3f   : > { %550 = vmatpush1.bf16.msra.mxu0 %v8336_v14  ;;  %8258 = vmatpush1.bf16.msra.mxu1 %v8336_v14  ;;  %v925_v14 = vrot.slane %v923_v5, 4 }
  0x40   : > { %551 = vmatprep.subr.bf16.mxu0 %v8337_v15  ;;  %8251 = vmatprep.subr.bf16.mxu1 %v8337_v15  ;;  %v862_v15 = vld [vmem:[%s8772_s9 + $0x10] sm:$0xf]  ;;  %p8616_p0 = pnand %p8615_p13, %p8609_p10 }
  0x43   : > { %552 = vmatpush1.bf16.msra.mxu0 %v8339_v16  ;;  %8259 = vmatpush1.bf16.msra.mxu1 %v8339_v16  ;;  %v1839_v16 = vld [vmem:[%s8772_s9] sm:$0xe] }
  0x44   : > { %1518 = vmatprep.subr.bf16.mxu1 %v8344_v17  ;;  %2275 = vmatprep.subr.bf16.mxu0 %v8347_v19  ;;  %v1940_v17 = vrot.slane %v1840_v8, 5  ;;  %v1841_v19 = vld [vmem:[%s8772_s9 + $0x8] sm:$0x1] }
  0x46   : > { %570 = vmatmul.mubr.bf16.vlgmr.msra.gmra.mxu0 %v8340_v18  ;;  %650 = vmatmul.mubr.bf16.vlgmr.msra.gmra.mxu1 %v8341_v20  ;;  %v929_v18 = vshll.u32 %v860_v9, 16  ;;  %v934_v20 = vshrl.u32 %v861_v12, 16 }
  0x47   : > { %1519 = vmatpush1.bf16.msra.mxu1 %v8342_v21  ;;  %2276 = vmatpush1.bf16.msra.mxu0 %v8345_v22  ;;  %v937_v21 = vshll.u32 %v861_v12, 16  ;;  %v916_v22 = vor.u32 %v915_v11, %v912_v10  ;;  %v1846_v10 = vld [vmem:[%s8772_s9 + $0x1c] sm:$0xf]  ;;  %v868_v12 = vld [vmem:[%s8772_s9 + $0x28] sm:$0xf] }
  0x48   : > { %579 = vmatprep.mubr.bf16.mxu0 %v10941_v0  ;;  %659 = vmatprep.mubr.bf16.mxu1 %v10941_v0 }
  0x49   : > { %1520 = vmatprep.subr.bf16.mxu1 %v8352_v24  ;;  %2277 = vmatprep.subr.bf16.mxu0 %v8355_v25  ;;  %v947_v24 = vshrl.u32 %v862_v15, 16  ;;  %v926_v25 = vor.u32 %v925_v14, %v8805_v13 }
  0x4b   : > { %1521 = vmatpush1.bf16.msra.mxu1 %v8350_v23  ;;  %2278 = vmatpush1.bf16.msra.mxu0 %v8353_v26  ;;  %v943_v23 = vshll.u32 %v862_v15, 16  ;;  %v8396_v26 = vld [vmem:[%s8772_s9 + $0x54] sm:$0xff]  }
  0x4c   : > { %1522 = vmatprep.subr.bf16.mxu1 %v8360_v27  ;;  %2279 = vmatprep.subr.bf16.mxu0 %v8363_v28  ;;  %v8397_v27 = vld [vmem:[%s8772_s9 + $0xb4] sm:$0xff]   ;;  %v7710_v28 = vrot.slane %v1839_v16, 9 }
  0x4d   : > { %v1845_v16 = vld [vmem:[%s8772_s9 + $0x18] sm:$0xe] }
  0x4e   : > { %580 = vmatmul.mubr.bf16.gmra.mxu0 %v8348_v29  ;;  %660 = vmatmul.mubr.bf16.gmra.mxu1 %v8349_v30  ;;  %v1942_v29 = vrot.slane %v1940_v17, 4  ;;  %v1943_v30 = vrot.slane %v1841_v19, 5 }
  0x4f   : > { %589 = vmatprep.mubr.bf16.mxu0 %v10941_v0  ;;  %669 = vmatprep.mubr.bf16.mxu1 %v10941_v0 }
  0x50   : > { %1523 = vmatpush1.bf16.msra.mxu1 %v8358_v31  ;;  %2280 = vmatpush1.bf16.msra.mxu0 %v8361_v32  ;;  %v931_v31 = vrot.slane %v929_v18, 5 }
  0x51   : > { %1524 = vmatprep.subr.bf16.mxu1 %v8368_v33  ;;  %2281 = vmatprep.subr.bf16.mxu0 %v8371_v34  ;;  %v936_v33 = vrot.slane %v934_v20, 4  ;;  %v939_v34 = vrot.slane %v937_v21, 5  ;;  %v1847_v21 = vld [vmem:[%s8772_s9 + $0x20] sm:$0x1] }
  0x54   : > { %1525 = vmatpush1.bf16.msra.mxu1 %v8366_v35  ;;  %2282 = vmatpush1.bf16.msra.mxu0 %v8369_v36  ;;  %v1843_v35 = vld [vmem:[%s8772_s9 + $0x10] sm:$0xf]  ;;  %v917_v36 = vrot.slane %v916_v22, 4  ;;  %v8410_v22 = vld [vmem:[#allocation3 + $0x1e0] ss:$8 sps:$4 sm:$0xff]  }
  0x55   : > { %1526 = vmatprep.subr.bf16.mxu1 %v8376_v37  ;;  %2283 = vmatprep.subr.bf16.mxu0 %v8379_v38  ;;  %v8821_v37 = vrot.slane %v943_v23, 5  ;;  %v949_v38 = vrot.slane %v947_v24, 4  ;;  %v8412_v23 = vld [vmem:[#allocation3 + $0x1e4] ss:$8 sps:$4 sm:$0xff]   ;;  %v8413_v24 = vld [vmem:[#allocation3 + $0x260] ss:$8 sps:$4 sm:$0xff]  }
  0x56   : > { %590 = vmatmul.mubr.bf16.gmra.mxu0 %v8356_v39  ;;  %670 = vmatmul.mubr.bf16.gmra.mxu1 %v8357_v40  ;;  %v864_v39 = vld [vmem:[%s8772_s9 + $0x18] sm:$0xf]  ;;  %v927_v40 = vrot.slane %v926_v25, 4  ;;  %v8415_v25 = vld [vmem:[#allocation3 + $0x264] ss:$8 sps:$4 sm:$0xff]  }
  0x57   : > { %599 = vmatprep.mubr.bf16.mxu0 %v10941_v0  ;;  %679 = vmatprep.mubr.bf16.mxu1 %v10941_v0 }
  0x58   : > { %1527 = vmatpush1.bf16.msra.mxu1 %v8374_v41  ;;  %2284 = vmatpush1.bf16.msra.mxu0 %v8377_v42  ;;  %v863_v41 = vld [vmem:[%s8772_s9 + $0x14] sm:$0x1]  ;;  %v865_v42 = vld [vmem:[%s8772_s9 + $0x1c] sm:$0xf] }
  0x59   : > { %1528 = vmatprep.subr.bf16.mxu1 %v8384_v43  ;;  %2285 = vmatprep.subr.bf16.mxu0 %v8387_v44  ;;  %v1941_v44 = vsel %vm8816_vm4, %v7710_v28, %v1940_v17  ;;  %v869_v28 = vld [vmem:[%s8772_s9 + $0x2c] sm:$0x1] }
  0x5c   : > { %1529 = vmatpush1.bf16.msra.mxu1 %v8382_v45  ;;  %2286 = vmatpush1.bf16.msra.mxu0 %v8385_v46  ;;  %v1944_v45 = vsel %vm8816_vm4, %v1942_v29, %v1943_v30  ;;  %v1842_v46 = vld [vmem:[%s8772_s9 + $0xc] sm:$0xe]  ;;  %v991_v29 = vshll.u32 %v868_v12, 16  ;;  %v995_v30 = vshrl.u32 %v868_v12, 16 }
  0x5d   : > { %1530 = vmatprep.subr.bf16.mxu1 %v8392_v47  ;;  %2287 = vmatprep.subr.bf16.mxu0 %v8395_v48  ;;  %v940_v47 = vor.u32 %v939_v34, %v936_v33  ;;  %v1844_v48 = vld [vmem:[%s8772_s9 + $0x14] sm:$0x1] }
  0x5e   : > { %600 = vmatmul.mubr.bf16.gmra.mxu0 %v8364_v49  ;;  %680 = vmatmul.mubr.bf16.gmra.mxu1 %v8365_v50  ;;  %v1947_v49 = vrot.slane %v1843_v35, 5  ;;  %v958_v50 = vshrl.u32 %v864_v39, 16  ;;  %v870_v35 = vld [vmem:[%s8772_s9 + $0x30] sm:$0xf] }
  0x5f   : > { %609 = vmatprep.mubr.bf16.mxu0 %v10941_v0  ;;  %689 = vmatprep.mubr.bf16.mxu1 %v10941_v0  ;;  %v941_v2 = vrot.slane %v940_v47, 4  ;;  %v8869_v47 = vrot.slane %v991_v29, 5  ;;  %v8428_v29 = vld [vmem:[#allocation3 + $0x1b0] ss:$8 sps:$4 sm:$0xff]  }
  0x60   : > { %1531 = vmatpush1.bf16.msra.mxu1 %v8390_v51  ;;  %2288 = vmatpush1.bf16.msra.mxu0 %v8393_v52  ;;  %v961_v51 = vshll.u32 %v864_v39, 16  ;;  %v950_v52 = vor.u32 %v949_v38, %v8821_v37  ;;  %v1949_v3 = vrot.slane %v1947_v49, 4  ;;  %v960_v4 = vrot.slane %v958_v50, 4  ;;  %v8421_v38 = vld [vmem:[#allocation3 + $0x254] ss:$8 sps:$4 sm:$0xff]  }
  0x61   : > { %1532 = vmatprep.subr.bf16.mxu1 %v8400_v53  ;;  %2289 = vmatprep.subr.bf16.mxu0 %v8403_v54  ;;  %v953_v53 = vshll.u32 %v863_v41, 16  ;;  %v967_v54 = vshll.u32 %v865_v42, 16  ;;  %v946_v17 = vsel %vm8828_vm5, %v941_v2, %v8821_v37  ;;  %v8418_v37 = vld [vmem:[#allocation3 + $0x1d4] ss:$8 sps:$4 sm:$0xff]  }
  0x62   : > { %v963_v5 = vrot.slane %v961_v51, 5 }
  0x63   : > { %v955_v8 = vrot.slane %v953_v53, 5  ;;  %v8848_v9 = vrot.slane %v967_v54, 5  ;;  %v1849_v53 = vld [vmem:[%s8772_s9 + $0x28] sm:$0xf]  ;;  %v1006_v54 = vshrl.u32 %v870_v35, 16 }
  0x64   : > { %1533 = vmatpush1.bf16.msra.mxu1 %v8398_v55  ;;  %2290 = vmatpush1.bf16.msra.mxu0 %v8401_v56  ;;  %v922_v55 = vsel %vm8828_vm5, %v917_v36, %v8805_v13  ;;  %v932_v56 = vsel %vm8828_vm5, %v927_v40, %v931_v31  ;;  %v964_v20 = vor.u32 %v963_v5, %v960_v4  ;;  %v1961_v5 = vrot.slane %v1849_v53, 5 }
  0x65   : > { %2886 = vmatprep.subr.bf16.mxu1 %v8406_v57  ;;  %3864 = vmatprep.subr.bf16.mxu0 %v8409_v58  ;;  %v7711_v57 = vrot.slane %v1842_v46, 9  ;;  %v971_v58 = vshrl.u32 %v865_v42, 16  ;;  %v7712_v42 = vrot.slane %v1845_v16, 9  ;;  %v1957_v46 = vrot.slane %v1847_v21, 5 }
  0x66   : > { %610 = vmatmul.mubr.bf16.gmra.mxu0 %v8372_v59  ;;  %690 = vmatmul.mubr.bf16.gmra.mxu1 %v8373_v60  ;;  %v7726_v59 = vcombine.low %v1941_v44, %v1944_v45  ;;  %v1950_v60 = vrot.slane %v1844_v48, 5  ;;  %v965_v40 = vrot.slane %v964_v20, 4  ;;  %v871_v44 = vld [vmem:[%s8772_s9 + $0x34] sm:$0xf]  ;;  %v997_v48 = vrot.slane %v995_v30, 4 }
  0x67   : > { %619 = vmatprep.mubr.bf16.mxu0 %v10941_v0  ;;  %699 = vmatprep.mubr.bf16.mxu1 %v10941_v0  ;;  %v973_v11 = vrot.slane %v971_v58, 4  ;;  %v1948_v18 = vsel %vm8816_vm4, %v7711_v57, %v1947_v49  ;;  %v1848_v49 = vld [vmem:[%s8772_s9 + $0x24] sm:$0xe]  ;;  %v8416_v57 = vld [vmem:[#allocation3 + $0x1d0] ss:$8 sps:$4 sm:$0xff]   ;;  %v1963_v21 = vrot.slane %v1961_v5, 4 }
  0x68   : > { %v1951_v19 = vsel %vm8816_vm4, %v1949_v3, %v1950_v60  ;;  %v8419_v58 = vld [vmem:[#allocation3 + $0x250] ss:$8 sps:$4 sm:$0xff]   ;;  %v998_v2 = vor.u32 %v997_v48, %v8869_v47  ;;  %v1850_v3 = vld [vmem:[%s8772_s9 + $0x2c] sm:$0x1]  ;;  %v7713_v4 = vrot.slane %v1848_v49, 9 }
  0x69   : > { %v974_v31 = vor.u32 %v973_v11, %v8848_v9  ;;  %v7727_v36 = vcombine.low %v1948_v18, %v1951_v19  ;;  %v8433_v18 = vld [vmem:[#allocation3 + $0x234] ss:$8 sps:$4 sm:$0xff]   ;;  %v8431_v30 = vld [vmem:[#allocation3 + $0x230] ss:$8 sps:$4 sm:$0xff]   ;;  %v8913_v48 = vld [vmem:[%s8772_s9 + $0x40] sm:$0xf] }
  0x6a   : > { %v999_v20 = vrot.slane %v998_v2, 4 }
  0x6b   : > { %v975_v50 = vrot.slane %v974_v31, 4 }
  0x6e   : > { %620 = vmatmul.mubr.bf16.gmra.mxu0 %v8380_v61  ;;  %700 = vmatmul.mubr.bf16.gmra.mxu1 %v8381_v62  ;;  %v866_v61 = vld [vmem:[%s8772_s9 + $0x20] sm:$0x1]  ;;  %v867_v62 = vld [vmem:[%s8772_s9 + $0x24] sm:$0xf] }
  0x6f   : > { %629 = vmatprep.mubr.bf16.mxu0 %v10941_v0  ;;  %709 = vmatprep.mubr.bf16.mxu1 %v10941_v0  ;;  %v982_v13 = vshrl.u32 %v867_v62, 16  ;;  %v985_v14 = vshll.u32 %v867_v62, 16  ;;  %v977_v15 = vshll.u32 %v866_v61, 16  ;;  %v1019_v61 = vshrl.u32 %v871_v44, 16  ;;  %v8424_v62 = vld [vmem:[#allocation3 + $0x1c4] ss:$8 sps:$4 sm:$0xff]  }
  0x71   : > { %v984_v33 = vrot.slane %v982_v13, 4  ;;  %v987_v34 = vrot.slane %v985_v14, 5  ;;  %v979_v41 = vrot.slane %v977_v15, 5  ;;  %v8422_v13 = vld [vmem:[#allocation3 + $0x1c0] ss:$8 sps:$4 sm:$0xff]   ;;  %v1021_v16 = vrot.slane %v1019_v61, 4 }
  0x72   : > { %v8425_v14 = vld [vmem:[#allocation3 + $0x240] ss:$8 sps:$4 sm:$0xff]  }
  0x73   : > { %v988_v51 = vor.u32 %v987_v34, %v984_v33  ;;  %v1962_v33 = vsel %vm8816_vm4, %v7713_v4, %v1961_v5  ;;  %v1856_v4 = vld [vmem:[%s8772_s9 + $0x44] sm:$0x1] }
  0x76   : > { %630 = vmatmul.mubr.bf16.gmra.mxu0 %v8388_v6  ;;  %710 = vmatmul.mubr.bf16.gmra.mxu1 %v8389_v7  ;;  %v7678_v6 = vcombine.low %v922_v55, %v932_v56  ;;  %v951_v7 = vrot.slane %v950_v52, 4  ;;  %v1001_v52 = vshll.u32 %v869_v28, 16  ;;  %v1009_v55 = vshll.u32 %v870_v35, 16  ;;  %v874_v28 = vld [vmem:[%s8772_s9 + $0x40] sm:$0xf] }
  0x77   : > { %639 = vmatprep.mubr.bf16.mxu0 %v10941_v0  ;;  %719 = vmatprep.mubr.bf16.mxu1 %v10941_v0  ;;  %v1015_v56 = vshll.u32 %v871_v44, 16 }
  0x78   : > { %v1011_v11 = vrot.slane %v1009_v55, 5  ;;  %v876_v55 = vld [vmem:[%s8772_s9 + $0x48] sm:$0xf] }
  0x79   : > { %v8891_v12 = vrot.slane %v1015_v56, 5  ;;  %v1054_v5 = vshrl.u32 %v876_v55, 16 }
  0x7b   : > { %v1022_v34 = vor.u32 %v1021_v16, %v8891_v12 }
  0x7e   : > { %640 = vmatmul.mubr.bf16.gmra.mxu0 %v8396_v26  ;;  %720 = vmatmul.mubr.bf16.gmra.mxu1 %v8397_v27  ;;  %v956_v26 = vsel %vm8828_vm5, %v951_v7, %v955_v8  ;;  %v1954_v27 = vrot.slane %v1846_v10, 5  ;;  %v8886_v7 = vrot.slane %v988_v51, 4  ;;  %v8888_v8 = vrot.slane %v1001_v52, 5  ;;  %v8437_v51 = vld [vmem:[#allocation3 + $0x220] ss:$8 sps:$4 sm:$0xff]  }
  0x7f   : > { %1550 = vmatprep.mubr.bf16.mxu1 %v10941_v0  ;;  %2307 = vmatprep.mubr.bf16.mxu0 %v10941_v0  ;;  %v7679_v39 = vcombine.low %v946_v17, %v956_v26  ;;  %v1008_v10 = vrot.slane %v1006_v54, 4  ;;  %v8430_v17 = vld [vmem:[#allocation3 + $0x1b4] ss:$8 sps:$4 sm:$0xff]   ;;  %v1023_v52 = vrot.slane %v1022_v34, 4 }
  0x80   : > { %v1956_v45 = vrot.slane %v1954_v27, 4  ;;  %v1955_v60 = vsel %vm8816_vm4, %v7712_v42, %v1954_v27  ;;  %v873_v26 = vld [vmem:[%s8772_s9 + $0x3c] sm:$0xf]  ;;  %v994_v31 = vsel %vm8828_vm5, %v8886_v7, %v8869_v47  ;;  %v1043_v47 = vshrl.u32 %v874_v28, 16 }
  0x81   : > { %v1012_v27 = vor.u32 %v1011_v11, %v1008_v10  ;;  %v1033_v42 = vshll.u32 %v873_v26, 16 }
  0x83   : > { %v1013_v49 = vrot.slane %v1012_v27, 4 }
  0x86   : > { %1551 = vmatmul.mubr.bf16.vlgmr.msra.gmra.mxu1 %v7678_v6  ;;  %2308 = vmatmul.mubr.bf16.vlgmr.msra.gmra.mxu0 %v7726_v59  ;;  %v970_v59 = vsel %vm8828_vm5, %v965_v40, %v8848_v9  ;;  %v980_v6 = vsel %vm8828_vm5, %v975_v50, %v979_v41  ;;  %v872_v9 = vld [vmem:[%s8772_s9 + $0x38] sm:$0x1]  ;;  %v1030_v41 = vshrl.u32 %v873_v26, 16  ;;  %v8434_v50 = vld [vmem:[#allocation3 + $0x1a0] ss:$8 sps:$4 sm:$0xff]  }
  0x87   : > { %2887 = vmatpush1.bf16.msra.mxu1 %v8404_v63  ;;  %3865 = vmatpush1.bf16.msra.mxu0 %v8407_v1  ;;  %v8427_v63 = vld [vmem:[#allocation3 + $0x244] ss:$8 sps:$4 sm:$0xff]   ;;  %v1958_v1 = vsel %vm8816_vm4, %v1956_v45, %v1957_v46  ;;  %v7680_v19 = vcombine.low %v970_v59, %v980_v6  ;;  %v1853_v40 = vld [vmem:[%s8772_s9 + $0x38] sm:$0x1]  ;;  %v1039_v46 = vshll.u32 %v874_v28, 16  ;;  %v1018_v6 = vsel %vm8828_vm5, %v1013_v49, %v8891_v12 }
  0x88   : > { %1560 = vmatprep.mubr.bf16.mxu1 %v10941_v0  ;;  %2317 = vmatprep.mubr.bf16.mxu0 %v10941_v0  ;;  %v7728_v15 = vcombine.low %v1955_v60, %v1958_v1  ;;  %v1971_v54 = vrot.slane %v1853_v40, 5  ;;  %v1032_v59 = vrot.slane %v1030_v41, 4  ;;  %v1035_v60 = vrot.slane %v1033_v42, 5  ;;  %v877_v1 = vld [vmem:[%s8772_s9 + $0x4c] sm:$0xf] }
  0x89   : > { %2888 = vmatprep.subr.bf16.mxu1 %v8412_v23  ;;  %3866 = vmatprep.subr.bf16.mxu0 %v8415_v25  ;;  %v1852_v23 = vld [vmem:[%s8772_s9 + $0x34] sm:$0xf]  ;;  %v1851_v25 = vld [vmem:[%s8772_s9 + $0x30] sm:$0xe]  ;;  %v8917_v61 = vrot.slane %v1039_v46, 5 }
  0x8a   : > { %v1968_v35 = vrot.slane %v1852_v23, 5  ;;  %v7714_v45 = vrot.slane %v1851_v25, 9  ;;  %v1036_v10 = vor.u32 %v1035_v60, %v1032_v59  ;;  %v8445_v25 = vld [vmem:[#allocation3 + $0x214] ss:$8 sps:$4 sm:$0xff]  }
  0x8b   : > { %2889 = vmatpush1.bf16.msra.mxu1 %v8410_v22  ;;  %3867 = vmatpush1.bf16.msra.mxu0 %v8413_v24  ;;  %v1964_v22 = vrot.slane %v1850_v3, 5  ;;  %v1025_v24 = vshll.u32 %v872_v9, 16  ;;  %v1854_v3 = vld [vmem:[%s8772_s9 + $0x3c] sm:$0xe]  ;;  %v1057_v9 = vshll.u32 %v876_v55, 16 }
  0x8c   : > { %2890 = vmatprep.subr.bf16.mxu1 %v8418_v37  ;;  %3868 = vmatprep.subr.bf16.mxu0 %v8421_v38  ;;  %v8439_v37 = vld [vmem:[#allocation3 + $0x224] ss:$8 sps:$4 sm:$0xff]   ;;  %v1004_v38 = vsel %vm8828_vm5, %v999_v20, %v8888_v8  ;;  %v1970_v53 = vrot.slane %v1968_v35, 4  ;;  %v1969_v2 = vsel %vm8816_vm4, %v7714_v45, %v1968_v35  ;;  %v7715_v16 = vrot.slane %v1854_v3, 9 }
  0x8d   : > { %v1027_v44 = vrot.slane %v1025_v24, 5  ;;  %v7681_v56 = vcombine.low %v994_v31, %v1004_v38  ;;  %v1056_v20 = vrot.slane %v1054_v5, 4  ;;  %v1059_v23 = vrot.slane %v1057_v9, 5  ;;  %v8443_v24 = vld [vmem:[#allocation3 + $0x210] ss:$8 sps:$4 sm:$0xff]  }
  0x8e   : > { %1561 = vmatmul.mubr.bf16.gmra.mxu1 %v7679_v39  ;;  %2318 = vmatmul.mubr.bf16.gmra.mxu0 %v7727_v36  ;;  %v8436_v36 = vld [vmem:[#allocation3 + $0x1a4] ss:$8 sps:$4 sm:$0xff]   ;;  %v1965_v39 = vsel %vm8816_vm4, %v1963_v21, %v1964_v22  ;;  %v1972_v8 = vsel %vm8816_vm4, %v1970_v53, %v1971_v54  ;;  %v879_v21 = vld [vmem:[%s8772_s9 + $0x54] sm:$0xf]  ;;  %v1037_v31 = vrot.slane %v1036_v10, 4 }
  0x8f   : > { %1570 = vmatprep.mubr.bf16.mxu1 %v10941_v0  ;;  %2327 = vmatprep.mubr.bf16.mxu0 %v10941_v0  ;;  %v1028_v7 = vsel %vm8828_vm5, %v1023_v52, %v1027_v44  ;;  %v8442_v22 = vld [vmem:[#allocation3 + $0x194] ss:$8 sps:$4 sm:$0xff]   ;;  %v7730_v27 = vcombine.low %v1969_v2, %v1972_v8  ;;  %v1857_v38 = vld [vmem:[%s8772_s9 + $0x48] sm:$0xe]  ;;  %v1081_v40 = vshll.u32 %v879_v21, 16  ;;  %v1060_v42 = vor.u32 %v1059_v23, %v1056_v20 }
  0x90   : > { %2891 = vmatpush1.bf16.msra.mxu1 %v8416_v57  ;;  %3869 = vmatpush1.bf16.msra.mxu0 %v8419_v58  ;;  %v7729_v57 = vcombine.low %v1962_v33, %v1965_v39  ;;  %v875_v58 = vld [vmem:[%s8772_s9 + $0x44] sm:$0x1]  ;;  %v7682_v26 = vcombine.low %v1018_v6, %v1028_v7  ;;  %v1078_v39 = vshrl.u32 %v879_v21, 16  ;;  %v1042_v49 = vsel %vm8828_vm5, %v1037_v31, %v8917_v61  ;;  %v881_v53 = vld [vmem:[%s8772_s9 + $0x5c] sm:$0x1] }
  0x91   : > { %2892 = vmatprep.subr.bf16.mxu1 %v8424_v62  ;;  %3870 = vmatprep.subr.bf16.mxu0 %v8427_v63  ;;  %v1045_v62 = vrot.slane %v1043_v47, 4  ;;  %v1975_v63 = vrot.slane %v8913_v48, 5  ;;  %v1049_v11 = vshll.u32 %v875_v58, 16  ;;  %v1859_v47 = vld [vmem:[%s8772_s9 + $0x50] sm:$0x1]  ;;  %v7716_v52 = vrot.slane %v1857_v38, 9 }
  0x92   : > { %v1080_v55 = vrot.slane %v1078_v39, 4  ;;  %v883_v58 = vld [vmem:[%s8772_s9 + $0x64] sm:$0xf]  ;;  %v1061_v59 = vrot.slane %v1060_v42, 4  ;;  %v1985_v60 = vrot.slane %v1859_v47, 5  ;;  %v1097_v3 = vshll.u32 %v881_v53, 16 }
  0x93   : > { %v1046_v12 = vor.u32 %v1045_v62, %v8917_v61  ;;  %v1051_v34 = vrot.slane %v1049_v11, 5  ;;  %v1860_v5 = vld [vmem:[%s8772_s9 + $0x54] sm:$0xe]  ;;  %v1111_v8 = vshll.u32 %v883_v58, 16  ;;  %v1115_v9 = vshrl.u32 %v883_v58, 16 }
  0x94   : > { %2893 = vmatpush1.bf16.msra.mxu1 %v8422_v13  ;;  %3871 = vmatpush1.bf16.msra.mxu0 %v8425_v14  ;;  %v878_v13 = vld [vmem:[%s8772_s9 + $0x50] sm:$0x1]  ;;  %v1063_v14 = vshll.u32 %v877_v1, 16  ;;  %v1862_v11 = vld [vmem:[%s8772_s9 + $0x5c] sm:$0x1] }
  0x95   : > { %2894 = vmatprep.subr.bf16.mxu1 %v8430_v17  ;;  %3872 = vmatprep.subr.bf16.mxu0 %v8433_v18  ;;  %v1977_v17 = vrot.slane %v1975_v63, 4  ;;  %v1978_v18 = vrot.slane %v1856_v4, 5  ;;  %v1047_v33 = vrot.slane %v1046_v12, 4  ;;  %v1073_v35 = vshll.u32 %v878_v13, 16  ;;  %v1861_v4 = vld [vmem:[%s8772_s9 + $0x58] sm:$0xf] }
  0x96   : > { %1571 = vmatmul.mubr.bf16.gmra.mxu1 %v7680_v19  ;;  %2328 = vmatmul.mubr.bf16.gmra.mxu0 %v7728_v15  ;;  %v1067_v15 = vshrl.u32 %v877_v1, 16  ;;  %v8440_v19 = vld [vmem:[#allocation3 + $0x190] ss:$8 sps:$4 sm:$0xff]   ;;  %v8937_v28 = vrot.slane %v1063_v14, 5  ;;  %v8446_v13 = vld [vmem:[#allocation3 + $0x180] ss:$8 sps:$4 sm:$0xff]  }
  0x97   : > { %1580 = vmatprep.mubr.bf16.mxu1 %v10941_v0  ;;  %2337 = vmatprep.mubr.bf16.mxu0 %v10941_v0  ;;  %v1979_v41 = vsel %vm8816_vm4, %v1977_v17, %v1978_v18  ;;  %v8448_v14 = vld [vmem:[#allocation3 + $0x184] ss:$8 sps:$4 sm:$0xff]   ;;  %v8449_v17 = vld [vmem:[#allocation3 + $0x200] ss:$8 sps:$4 sm:$0xff]   ;;  %v886_v42 = vld [vmem:[%s8772_s9 + $0x70] sm:$0xf] }
  0x98   : > { %2895 = vmatpush1.bf16.msra.mxu1 %v8428_v29  ;;  %3873 = vmatpush1.bf16.msra.mxu0 %v8431_v30  ;;  %v1069_v29 = vrot.slane %v1067_v15, 4  ;;  %v880_v30 = vld [vmem:[%s8772_s9 + $0x58] sm:$0xf]  ;;  %v8451_v18 = vld [vmem:[#allocation3 + $0x204] ss:$8 sps:$4 sm:$0xff]  }
  0x99   : > { %2896 = vmatprep.subr.bf16.mxu1 %v8436_v36  ;;  %3874 = vmatprep.subr.bf16.mxu0 %v8439_v37  ;;  %v1858_v36 = vld [vmem:[%s8772_s9 + $0x4c] sm:$0xf]  ;;  %v1976_v37 = vsel %vm8816_vm4, %v7715_v16, %v1975_v63  ;;  %v1087_v44 = vshll.u32 %v880_v30, 16  ;;  %v1091_v45 = vshrl.u32 %v880_v30, 16  ;;  %v1989_v16 = vrot.slane %v1861_v4, 5 }
  0x9a   : > { %v1070_v46 = vor.u32 %v1069_v29, %v8937_v28  ;;  %v1982_v48 = vrot.slane %v1858_v36, 5  ;;  %v7731_v54 = vcombine.low %v1976_v37, %v1979_v41  ;;  %v7717_v29 = vrot.slane %v1860_v5, 9  ;;  %v1863_v38 = vld [vmem:[%s8772_s9 + $0x60] sm:$0xe]  ;;  %v885_v39 = vld [vmem:[%s8772_s9 + $0x6c] sm:$0xf] }
  0x9b   : > { %v8958_v62 = vrot.slane %v1087_v44, 5  ;;  %v1093_v63 = vrot.slane %v1091_v45, 4  ;;  %v1992_v30 = vrot.slane %v1862_v11, 5  ;;  %v1129_v53 = vshll.u32 %v885_v39, 16 }
  0x9c   : > { %2897 = vmatpush1.bf16.msra.mxu1 %v8434_v50  ;;  %3875 = vmatpush1.bf16.msra.mxu0 %v8437_v51  ;;  %v1052_v50 = vsel %vm8828_vm5, %v1047_v33, %v1051_v34  ;;  %v1075_v51 = vrot.slane %v1073_v35, 5  ;;  %v1071_v1 = vrot.slane %v1070_v46, 4  ;;  %v1984_v2 = vrot.slane %v1982_v48, 4  ;;  %v1864_v35 = vld [vmem:[%s8772_s9 + $0x64] sm:$0xf] }
  0x9d   : > { %2898 = vmatprep.subr.bf16.mxu1 %v8442_v22  ;;  %3876 = vmatprep.subr.bf16.mxu0 %v8445_v25  ;;  %v7683_v61 = vcombine.low %v1042_v49, %v1052_v50  ;;  %v1983_v15 = vsel %vm8816_vm4, %v7716_v52, %v1982_v48  ;;  %v1094_v12 = vor.u32 %v1093_v63, %v8958_v62  ;;  %v884_v22 = vld [vmem:[%s8772_s9 + $0x68] sm:$0x1]  ;;  %v8976_v25 = vrot.slane %v1111_v8, 5  ;;  %v888_v63 = vld [vmem:[%s8772_s9 + $0x78] sm:$0xf] }
  0x9e   : > { %1581 = vmatmul.mubr.bf16.gmra.mxu1 %v7681_v56  ;;  %2338 = vmatmul.mubr.bf16.gmra.mxu0 %v7729_v57  ;;  %v1083_v56 = vrot.slane %v1081_v40, 5  ;;  %v882_v57 = vld [vmem:[%s8772_s9 + $0x60] sm:$0xf]  ;;  %v1076_v20 = vsel %vm8828_vm5, %v1071_v1, %v1075_v51  ;;  %v1986_v21 = vsel %vm8816_vm4, %v1984_v2, %v1985_v60  ;;  %v1991_v33 = vrot.slane %v1989_v16, 4  ;;  %v1865_v46 = vld [vmem:[%s8772_s9 + $0x68] sm:$0x1] }
  0x9f   : > { %1590 = vmatprep.mubr.bf16.mxu1 %v10941_v0  ;;  %2347 = vmatprep.mubr.bf16.mxu0 %v10941_v0  ;;  %v1102_v6 = vshrl.u32 %v882_v57, 16  ;;  %v1105_v7 = vshll.u32 %v882_v57, 16  ;;  %v1095_v31 = vrot.slane %v1094_v12, 4  ;;  %v1121_v34 = vshll.u32 %v884_v22, 16  ;;  %v1867_v8 = vld [vmem:[%s8772_s9 + $0x70] sm:$0xf] }
  0xa0   : > { %2899 = vmatpush1.bf16.msra.mxu1 %v8440_v19  ;;  %3877 = vmatpush1.bf16.msra.mxu0 %v8443_v24  ;;  %v1084_v10 = vor.u32 %v1083_v56, %v1080_v55  ;;  %v1066_v19 = vsel %vm8828_vm5, %v1061_v59, %v8937_v28  ;;  %v1099_v28 = vrot.slane %v1097_v3, 5  ;;  %v7732_v37 = vcombine.low %v1983_v15, %v1986_v21  ;;  %v8455_v59 = vld [vmem:[#allocation3 + $0x2f4] ss:$8 sps:$4 sm:$0xff]  }
  0xa1   : > { %v1104_v23 = vrot.slane %v1102_v6, 4  ;;  %v1107_v24 = vrot.slane %v1105_v7, 5  ;;  %2900 = vmatprep.subr.bf16.mxu1 %v8448_v14  ;;  %3878 = vmatprep.subr.bf16.mxu0 %v8451_v18  ;;  %v7684_v36 = vcombine.low %v1066_v19, %v1076_v20  ;;  %v1990_v45 = vsel %vm8816_vm4, %v7717_v29, %v1989_v16  ;;  %v8458_v3 = vld [vmem:[#allocation3 + $0x374] ss:$8 sps:$4 sm:$0xff]   ;;  %v1866_v20 = vld [vmem:[%s8772_s9 + $0x6c] sm:$0xe] }
  0xa2   : > { %v1996_v47 = vrot.slane %v1864_v35, 5  ;;  %v1100_v48 = vsel %vm8828_vm5, %v1095_v31, %v1099_v28  ;;  %v1993_v49 = vsel %vm8816_vm4, %v1991_v33, %v1992_v30  ;;  %v1123_v50 = vrot.slane %v1121_v34, 5  ;;  %v1868_v22 = vld [vmem:[%s8772_s9 + $0x74] sm:$0x1]  ;;  %v890_v31 = vld [vmem:[%s8772_s9 + $0x80] sm:$0x1] }
  0xa3   : > { %v1108_v40 = vor.u32 %v1107_v24, %v1104_v23  ;;  %v7718_v51 = vrot.slane %v1863_v38, 9  ;;  %v1126_v52 = vshrl.u32 %v885_v39, 16  ;;  %v1139_v55 = vshrl.u32 %v886_v42, 16 }
  0xa4   : > { %2901 = vmatpush1.bf16.msra.mxu1 %v8446_v13  ;;  %3879 = vmatpush1.bf16.msra.mxu0 %v8449_v17  ;;  %v1999_v58 = vrot.slane %v1865_v46, 5  ;;  %v1998_v60 = vrot.slane %v1996_v47, 4  ;;  %v7733_v2 = vcombine.low %v1990_v45, %v1993_v49  ;;  %v1131_v5 = vrot.slane %v1129_v53, 5  ;;  %v1869_v45 = vld [vmem:[%s8772_s9 + $0x78] sm:$0xe] }
  0xa5   : > { %v1109_v56 = vrot.slane %v1108_v40, 4  ;;  %4618 = vmatprep.subr.bf16.mxu1 %v8455_v59  ;;  %v1128_v4 = vrot.slane %v1126_v52, 4  ;;  %v1141_v7 = vrot.slane %v1139_v55, 4  ;;  %5229 = vmatprep.subr.bf16.mxu0 %v8458_v3  ;;  %v1997_v12 = vsel %vm8816_vm4, %v7718_v51, %v1996_v47  ;;  %v895_v3 = vld [vmem:[%s8772_s9 + $0x94] sm:$0xf] }
  0xa6   : > { %1591 = vmatmul.mubr.bf16.gmra.mxu1 %v7682_v26  ;;  %2348 = vmatmul.mubr.bf16.gmra.mxu0 %v7730_v27  ;;  %v1117_v26 = vrot.slane %v1115_v9, 4  ;;  %v1085_v27 = vrot.slane %v1084_v10, 4  ;;  %v1150_v9 = vshrl.u32 %v888_v63, 16  ;;  %v1153_v10 = vshll.u32 %v888_v63, 16 }
  0xa7   : > { %1600 = vmatprep.mubr.bf16.mxu1 %v10941_v0  ;;  %2357 = vmatprep.mubr.bf16.mxu0 %v10941_v0  ;;  %v1114_v14 = vsel %vm8828_vm5, %v1109_v56, %v8976_v25  ;;  %v2000_v17 = vsel %vm8816_vm4, %v1998_v60, %v1999_v58  ;;  %v1132_v18 = vor.u32 %v1131_v5, %v1128_v4  ;;  %v2003_v21 = vrot.slane %v1867_v8, 5  ;;  %v893_v60 = vld [vmem:[%s8772_s9 + $0x8c] sm:$0x1] }
  0xa8   : > { %v1118_v41 = vor.u32 %v1117_v26, %v8976_v25  ;;  %v1090_v44 = vsel %vm8828_vm5, %v1085_v27, %v8958_v62  ;;  %v887_v62 = vld [vmem:[%s8772_s9 + $0x74] sm:$0x1]  ;;  %v1152_v23 = vrot.slane %v1150_v9, 4  ;;  %v1155_v24 = vrot.slane %v1153_v10, 5  ;;  %v1873_v9 = vld [vmem:[%s8772_s9 + $0x88] sm:$0xf] }
  0xa9   : > { %v7685_v1 = vcombine.low %v1090_v44, %v1100_v48  ;;  %v1145_v16 = vshll.u32 %v887_v62, 16  ;;  %v7734_v28 = vcombine.low %v1997_v12, %v2000_v17  ;;  %v7719_v30 = vrot.slane %v1866_v20, 9  ;;  %v1871_v48 = vld [vmem:[%s8772_s9 + $0x80] sm:$0x1]  ;;  %v1872_v10 = vld [vmem:[%s8772_s9 + $0x84] sm:$0xe] }
  0xaa   : > { %v1119_v57 = vrot.slane %v1118_v41, 4  ;;  %v1133_v33 = vrot.slane %v1132_v18, 4  ;;  %v2005_v35 = vrot.slane %v2003_v21, 4  ;;  %v1156_v38 = vor.u32 %v1155_v24, %v1152_v23  ;;  %v1870_v41 = vld [vmem:[%s8772_s9 + $0x7c] sm:$0xf] }
  0xab   : > { %v1147_v29 = vrot.slane %v1145_v16, 5  ;;  %v1169_v40 = vshll.u32 %v890_v31, 16  ;;  %v2004_v44 = vsel %vm8816_vm4, %v7719_v30, %v2003_v21  ;;  %v2010_v52 = vrot.slane %v1870_v41, 5  ;;  %v1874_v20 = vld [vmem:[%s8772_s9 + $0x8c] sm:$0x1] }
  0xac   : > { %v1124_v15 = vsel %vm8828_vm5, %v1119_v57, %v1123_v50  ;;  %v1157_v55 = vrot.slane %v1156_v38, 4  ;;  %v7720_v58 = vrot.slane %v1869_v45, 9  ;;  %v2013_v59 = vrot.slane %v1871_v48, 5  ;;  %v898_v38 = vld [vmem:[%s8772_s9 + $0xa0] sm:$0xf] }
  0xad   : > { %v7686_v27 = vcombine.low %v1114_v14, %v1124_v15  ;;  %v1171_v57 = vrot.slane %v1169_v40, 5  ;;  %v2012_v4 = vrot.slane %v2010_v52, 4  ;;  %v1207_v14 = vshll.u32 %v895_v3, 16 }
  0xae   : > { %1601 = vmatmul.mubr.bf16.gmra.mxu1 %v7683_v61  ;;  %2358 = vmatmul.mubr.bf16.gmra.mxu0 %v7731_v54  ;;  %v1135_v54 = vshll.u32 %v886_v42, 16  ;;  %v889_v61 = vld [vmem:[%s8772_s9 + $0x7c] sm:$0xf]  ;;  %v892_v42 = vld [vmem:[%s8772_s9 + $0x88] sm:$0xf]  ;;  %v1211_v15 = vshrl.u32 %v895_v3, 16  ;;  %v2011_v17 = vsel %vm8816_vm4, %v7720_v58, %v2010_v52 }
  0xaf   : > { %1610 = vmatprep.mubr.bf16.mxu1 %v10941_v0  ;;  %2367 = vmatprep.mubr.bf16.mxu0 %v10941_v0  ;;  %v1159_v11 = vshll.u32 %v889_v61, 16  ;;  %v1163_v13 = vshrl.u32 %v889_v61, 16  ;;  %v1183_v53 = vshll.u32 %v892_v42, 16  ;;  %v1193_v16 = vshll.u32 %v893_v60, 16 }
  0xb0   : > { %v8998_v6 = vrot.slane %v1135_v54, 5  ;;  %v1187_v54 = vshrl.u32 %v892_v42, 16  ;;  %v2014_v18 = vsel %vm8816_vm4, %v2012_v4, %v2013_v59  ;;  %v2017_v21 = vrot.slane %v1873_v9, 5 }
  0xb1   : > { %v9015_v25 = vrot.slane %v1159_v11, 5  ;;  %v1165_v26 = vrot.slane %v1163_v13, 4  ;;  %v1185_v5 = vrot.slane %v1183_v53, 5  ;;  %v7721_v23 = vrot.slane %v1872_v10, 9 }
  0xb2   : > { %v1142_v19 = vor.u32 %v1141_v7, %v8998_v6  ;;  %v1138_v46 = vsel %vm8828_vm5, %v1133_v33, %v8998_v6  ;;  %v1189_v6 = vrot.slane %v1187_v54, 4  ;;  %v1195_v30 = vrot.slane %v1193_v16, 5  ;;  %v896_v33 = vld [vmem:[%s8772_s9 + $0x98] sm:$0x1] }
  0xb3   : > { %v1166_v39 = vor.u32 %v1165_v26, %v9015_v25  ;;  %v1162_v7 = vsel %vm8828_vm5, %v1157_v55, %v9015_v25  ;;  %v9052_v26 = vrot.slane %v1207_v14, 5  ;;  %v2020_v31 = vrot.slane %v1874_v20, 5  ;;  %v1880_v20 = vld [vmem:[%s8772_s9 + $0xa4] sm:$0x1] }
  0xb4   : > { %v1143_v34 = vrot.slane %v1142_v19, 4  ;;  %v1190_v19 = vor.u32 %v1189_v6, %v1185_v5  ;;  %v1217_v42 = vshll.u32 %v896_v33, 16  ;;  %v1231_v52 = vshll.u32 %v898_v38, 16 }
  0xb5   : > { %v1167_v56 = vrot.slane %v1166_v39, 4  ;;  %v2018_v39 = vsel %vm8816_vm4, %v7721_v23, %v2017_v21  ;;  %v1235_v53 = vshrl.u32 %v898_v38, 16  ;;  %v902_v23 = vld [vmem:[%s8772_s9 + $0xb0] sm:$0x1]  ;;  %v1882_v38 = vld [vmem:[%s8772_s9 + $0xac] sm:$0xf] }
  0xb6   : > { %1611 = vmatmul.mubr.bf16.gmra.mxu1 %v7684_v36  ;;  %2368 = vmatmul.mubr.bf16.gmra.mxu0 %v7732_v37  ;;  %v2006_v36 = vrot.slane %v1868_v22, 5  ;;  %v891_v37 = vld [vmem:[%s8772_s9 + $0x84] sm:$0xf]  ;;  %v1148_v51 = vsel %vm8828_vm5, %v1143_v34, %v1147_v29  ;;  %v1191_v34 = vrot.slane %v1190_v19, 4  ;;  %v9073_v3 = vrot.slane %v1231_v52, 5 }
  0xb7   : > { %1620 = vmatprep.mubr.bf16.mxu1 %v10941_v0  ;;  %2377 = vmatprep.mubr.bf16.mxu0 %v10941_v0  ;;  %v1174_v49 = vshrl.u32 %v891_v37, 16  ;;  %v1177_v50 = vshll.u32 %v891_v37, 16  ;;  %v7687_v62 = vcombine.low %v1138_v46, %v1148_v51  ;;  %v1172_v8 = vsel %vm8828_vm5, %v1167_v56, %v1171_v57  ;;  %v897_v37 = vld [vmem:[%s8772_s9 + $0x9c] sm:$0xf]  ;;  %v1877_v46 = vld [vmem:[%s8772_s9 + $0x98] sm:$0x1] }
  0xb8   : > { %v2007_v47 = vsel %vm8816_vm4, %v2005_v35, %v2006_v36  ;;  %v7688_v22 = vcombine.low %v1162_v7, %v1172_v8  ;;  %v2019_v35 = vrot.slane %v2017_v21, 4  ;;  %v1876_v36 = vld [vmem:[%s8772_s9 + $0x94] sm:$0xf]  ;;  %v1222_v48 = vshrl.u32 %v897_v37, 16  ;;  %v1879_v7 = vld [vmem:[%s8772_s9 + $0xa0] sm:$0xf] }
  0xb9   : > { %v7735_v63 = vcombine.low %v2004_v44, %v2007_v47  ;;  %v1176_v61 = vrot.slane %v1174_v49, 4  ;;  %v1875_v44 = vld [vmem:[%s8772_s9 + $0x90] sm:$0xe]  ;;  %v2024_v47 = vrot.slane %v1876_v36, 5  ;;  %v1225_v49 = vshll.u32 %v897_v37, 16 }
  0xba   : > { %v2021_v51 = vsel %vm8816_vm4, %v2019_v35, %v2020_v31  ;;  %v7722_v54 = vrot.slane %v1875_v44, 9  ;;  %v1219_v57 = vrot.slane %v1217_v42, 5  ;;  %v1237_v4 = vrot.slane %v1235_v53, 4  ;;  %v904_v31 = vld [vmem:[%s8772_s9 + $0xb8] sm:$0xf] }
  0xbb   : > { %v7737_v59 = vcombine.low %v2018_v39, %v2021_v51  ;;  %v2026_v60 = vrot.slane %v2024_v47, 4  ;;  %v2031_v19 = vrot.slane %v1879_v7, 5  ;;  %v2034_v36 = vrot.slane %v1880_v20, 5  ;;  %v1881_v42 = vld [vmem:[%s8772_s9 + $0xa8] sm:$0xe] }
  0xbc   : > { %v2025_v6 = vsel %vm8816_vm4, %v7722_v54, %v2024_v47  ;;  %v1265_v37 = vshll.u32 %v902_v23, 16  ;;  %v1279_v44 = vshll.u32 %v904_v31, 16  ;;  %v1883_v51 = vld [vmem:[%s8772_s9 + $0xb0] sm:$0x1]  ;;  %v2038_v52 = vrot.slane %v1882_v38, 5 }
  0xbd   : > { %v2033_v35 = vrot.slane %v2031_v19, 4  ;;  %v905_v53 = vld [vmem:[%s8772_s9 + $0xbc] sm:$0x1]  ;;  %v1884_v7 = vld [vmem:[%s8772_s9 + $0xb4] sm:$0xe] }
  0xbe   : > { %1621 = vmatmul.mubr.bf16.gmra.mxu1 %v7685_v1  ;;  %2378 = vmatmul.mubr.bf16.gmra.mxu0 %v7733_v2  ;;  %v1179_v1 = vrot.slane %v1177_v50, 5  ;;  %v894_v2 = vld [vmem:[%s8772_s9 + $0x90] sm:$0xf]  ;;  %v1196_v50 = vsel %vm8828_vm5, %v1191_v34, %v1195_v30  ;;  %v1267_v54 = vrot.slane %v1265_v37, 5 }
  0xbf   : > { %1630 = vmatprep.mubr.bf16.mxu1 %v10941_v0  ;;  %2387 = vmatprep.mubr.bf16.mxu0 %v10941_v0  ;;  %v1198_v11 = vshrl.u32 %v894_v2, 16  ;;  %v1201_v13 = vshll.u32 %v894_v2, 16  ;;  %v1227_v2 = vrot.slane %v1225_v49, 5 }
  0xc0   : > { %v1180_v12 = vor.u32 %v1179_v1, %v1176_v61  ;;  %v900_v61 = vld [vmem:[%s8772_s9 + $0xa8] sm:$0xf]  ;;  %v1224_v1 = vrot.slane %v1222_v48, 4 }
  0xc1   : > { %v1200_v24 = vrot.slane %v1198_v11, 4  ;;  %v1203_v25 = vrot.slane %v1201_v13, 5  ;;  %v1246_v10 = vshrl.u32 %v900_v61, 16  ;;  %v1249_v11 = vshll.u32 %v900_v61, 16 }
  0xc2   : > { %v1181_v29 = vrot.slane %v1180_v12, 4  ;;  %v1228_v16 = vor.u32 %v1227_v2, %v1224_v1  ;;  %v1289_v1 = vshll.u32 %v905_v53, 16  ;;  %v1885_v2 = vld [vmem:[%s8772_s9 + $0xb8] sm:$0xf] }
  0xc3   : > { %v1204_v40 = vor.u32 %v1203_v25, %v1200_v24  ;;  %v1248_v24 = vrot.slane %v1246_v10, 4  ;;  %v1251_v25 = vrot.slane %v1249_v11, 5 }
  0xc4   : > { %v1186_v45 = vsel %vm8828_vm5, %v1181_v29, %v1185_v5  ;;  %v901_v5 = vld [vmem:[%s8772_s9 + $0xac] sm:$0xf]  ;;  %v1229_v33 = vrot.slane %v1228_v16, 4 }
  0xc5   : > { %v1205_v55 = vrot.slane %v1204_v40, 4  ;;  %v7689_v58 = vcombine.low %v1186_v45, %v1196_v50  ;;  %v1259_v12 = vshrl.u32 %v901_v5, 16  ;;  %v1283_v45 = vshrl.u32 %v904_v31, 16 }
  0xc6   : > { %1631 = vmatmul.mubr.bf16.gmra.mxu1 %v7686_v27  ;;  %2388 = vmatmul.mubr.bf16.gmra.mxu0 %v7734_v28  ;;  %v1213_v27 = vrot.slane %v1211_v15, 4  ;;  %v7736_v28 = vcombine.low %v2011_v17, %v2014_v18  ;;  %v1255_v15 = vshll.u32 %v901_v5, 16  ;;  %v1238_v17 = vor.u32 %v1237_v4, %v9073_v3  ;;  %v1878_v18 = vld [vmem:[%s8772_s9 + $0x9c] sm:$0xe]  ;;  %v7822_v5 = vld [vmem:[%s8772_s9 + $0xc] sm:$0xf] }
  0xc7   : > { %1640 = vmatprep.mubr.bf16.mxu1 %v10941_v0  ;;  %2397 = vmatprep.mubr.bf16.mxu0 %v10941_v0  ;;  %v1210_v8 = vsel %vm8828_vm5, %v1205_v55, %v9052_v26  ;;  %v1261_v30 = vrot.slane %v1259_v12, 4  ;;  %v1234_v48 = vsel %vm8828_vm5, %v1229_v33, %v9073_v3  ;;  %v2035_v50 = vsel %vm8816_vm4, %v2033_v35, %v2034_v36 }
  0xc8   : > { %v1214_v41 = vor.u32 %v1213_v27, %v9052_v26  ;;  %v903_v26 = vld [vmem:[%s8772_s9 + $0xb4] sm:$0xf]  ;;  %v9093_v29 = vrot.slane %v1255_v15, 5  ;;  %v1239_v34 = vrot.slane %v1238_v17, 4  ;;  %v7724_v55 = vrot.slane %v1881_v42, 9 }
  0xc9   : > { %v1270_v39 = vshrl.u32 %v903_v26, 16  ;;  %v1273_v40 = vshll.u32 %v903_v26, 16  ;;  %v2040_v3 = vrot.slane %v2038_v52, 4  ;;  %v2041_v4 = vrot.slane %v1883_v51, 5  ;;  %v7828_v51 = vld [vmem:[%s8772_s9 + $0x24] sm:$0xf] }
  0xca   : > { %v1215_v56 = vrot.slane %v1214_v41, 4  ;;  %v1252_v41 = vor.u32 %v1251_v25, %v1248_v24  ;;  %v1262_v47 = vor.u32 %v1261_v30, %v9093_v29  ;;  %v2039_v10 = vsel %vm8816_vm4, %v7724_v55, %v2038_v52  ;;  %v7829_v55 = vld [vmem:[%s8772_s9 + $0x28] sm:$0xf] }
  0xcb   : > { %v1291_v12 = vrot.slane %v1289_v1, 5  ;;  %v3256_v16 = vshrl.u32 %v7822_v5, 16  ;;  %v3259_v17 = vshll.u32 %v7822_v5, 16 }
  0xcc   : > { %v1220_v9 = vsel %vm8828_vm5, %v1215_v56, %v1219_v57  ;;  %v1272_v56 = vrot.slane %v1270_v39, 4  ;;  %v1275_v57 = vrot.slane %v1273_v40, 5  ;;  %v1263_v61 = vrot.slane %v1262_v47, 4 }
  0xcd   : > { %v7690_v21 = vcombine.low %v1210_v8, %v1220_v9  ;;  %v7823_v8 = vld [vmem:[%s8772_s9 + $0x10] sm:$0xf]  ;;  %v3258_v31 = vrot.slane %v3256_v16, 4  ;;  %v3261_v33 = vrot.slane %v3259_v17, 5  ;;  %v7832_v17 = vld [vmem:[%s8772_s9 + $0x34] sm:$0xf] }
  0xce   : > { %1641 = vmatmul.mubr.bf16.gmra.mxu1 %v7687_v62  ;;  %2398 = vmatmul.mubr.bf16.gmra.mxu0 %v7735_v63  ;;  %v2027_v62 = vrot.slane %v1877_v46, 5  ;;  %v899_v63 = vld [vmem:[%s8772_s9 + $0xa4] sm:$0x1]  ;;  %v1268_v15 = vsel %vm8828_vm5, %v1263_v61, %v1267_v54  ;;  %v3265_v20 = vshll.u32 %v7823_v8, 16 }
  0xcf   : > { %1650 = vmatprep.mubr.bf16.mxu1 %v10941_v0  ;;  %2407 = vmatprep.mubr.bf16.mxu0 %v10941_v0  ;;  %v1241_v14 = vshll.u32 %v899_v63, 16 }
  0xd0   : > { %v2028_v13 = vsel %vm8816_vm4, %v2026_v60, %v2027_v62  ;;  %v1285_v60 = vrot.slane %v1283_v45, 4  ;;  %v3267_v35 = vrot.slane %v3265_v20, 5  ;;  %v7827_v45 = vld [vmem:[%s8772_s9 + $0x20] sm:$0x1] }
  0xd1   : > { %v1243_v27 = vrot.slane %v1241_v14, 5  ;;  %v2045_v14 = vrot.slane %v1885_v2, 5 }
  0xd3   : > { %v1244_v49 = vsel %vm8828_vm5, %v1239_v34, %v1243_v27  ;;  %v2047_v27 = vrot.slane %v2045_v14, 4 }
  0xd4   : > { %v7691_v62 = vcombine.low %v1234_v48, %v1244_v49  ;;  %v3262_v48 = vor.u32 %v3261_v33, %v3258_v31  ;;  %v8461_v31 = vld [vmem:[#allocation3 + $0x2e0] ss:$8 sps:$4 sm:$0xff]  }
  0xd5   : > { %v8464_v33 = vld [vmem:[#allocation3 + $0x360] ss:$8 sps:$4 sm:$0xff]  }
  0xd6   : > { %1651 = vmatmul.mubr.bf16.gmra.mxu1 %v7688_v22  ;;  %2408 = vmatmul.mubr.bf16.gmra.mxu0 %v7736_v28  ;;  %v7738_v22 = vcombine.low %v2025_v6, %v2028_v13  ;;  %v7723_v28 = vrot.slane %v1878_v18, 9  ;;  %v1276_v6 = vor.u32 %v1275_v57, %v1272_v56  ;;  %v1886_v13 = vld [vmem:[%s8772_s9 + $0xbc] sm:$0x1]  ;;  %v2042_v18 = vsel %vm8816_vm4, %v2040_v3, %v2041_v4 }
  0xd7   : > { %1660 = vmatprep.mubr.bf16.mxu1 %v10941_v0  ;;  %2417 = vmatprep.mubr.bf16.mxu0 %v10941_v0  ;;  %v2048_v24 = vrot.slane %v1886_v13, 5  ;;  %v7740_v30 = vcombine.low %v2039_v10, %v2042_v18  ;;  %v3299_v57 = vshll.u32 %v7827_v45, 16  ;;  %v3313_v3 = vshll.u32 %v7829_v55, 16  ;;  %v8453_v18 = vld [vmem:[#allocation3 + $0x2f0] ss:$8 sps:$4 sm:$0xff]  }
  0xd8   : > { %v2032_v46 = vsel %vm8816_vm4, %v7723_v28, %v2031_v19  ;;  %v7725_v19 = vrot.slane %v1884_v7, 9  ;;  %v1277_v23 = vrot.slane %v1276_v6, 4  ;;  %v7824_v28 = vld [vmem:[%s8772_s9 + $0x14] sm:$0x1]  ;;  %v3317_v4 = vshrl.u32 %v7829_v55, 16  ;;  %v8459_v45 = vld [vmem:[%s8772_s9 + $0x18] sm:$0xff]  }
  0xd9   : > { %v7739_v63 = vcombine.low %v2032_v46, %v2035_v50  ;;  %v3275_v40 = vshll.u32 %v7824_v28, 16  ;;  %v3301_v6 = vrot.slane %v3299_v57, 5  ;;  %v8469_v57 = vld [vmem:[#allocation3 + $0x2d0] ss:$8 sps:$4 sm:$0xff]  }
  0xda   : > { %v2046_v42 = vsel %vm8816_vm4, %v7725_v19, %v2045_v14  ;;  %v8452_v14 = vld [vmem:[%s8772_s9 + $0xc] sm:$0xff]   ;;  %v3319_v16 = vrot.slane %v3317_v4, 4 }
  0xdb   : > { %v3277_v61 = vrot.slane %v3275_v40, 5  ;;  %v8456_v19 = vld [vmem:[#allocation3 + $0x370] ss:$8 sps:$4 sm:$0xff]  }
  0xde   : > { %1661 = vmatmul.mubr.bf16.gmra.mxu1 %v7689_v58  ;;  %2418 = vmatmul.mubr.bf16.gmra.mxu0 %v7737_v59  ;;  %v1253_v58 = vrot.slane %v1252_v41, 4  ;;  %v9112_v59 = vrot.slane %v1279_v44, 5  ;;  %v2049_v44 = vsel %vm8816_vm4, %v2047_v27, %v2048_v24  ;;  %v8466_v27 = vld [vmem:[#allocation3 + $0x364] ss:$8 sps:$4 sm:$0xff]  }
  0xdf   : > { %1670 = vmatprep.mubr.bf16.mxu1 %v10941_v0  ;;  %2427 = vmatprep.mubr.bf16.mxu0 %v10941_v0  ;;  %v7741_v54 = vcombine.low %v2046_v42, %v2049_v44 }
  0xe0   : > { %v1258_v9 = vsel %vm8828_vm5, %v1253_v58, %v9093_v29  ;;  %v1286_v11 = vor.u32 %v1285_v60, %v9112_v59  ;;  %v7826_v29 = vld [vmem:[%s8772_s9 + $0x1c] sm:$0xf]  ;;  %v1282_v41 = vsel %vm8828_vm5, %v1277_v23, %v9112_v59  ;;  %v7830_v58 = vld [vmem:[%s8772_s9 + $0x2c] sm:$0x1]  ;;  %v3304_v59 = vshrl.u32 %v7828_v51, 16 }
  0xe1   : > { %v7692_v25 = vcombine.low %v1258_v9, %v1268_v15  ;;  %v3289_v38 = vshll.u32 %v7826_v29, 16  ;;  %v3293_v39 = vshrl.u32 %v7826_v29, 16  ;;  %v3307_v60 = vshll.u32 %v7828_v51, 16  ;;  %v7831_v9 = vld [vmem:[%s8772_s9 + $0x30] sm:$0xf] }
  0xe2   : > { %v1287_v26 = vrot.slane %v1286_v11, 4  ;;  %v3323_v5 = vshll.u32 %v7830_v58, 16  ;;  %v3306_v7 = vrot.slane %v3304_v59, 4  ;;  %v3328_v24 = vshrl.u32 %v7831_v9, 16  ;;  %v7834_v51 = vld [vmem:[%s8772_s9 + $0x3c] sm:$0xf] }
  0xe3   : > { %v9147_v52 = vrot.slane %v3289_v38, 5  ;;  %v3295_v53 = vrot.slane %v3293_v39, 4  ;;  %v3337_v29 = vshll.u32 %v7832_v17, 16  ;;  %v8472_v59 = vld [vmem:[#allocation3 + $0x350] ss:$8 sps:$4 sm:$0xff]  }
  0xe4   : > { %v1292_v47 = vsel %vm8828_vm5, %v1287_v26, %v1291_v12  ;;  %v9160_v12 = vrot.slane %v3313_v3, 5  ;;  %v9163_v20 = vrot.slane %v3323_v5, 5  ;;  %v8463_v26 = vld [vmem:[#allocation3 + $0x2e4] ss:$8 sps:$4 sm:$0xff]   ;;  %v3330_v40 = vrot.slane %v3328_v24, 4 }
  0xe5   : > { %v7693_v56 = vcombine.low %v1282_v41, %v1292_v47  ;;  %v3296_v2 = vor.u32 %v3295_v53, %v9147_v52  ;;  %v8471_v47 = vld [vmem:[#allocation3 + $0x2d4] ss:$8 sps:$4 sm:$0xff]  }
  0xe6   : > { %1671 = vmatmul.mubr.bf16.gmra.mxu1 %v7690_v21  ;;  %2428 = vmatmul.mubr.bf16.gmra.mxu0 %v7738_v22  ;;  %v3269_v21 = vshrl.u32 %v7823_v8, 16  ;;  %v7825_v22 = vld [vmem:[%s8772_s9 + $0x18] sm:$0xf]  ;;  %v3309_v8 = vrot.slane %v3307_v60, 5  ;;  %v3320_v28 = vor.u32 %v3319_v16, %v9160_v12  ;;  %v8479_v60 = vld [vmem:[#allocation3 + $0x2c4] ss:$8 sps:$4 sm:$0xff]  }
  0xe7   : > { %1680 = vmatprep.mubr.bf16.mxu1 %v10941_v0  ;;  %2437 = vmatprep.mubr.bf16.mxu0 %v10941_v0  ;;  %v3280_v34 = vshrl.u32 %v7825_v22, 16  ;;  %v3283_v37 = vshll.u32 %v7825_v22, 16  ;;  %v3297_v15 = vrot.slane %v3296_v2, 4  ;;  %v3355_v2 = vshll.u32 %v7834_v51, 16 }
  0xe8   : > { %v3271_v36 = vrot.slane %v3269_v21, 4  ;;  %v7833_v21 = vld [vmem:[%s8772_s9 + $0x38] sm:$0x1]  ;;  %v3310_v23 = vor.u32 %v3309_v8, %v3306_v7  ;;  %v8477_v7 = vld [vmem:[#allocation3 + $0x2c0] ss:$8 sps:$4 sm:$0xff]  }
  0xe9   : > { %v3282_v46 = vrot.slane %v3280_v34, 4  ;;  %v3285_v50 = vrot.slane %v3283_v37, 5  ;;  %v3347_v37 = vshll.u32 %v7833_v21, 16  ;;  %v3302_v39 = vsel %vm8828_vm5, %v3297_v15, %v3301_v6  ;;  %v8490_v21 = vld [vmem:[#allocation3 + $0x334] ss:$8 sps:$4 sm:$0xff]  }
  0xea   : > { %v3272_v49 = vor.u32 %v3271_v36, %v3267_v35  ;;  %v9171_v36 = vrot.slane %v3310_v23, 4 }
  0xeb   : > { %v3286_v1 = vor.u32 %v3285_v50, %v3282_v46  ;;  %v3321_v46 = vrot.slane %v3320_v28, 4 }
  0xec   : > { %v3316_v6 = vsel %vm8828_vm5, %v9171_v36, %v9160_v12  ;;  %v8460_v12 = vld [vmem:[%s8772_s9 + $0x24] sm:$0xff]   ;;  %v8488_v36 = vld [vmem:[#allocation3 + $0x330] ss:$8 sps:$4 sm:$0xff]  }
  0xed   : > { %v3287_v13 = vrot.slane %v3286_v1, 4  ;;  %v8482_v1 = vld [vmem:[#allocation3 + $0x344] ss:$8 sps:$4 sm:$0xff]   ;;  %v3326_v8 = vsel %vm8828_vm5, %v3321_v46, %v9163_v20  ;;  %v7837_v20 = vld [vmem:[%s8772_s9 + $0x48] sm:$0xf] }
  0xee   : > { %1681 = vmatmul.mubr.bf16.gmra.mxu1 %v7691_v62  ;;  %2438 = vmatmul.mubr.bf16.gmra.mxu0 %v7739_v63  ;;  %v3263_v62 = vrot.slane %v3262_v48, 4  ;;  %v3273_v63 = vrot.slane %v3272_v49, 4  ;;  %v8474_v48 = vld [vmem:[#allocation3 + $0x354] ss:$8 sps:$4 sm:$0xff]   ;;  %v9185_v49 = vrot.slane %v3337_v29, 5  ;;  %v7872_v24 = vcombine.low %v3316_v6, %v3326_v8 }
  0xef   : > { %1690 = vmatprep.mubr.bf16.mxu1 %v10941_v0  ;;  %2447 = vmatprep.mubr.bf16.mxu0 %v10941_v0  ;;  %v3292_v38 = vsel %vm8828_vm5, %v3287_v13, %v9147_v52  ;;  %v7835_v52 = vld [vmem:[%s8772_s9 + $0x40] sm:$0xf]  ;;  %v3376_v46 = vshrl.u32 %v7837_v20, 16  ;;  %v7839_v6 = vld [vmem:[%s8772_s9 + $0x50] sm:$0x1] }
  0xf0   : > { %v3268_v10 = vsel %vm8828_vm5, %v3263_v62, %v3267_v35  ;;  %v3278_v11 = vsel %vm8828_vm5, %v3273_v63, %v3277_v61  ;;  %v7871_v55 = vcombine.low %v3292_v38, %v3302_v39  ;;  %v3352_v61 = vshrl.u32 %v7834_v51, 16  ;;  %v8498_v38 = vld [vmem:[#allocation3 + $0x324] ss:$8 sps:$4 sm:$0xff]  }
  0xf1   : > { %v7870_v22 = vcombine.low %v3268_v10, %v3278_v11  ;;  %v3361_v3 = vshll.u32 %v7835_v52, 16  ;;  %v9216_v11 = vld [vmem:[%s8772_s9 + $0x44] sm:$0x1]  ;;  %v3365_v13 = vshrl.u32 %v7835_v52, 16 }
  0xf2   : > { %v3354_v16 = vrot.slane %v3352_v61, 4 }
  0xf3   : > { %v9229_v28 = vrot.slane %v3361_v3, 5  ;;  %v3367_v29 = vrot.slane %v3365_v13, 4 }
  0xf6   : > { %1691 = vmatmul.mubr.bf16.gmra.mxu1 %v7692_v25  ;;  %2448 = vmatmul.mubr.bf16.gmra.mxu0 %v7740_v30  ;;  %v3331_v25 = vshll.u32 %v7831_v9, 16  ;;  %v3341_v30 = vshrl.u32 %v7832_v17, 16  ;;  %v8480_v17 = vld [vmem:[#allocation3 + $0x340] ss:$8 sps:$4 sm:$0xff]  }
  0xf7   : > { %1700 = vmatprep.mubr.bf16.mxu1 %v10941_v0  ;;  %2457 = vmatprep.mubr.bf16.mxu0 %v10941_v0 }
  0xf8   : > { %v3333_v41 = vrot.slane %v3331_v25, 5  ;;  %v3343_v50 = vrot.slane %v3341_v30, 4  ;;  %v7838_v25 = vld [vmem:[%s8772_s9 + $0x4c] sm:$0xf] }
  0xf9   : > { %v3385_v51 = vshll.u32 %v7838_v25, 16  ;;  %v3389_v52 = vshrl.u32 %v7838_v25, 16  ;;  %v8514_v25 = vld [vmem:[#allocation3 + $0x304] ss:$8 sps:$4 sm:$0xff]  }
  0xfa   : > { %v3334_v58 = vor.u32 %v3333_v41, %v3330_v40  ;;  %v3344_v10 = vor.u32 %v3343_v50, %v9185_v49  ;;  %v3368_v50 = vor.u32 %v3367_v29, %v9229_v28 }
  0xfb   : > { %v3391_v13 = vrot.slane %v3389_v52, 4  ;;  %v8522_v52 = vld [vmem:[#allocation3 + $0x474] ss:$8 sps:$4 sm:$0xff]  }
  0xfc   : > { %v9212_v9 = vrot.slane %v3334_v58, 4  ;;  %v8496_v58 = vld [vmem:[#allocation3 + $0x320] ss:$8 sps:$4 sm:$0xff]  }
  0xfe   : > { %1701 = vmatmul.mubr.bf16.gmra.mxu1 %v7693_v56  ;;  %2458 = vmatmul.mubr.bf16.gmra.mxu0 %v7741_v54  ;;  %v9193_v56 = vrot.slane %v3347_v37, 5  ;;  %v8495_v37 = vld [vmem:[#allocation3 + $0x2a4] ss:$8 sps:$4 sm:$0xff]   ;;  %v3340_v41 = vsel %vm8828_vm5, %v9212_v9, %v9185_v49  ;;  %v3369_v9 = vrot.slane %v3368_v50, 4  ;;  %v8512_v50 = vld [vmem:[#allocation3 + $0x300] ss:$8 sps:$4 sm:$0xff]  }
  0xff   : > { %2918 = vmatprep.mubr.bf16.mxu1 %v10941_v0  ;;  %3896 = vmatprep.mubr.bf16.mxu0 %v10941_v0 }
 0x106   : > { %v9167_v34 = vpop.f32.mrf.mxu0  ;;  %v9169_v35 = vpop.f32.mrf.mxu1  ;;  %2919 = vmatmul.mubr.bf16.vlgmr.msra.gmra.mxu1 %v8452_v14  ;;  %3897 = vmatmul.mubr.bf16.vlgmr.msra.gmra.mxu0 %v7870_v22 }
 0x107   : > { %10950 = vst [vmem:[#allocation9_spill] sm:$0xff] %v9169_v35  ;;  %4619 = vmatpush1.bf16.msra.mxu1 %v8453_v18  ;;  %5230 = vmatpush1.bf16.msra.mxu0 %v8456_v19  ;;  %v8487_v18 = vld [vmem:[#allocation3 + $0x2b4] ss:$8 sps:$4 sm:$0xff]   ;;  %v3357_v19 = vrot.slane %v3355_v2, 5 }
 0x108   : > { %v9178_v42 = vpop.f32.mrf.mxu0  ;;  %v9180_v44 = vpop.f32.mrf.mxu1  ;;  %2928 = vmatprep.mubr.bf16.mxu1 %v10941_v0  ;;  %3906 = vmatprep.mubr.bf16.mxu0 %v10941_v0 }
 0x109   : > { %10951 = vst [vmem:[#allocation10_spill] sm:$0xff] %v9180_v44  ;;  %4620 = vmatprep.subr.bf16.mxu1 %v8463_v26  ;;  %5231 = vmatprep.subr.bf16.mxu0 %v8466_v27  ;;  %v8485_v26 = vld [vmem:[#allocation3 + $0x2b0] ss:$8 sps:$4 sm:$0xff]   ;;  %v3345_v27 = vrot.slane %v3344_v10, 4 }
 0x10a   : > { %v9189_v53 = vpop.f32.mrf.mxu0  ;;  %v9191_v54 = vpop.f32.mrf.mxu1 }
 0x10b   : > { %10952 = vst [vmem:[#allocation11_spill] sm:$0xff] %v9191_v54  ;;  %4621 = vmatpush1.bf16.msra.mxu1 %v8461_v31  ;;  %5232 = vmatpush1.bf16.msra.mxu0 %v8464_v33  ;;  %v3371_v33 = vshll.u32 %v9216_v11, 16  ;;  %v9260_v11 = vrot.slane %v3385_v51, 5  ;;  %v8519_v51 = vld [vmem:[#allocation3 + $0x3f4] ss:$8 sps:$4 sm:$0xff]  }
 0x10c   : > { %v9195_v62 = vpop.f32.mrf.mxu0  ;;  %v9197_v63 = vpop.f32.mrf.mxu1  ;;  %4622 = vmatprep.subr.bf16.mxu1 %v8471_v47  ;;  %5233 = vmatprep.subr.bf16.mxu0 %v8474_v48  ;;  %v3379_v47 = vshll.u32 %v7837_v20, 16  ;;  %v3350_v48 = vsel %vm8828_vm5, %v3345_v27, %v9193_v56  ;;  %v8504_v20 = vld [vmem:[#allocation3 + $0x310] ss:$8 sps:$4 sm:$0xff]  }
 0x10d   : > { %10953 = vst [vmem:[#allocation12_spill] sm:$0xff] %v9197_v63  ;;  %v7873_v2 = vcombine.low %v3340_v41, %v3350_v48  ;;  %v3373_v10 = vrot.slane %v3371_v33, 5  ;;  %v3392_v41 = vor.u32 %v3391_v13, %v9260_v11  ;;  %v7843_v13 = vld [vmem:[%s8772_s9 + $0x60] sm:$0xf] }
 0x10e   : > { %v9199_v4 = vpop.f32.mrf.mxu0  ;;  %v9201_v5 = vpop.f32.mrf.mxu1  ;;  %2929 = vmatmul.mubr.bf16.gmra.mxu1 %v8459_v45  ;;  %3907 = vmatmul.mubr.bf16.gmra.mxu0 %v7871_v55  ;;  %v3358_v45 = vor.u32 %v3357_v19, %v3354_v16  ;;  %v3381_v8 = vrot.slane %v3379_v47, 5  ;;  %v8501_v19 = vld [vmem:[#allocation3 + $0x290] ss:$8 sps:$4 sm:$0xff]  }
 0x10f   : > { %10954 = vst [vmem:[#allocation13_spill] sm:$0xff] %v9201_v5  ;;  %2938 = vmatprep.mubr.bf16.mxu1 %v10941_v0  ;;  %3916 = vmatprep.mubr.bf16.mxu0 %v10941_v0 }
 0x110   : > { %v9218_v14 = vpop.f32.mrf.mxu0  ;;  %v9220_v15 = vpop.f32.mrf.mxu1  ;;  %4623 = vmatpush1.bf16.msra.mxu1 %v8469_v57  ;;  %5234 = vmatpush1.bf16.msra.mxu0 %v8472_v59  ;;  %v8493_v57 = vld [vmem:[#allocation3 + $0x2a0] ss:$8 sps:$4 sm:$0xff]   ;;  %v8503_v59 = vld [vmem:[#allocation3 + $0x294] ss:$8 sps:$4 sm:$0xff]   ;;  %v3359_v3 = vrot.slane %v3358_v45, 4 }
 0x111   : > { %10955 = vst [vmem:[#allocation14_spill] sm:$0xff] %v9220_v15  ;;  %4624 = vmatprep.subr.bf16.mxu1 %v8479_v60  ;;  %5235 = vmatprep.subr.bf16.mxu0 %v8482_v1  ;;  %v8506_v60 = vld [vmem:[#allocation3 + $0x314] ss:$8 sps:$4 sm:$0xff]  }
 0x112   : > { %v9224_v22 = vpop.f32.mrf.mxu0  ;;  %v9226_v23 = vpop.f32.mrf.mxu1  ;;  %v8467_v1 = vld [vmem:[%s8772_s9 + $0x30] sm:$0xff]   ;;  %v3364_v29 = vsel %vm8828_vm5, %v3359_v3, %v9229_v28  ;;  %v8509_v28 = vld [vmem:[#allocation3 + $0x280] ss:$8 sps:$4 sm:$0xff]  }
 0x113   : > { %10956 = vst [vmem:[#allocation15_spill] sm:$0xff] %v9226_v23 }
 0x114   : > { %v9231_v30 = vpop.f32.mrf.mxu0  ;;  %v9233_v31 = vpop.f32.mrf.mxu1  ;;  %4625 = vmatpush1.bf16.msra.mxu1 %v8477_v7  ;;  %5236 = vmatpush1.bf16.msra.mxu0 %v8480_v17  ;;  %v3378_v7 = vrot.slane %v3376_v46, 4 }
 0x115   : > { %10957 = vst [vmem:[#allocation16_spill] sm:$0xff] %v9233_v31  ;;  %4626 = vmatprep.subr.bf16.mxu1 %v8487_v18  ;;  %5237 = vmatprep.subr.bf16.mxu0 %v8490_v21  ;;  %v7841_v18 = vld [vmem:[%s8772_s9 + $0x58] sm:$0xf]  ;;  %v3395_v21 = vshll.u32 %v7839_v6, 16 }
 0x116   : > { %v9236_v39 = vpop.f32.mrf.mxu0  ;;  %v9238_v40 = vpop.f32.mrf.mxu1  ;;  %2939 = vmatmul.mubr.bf16.gmra.mxu1 %v8460_v12  ;;  %3917 = vmatmul.mubr.bf16.gmra.mxu0 %v7872_v24  ;;  %v7840_v12 = vld [vmem:[%s8772_s9 + $0x54] sm:$0xf]  ;;  %v8511_v24 = vld [vmem:[#allocation3 + $0x284] ss:$8 sps:$4 sm:$0xff]   ;;  %v3382_v33 = vor.u32 %v3381_v8, %v3378_v7  ;;  %v3409_v45 = vshll.u32 %v7841_v18, 16  ;;  %v3413_v46 = vshrl.u32 %v7841_v18, 16 }
 0x117   : > { %10958 = vst [vmem:[#allocation17_spill] sm:$0xff] %v9238_v40  ;;  %2948 = vmatprep.mubr.bf16.mxu1 %v10941_v0  ;;  %3926 = vmatprep.mubr.bf16.mxu0 %v10941_v0  ;;  %v3393_v7 = vrot.slane %v3392_v41, 4  ;;  %v3397_v8 = vrot.slane %v3395_v21, 5 }
 0x118   : > { %v9250_v55 = vpop.f32.mrf.mxu0  ;;  %v9252_v49 = vpop.f32.mrf.mxu1  ;;  %4627 = vmatpush1.bf16.msra.mxu1 %v8485_v26  ;;  %5238 = vmatpush1.bf16.msra.mxu0 %v8488_v36  ;;  %v3400_v36 = vshrl.u32 %v7840_v12, 16 }
 0x119   : > { %10959 = vst [vmem:[#allocation18_spill] sm:$0xff] %v9252_v49  ;;  %4628 = vmatprep.subr.bf16.mxu1 %v8495_v37  ;;  %5239 = vmatprep.subr.bf16.mxu0 %v8498_v38  ;;  %v3403_v37 = vshll.u32 %v7840_v12, 16  ;;  %v3374_v38 = vsel %vm8828_vm5, %v3369_v9, %v3373_v10  ;;  %v9290_v9 = vrot.slane %v3409_v45, 5  ;;  %v3415_v10 = vrot.slane %v3413_v46, 4  ;;  %v7851_v49 = vld [vmem:[%s8772_s9 + $0x80] sm:$0x1] }
 0x11a   : > { %v9254_v56 = vpop.f32.mrf.mxu0  ;;  %v9256_v61 = vpop.f32.mrf.mxu1  ;;  %v3402_v3 = vrot.slane %v3400_v36, 4  ;;  %v3427_v36 = vshll.u32 %v7843_v13, 16 }
 0x11b   : > { %10960 = vst [vmem:[#allocation19_spill] sm:$0xff] %v9256_v61  ;;  %v3405_v6 = vrot.slane %v3403_v37, 5  ;;  %v3398_v37 = vsel %vm8828_vm5, %v3393_v7, %v3397_v8 }
 0x11c   : > { %v9263_v16 = vpop.f32.mrf.mxu0  ;;  %v9265_v17 = vpop.f32.mrf.mxu1  ;;  %4629 = vmatpush1.bf16.msra.mxu1 %v8493_v57  ;;  %5240 = vmatpush1.bf16.msra.mxu0 %v8496_v58 }
 0x11d   : > { %10961 = vst [vmem:[#allocation20_spill] sm:$0xff] %v9265_v17  ;;  %4630 = vmatprep.subr.bf16.mxu1 %v8503_v59  ;;  %5241 = vmatprep.subr.bf16.mxu0 %v8506_v60  ;;  %v8468_v59 = vld [vmem:[%s8772_s9 + $0x3c] sm:$0xff]   ;;  %v7874_v60 = vcombine.low %v3364_v29, %v3374_v38  ;;  %v3406_v29 = vor.u32 %v3405_v6, %v3402_v3 }
 0x11e   : > { %v9268_v26 = vpop.f32.mrf.mxu0  ;;  %v9270_v27 = vpop.f32.mrf.mxu1  ;;  %2949 = vmatmul.mubr.bf16.gmra.mxu1 %v8467_v1  ;;  %3927 = vmatmul.mubr.bf16.gmra.mxu0 %v7873_v2  ;;  %v3383_v1 = vrot.slane %v3382_v33, 4  ;;  %v7842_v2 = vld [vmem:[%s8772_s9 + $0x5c] sm:$0x1]  ;;  %v3424_v33 = vshrl.u32 %v7843_v13, 16  ;;  %v3416_v38 = vor.u32 %v3415_v10, %v9290_v9  ;;  %v7846_v10 = vld [vmem:[%s8772_s9 + $0x6c] sm:$0xf] }
 0x11f   : > { %10962 = vst [vmem:[#allocation21_spill] sm:$0xff] %v9270_v27  ;;  %2958 = vmatprep.mubr.bf16.mxu1 %v10941_v0  ;;  %3936 = vmatprep.mubr.bf16.mxu0 %v10941_v0 }
 0x120   : > { %v9280_v47 = vpop.f32.mrf.mxu0  ;;  %v9282_v48 = vpop.f32.mrf.mxu1  ;;  %4631 = vmatpush1.bf16.msra.mxu1 %v8501_v19  ;;  %5242 = vmatpush1.bf16.msra.mxu0 %v8504_v20  ;;  %v7844_v19 = vld [vmem:[%s8772_s9 + $0x64] sm:$0xf]  ;;  %v3419_v20 = vshll.u32 %v7842_v2, 16  ;;  %v3388_v21 = vsel %vm8828_vm5, %v3383_v1, %v9260_v11  ;;  %v3426_v1 = vrot.slane %v3424_v33, 4  ;;  %v3429_v2 = vrot.slane %v3427_v36, 5 }
 0x121   : > { %10963 = vst [vmem:[#allocation22_spill] sm:$0xff] %v9282_v48  ;;  %4632 = vmatprep.subr.bf16.mxu1 %v8511_v24  ;;  %5243 = vmatprep.subr.bf16.mxu0 %v8514_v25  ;;  %v3433_v41 = vshll.u32 %v7844_v19, 16  ;;  %v3437_v45 = vshrl.u32 %v7844_v19, 16  ;;  %v3417_v3 = vrot.slane %v3416_v38, 4  ;;  %v3451_v33 = vshll.u32 %v7846_v10, 16 }
 0x122   : > { %v9284_v57 = vpop.f32.mrf.mxu0  ;;  %v9286_v58 = vpop.f32.mrf.mxu1  ;;  %v3421_v6 = vrot.slane %v3419_v20, 5  ;;  %v10971_v36 = vmov 0  }
 0x123   : > { %10964 = vst [vmem:[#allocation23_spill] sm:$0xff] %v9286_v58  ;;  %v3435_v7 = vrot.slane %v3433_v41, 5  ;;  %v3439_v8 = vrot.slane %v3437_v45, 4 }
 0x124   : > { %v9293_v12 = vpop.f32.mrf.mxu0  ;;  %v9295_v18 = vpop.f32.mrf.mxu1  ;;  %4633 = vmatpush1.bf16.msra.mxu1 %v8509_v28  ;;  %5244 = vmatpush1.bf16.msra.mxu0 %v8512_v50 }
 0x125   : > { %10965 = vst [vmem:[#allocation24_spill] sm:$0xff] %v9295_v18  ;;  %6207 = vmatprep.subr.bf16.mxu1 %v8519_v51  ;;  %6961 = vmatprep.subr.bf16.mxu0 %v8522_v52  ;;  %v8475_v51 = vld [vmem:[%s8772_s9 + $0x48] sm:$0xff]   ;;  %v7875_v52 = vcombine.low %v3388_v21, %v3398_v37  ;;  %v3430_v21 = vor.u32 %v3429_v2, %v3426_v1 }
 0x126   : > { %v9298_v24 = vpop.f32.mrf.mxu0  ;;  %v9300_v25 = vpop.f32.mrf.mxu1  ;;  %2959 = vmatmul.mubr.bf16.gmra.mxu1 %v8468_v59  ;;  %3937 = vmatmul.mubr.bf16.gmra.mxu0 %v7874_v60  ;;  %v3407_v59 = vrot.slane %v3406_v29, 4  ;;  %v7845_v60 = vld [vmem:[%s8772_s9 + $0x68] sm:$0x1]  ;;  %v3448_v29 = vshrl.u32 %v7846_v10, 16  ;;  %v3422_v37 = vsel %vm8828_vm5, %v3417_v3, %v3421_v6  ;;  %v3440_v38 = vor.u32 %v3439_v8, %v3435_v7  ;;  %v7848_v10 = vld [vmem:[%s8772_s9 + $0x74] sm:$0x1] }
 0x127   : > { %10966 = vst [vmem:[#allocation25_spill] sm:$0xff] %v9300_v25  ;;  %2968 = vmatprep.mubr.bf16.mxu1 %v10941_v0  ;;  %3946 = vmatprep.mubr.bf16.mxu0 %v10941_v0  ;;  %v7847_v0 = vld [vmem:[%s8772_s9 + $0x70] sm:$0xf]  ;;  %v3431_v2 = vrot.slane %v3430_v21, 4  ;;  %v3467_v27 = vshll.u32 %v7848_v10, 16 }
 0x128   : > { %v9310_v46 = vpop.f32.mrf.mxu0  ;;  %v9312_v28 = vpop.f32.mrf.mxu1  ;;  %v3412_v20 = vsel %vm8828_vm5, %v3407_v59, %v9290_v9  ;;  %v3457_v41 = vshll.u32 %v7847_v0, 16  ;;  %v3461_v45 = vshrl.u32 %v7847_v0, 16  ;;  %v3441_v3 = vrot.slane %v3440_v38, 4  ;;  %v7849_v0 = vld [vmem:[%s8772_s9 + $0x78] sm:$0xf] }
 0x129   : > { %10967 = vst [vmem:[#allocation26_spill] sm:$0xff] %v9312_v28  ;;  %v3443_v28 = vshll.u32 %v7845_v60, 16  ;;  %v8476_v60 = vld [vmem:[%s8772_s9 + $0x54] sm:$0xff]   ;;  %v7876_v1 = vcombine.low %v3412_v20, %v3422_v37  ;;  %v3436_v20 = vsel %vm8828_vm5, %v3431_v2, %v3435_v7  ;;  %v3472_v21 = vshrl.u32 %v7849_v0, 16 }
 0x12a   : > { %v9314_v11 = vpop.f32.mrf.mxu0  ;;  %v9316_v50 = vpop.f32.mrf.mxu1  ;;  %v3459_v8 = vrot.slane %v3457_v41, 5  ;;  %v3463_v18 = vrot.slane %v3461_v45, 4  ;;  %v3469_v2 = vrot.slane %v3467_v27, 5 }
 0x12b   : > { %10968 = vst [vmem:[#allocation27_spill] sm:$0xff] %v9316_v50  ;;  %v3445_v6 = vrot.slane %v3443_v28, 5  ;;  %v3474_v10 = vrot.slane %v3472_v21, 4 }
 0x12c   : > { %v9321_v13 = vpop.f32.mrf.mxu0  ;;  %v9323_v19 = vpop.f32.mrf.mxu1  ;;  %v3464_v37 = vor.u32 %v3463_v18, %v3459_v8 }
 0x12d   : > { %10969 = vst [vmem:[#allocation28_spill] sm:$0xff] %v9323_v19  ;;  %v3453_v19 = vrot.slane %v3451_v33, 5  ;;  %v3446_v33 = vsel %vm8828_vm5, %v3441_v3, %v3445_v6 }
 0x12e   : > { %v9326_v25 = vpop.f32.mrf.mxu0  ;;  %v9328_v50 = vpop.f32.mrf.mxu1  ;;  %2969 = vmatmul.mubr.bf16.gmra.mxu1 %v8475_v51  ;;  %3947 = vmatmul.mubr.bf16.gmra.mxu0 %v7875_v52  ;;  %v3465_v18 = vrot.slane %v3464_v37, 4  ;;  %v3491_v37 = vshll.u32 %v7851_v49, 16 }
 0x12f   : > { %10970 = vst [vmem:[#allocation29_spill] sm:$0xff] %v9328_v50  ;;  %2978 = vmatprep.mubr.bf16.mxu1 %v10971_v36  ;;  %3956 = vmatprep.mubr.bf16.mxu0 %v10971_v36  ;;  %v3450_v50 = vrot.slane %v3448_v29, 4  ;;  %v3475_v29 = vshll.u32 %v7849_v0, 16 }
 0x130   : > { %v9337_v51 = vpop.f32.mrf.mxu0  ;;  %v9339_v52 = vpop.f32.mrf.mxu1  ;;  %v3493_v49 = vrot.slane %v3491_v37, 5 }
 0x131   : > { %10972 = vst [vmem:[#allocation30_spill] sm:$0xff] %v9339_v52  ;;  %v7850_v52 = vld [vmem:[%s8772_s9 + $0x7c] sm:$0xf]  ;;  %v3454_v28 = vor.u32 %v3453_v19, %v3450_v50  ;;  %v8483_v19 = vld [vmem:[%s8772_s9 + $0x60] sm:$0xff]   ;;  %v3477_v0 = vrot.slane %v3475_v29, 5 }
 0x132   : > { %v9341_v9 = vpop.f32.mrf.mxu0  ;;  %v9343_v59 = vpop.f32.mrf.mxu1  ;;  %v3481_v38 = vshll.u32 %v7850_v52, 16  ;;  %v3485_v41 = vshrl.u32 %v7850_v52, 16 }
 0x133   : > { %10973 = vst [vmem:[#allocation31_spill] sm:$0xff] %v9343_v59  ;;  %v3455_v3 = vrot.slane %v3454_v28, 4  ;;  %v3478_v27 = vor.u32 %v3477_v0, %v3474_v10  ;;  %v8484_v0 = vld [vmem:[%s8772_s9 + $0x6c] sm:$0xff]  }
 0x134   : > { %v9348_v58 = vpop.f32.mrf.mxu0  ;;  %v9350_v48 = vpop.f32.mrf.mxu1  ;;  %v9373_v6 = vrot.slane %v3481_v38, 5  ;;  %v3487_v52 = vrot.slane %v3485_v41, 4 }
 0x135   : > { %10974 = vst [vmem:[#allocation32_spill] sm:$0xff] %v9350_v48  ;;  %v7853_v48 = vld [vmem:[%s8772_s9 + $0x88] sm:$0xf]  ;;  %v3460_v29 = vsel %vm8828_vm5, %v3455_v3, %v3459_v8  ;;  %v3479_v3 = vrot.slane %v3478_v27, 4 }
 0x136   : > { %v9353_v17 = vpop.f32.mrf.mxu0  ;;  %v9355_v59 = vpop.f32.mrf.mxu1  ;;  %2979 = vmatmul.mubr.bf16.gmra.mxu1 %v8476_v60  ;;  %3957 = vmatmul.mubr.bf16.gmra.mxu0 %v7876_v1  ;;  %v7877_v1 = vcombine.low %v3436_v20, %v3446_v33  ;;  %v3505_v28 = vshll.u32 %v7853_v48, 16  ;;  %v3509_v21 = vshrl.u32 %v7853_v48, 16  ;;  %v3488_v33 = vor.u32 %v3487_v52, %v9373_v6 }
 0x137   : > { %10975 = vst [vmem:[#allocation33_spill] sm:$0xff] %v9355_v59  ;;  %2988 = vmatprep.mubr.bf16.mxu1 %v10971_v36  ;;  %3966 = vmatprep.mubr.bf16.mxu0 %v10971_v36  ;;  %v7852_v59 = vld [vmem:[%s8772_s9 + $0x84] sm:$0xf]  ;;  %v3484_v27 = vsel %vm8828_vm5, %v3479_v3, %v9373_v6 }
 0x138   : > { %v9363_v45 = vpop.f32.mrf.mxu0  ;;  %v9365_v60 = vpop.f32.mrf.mxu1  ;;  %v3496_v40 = vshrl.u32 %v7852_v59, 16  ;;  %v3499_v31 = vshll.u32 %v7852_v59, 16  ;;  %v3470_v59 = vsel %vm8828_vm5, %v3465_v18, %v3469_v2  ;;  %v9402_v2 = vrot.slane %v3505_v28, 5 }
 0x139   : > { %10976 = vst [vmem:[#allocation34_spill] sm:$0xff] %v9365_v60  ;;  %v7878_v8 = vcombine.low %v3460_v29, %v3470_v59  ;;  %v3511_v18 = vrot.slane %v3509_v21, 4  ;;  %v3489_v52 = vrot.slane %v3488_v33, 4 }
 0x13a   : > { %v9367_v50 = vpop.f32.mrf.mxu0  ;;  %v9369_v7 = vpop.f32.mrf.mxu1  ;;  %v3498_v48 = vrot.slane %v3496_v40, 4  ;;  %v7856_v40 = vld [vmem:[%s8772_s9 + $0x94] sm:$0xf] }
 0x13b   : > { %10977 = vst [vmem:[#allocation35_spill] sm:$0xff] %v9369_v7  ;;  %v3512_v28 = vor.u32 %v3511_v18, %v9402_v2  ;;  %v3529_v33 = vshll.u32 %v7856_v40, 16  ;;  %v3533_v37 = vshrl.u32 %v7856_v40, 16 }
 0x13c   : > { %v9376_v61 = vpop.f32.mrf.mxu0  ;;  %v9378_v60 = vpop.f32.mrf.mxu1 }
 0x13d   : > { %10978 = vst [vmem:[#allocation36_spill] sm:$0xff] %v9378_v60  ;;  %v7855_v60 = vld [vmem:[%s8772_s9 + $0x90] sm:$0xf]  ;;  %v3513_v54 = vrot.slane %v3512_v28, 4 }
 0x13e   : > { %v9381_v7 = vpop.f32.mrf.mxu0  ;;  %v9383_v20 = vpop.f32.mrf.mxu1  ;;  %2989 = vmatmul.mubr.bf16.gmra.mxu1 %v8483_v19  ;;  %3967 = vmatmul.mubr.bf16.gmra.mxu0 %v7877_v1  ;;  %v3501_v19 = vrot.slane %v3499_v31, 5  ;;  %v3520_v21 = vshrl.u32 %v7855_v60, 16  ;;  %v3523_v29 = vshll.u32 %v7855_v60, 16 }
 0x13f   : > { %10979 = vst [vmem:[#allocation37_spill] sm:$0xff] %v9383_v20  ;;  %2998 = vmatprep.mubr.bf16.mxu1 %v10971_v36  ;;  %3976 = vmatprep.mubr.bf16.mxu0 %v10971_v36  ;;  %v7854_v20 = vld [vmem:[%s8772_s9 + $0x8c] sm:$0x1] }
 0x140   : > { %v9392_v38 = vpop.f32.mrf.mxu0  ;;  %v9394_v41 = vpop.f32.mrf.mxu1  ;;  %v3502_v31 = vor.u32 %v3501_v19, %v3498_v48  ;;  %v3515_v15 = vshll.u32 %v7854_v20, 16  ;;  %v3494_v20 = vsel %vm8828_vm5, %v3489_v52, %v3493_v49  ;;  %v3522_v44 = vrot.slane %v3520_v21, 4 }
 0x141   : > { %10980 = vst [vmem:[#allocation38_spill] sm:$0xff] %v9394_v41  ;;  %v3525_v52 = vrot.slane %v3523_v29, 5 }
 0x142   : > { %v9396_v1 = vpop.f32.mrf.mxu0  ;;  %v9398_v10 = vpop.f32.mrf.mxu1  ;;  %v3517_v60 = vrot.slane %v3515_v15, 5  ;;  %v7857_v15 = vld [vmem:[%s8772_s9 + $0x98] sm:$0x1] }
 0x143   : > { %10981 = vst [vmem:[#allocation39_spill] sm:$0xff] %v9396_v1  ;;  %10982 = vst [vmem:[#allocation40_spill] sm:$0xff] %v9398_v10  ;;  %v7879_v10 = vcombine.low %v3484_v27, %v3494_v20  ;;  %v3526_v20 = vor.u32 %v3525_v52, %v3522_v44 }
 0x144   : > { %v9405_v23 = vpop.f32.mrf.mxu0  ;;  %v9407_v41 = vpop.f32.mrf.mxu1  ;;  %v3518_v29 = vsel %vm8828_vm5, %v3513_v54, %v3517_v60  ;;  %v7860_v60 = vld [vmem:[%s8772_s9 + $0xa4] sm:$0x1] }
 0x145   : > { %10983 = vst [vmem:[#allocation41_spill] sm:$0xff] %v9405_v23  ;;  %10984 = vst [vmem:[#allocation42_spill] sm:$0xff] %v9407_v41  ;;  %v8491_v41 = vld [vmem:[%s8772_s9 + $0x78] sm:$0xff]   ;;  %v3527_v52 = vrot.slane %v3526_v20, 4 }
 0x146   : > { %v1552_v5 = vpop.f32.mrf.mxu1  ;;  %v2309_v63 = vpop.f32.mrf.mxu0  ;;  %2999 = vmatmul.mubr.bf16.gmra.mxu1 %v8484_v0  ;;  %3977 = vmatmul.mubr.bf16.gmra.mxu0 %v7878_v8  ;;  %v3503_v8 = vrot.slane %v3502_v31, 4 }
 0x147   : > { %v1711_v59 = vadd.f32 %v1552_v5, %v9167_v34  ;;  %3008 = vmatprep.mubr.bf16.mxu1 %v10971_v36  ;;  %3986 = vmatprep.mubr.bf16.mxu0 %v10971_v36  ;;  %v7858_v34 = vld [vmem:[%s8772_s9 + $0x9c] sm:$0xf]  ;;  %v7859_v5 = vld [vmem:[%s8772_s9 + $0xa0] sm:$0xf] }
 0x148   : > { %v1554_v48 = vpop.f32.mrf.mxu1  ;;  %v2311_v6 = vpop.f32.mrf.mxu0  ;;  %v3553_v35 = vshll.u32 %v7859_v5, 16  ;;  %v3557_v23 = vshrl.u32 %v7859_v5, 16 }
 0x149   : > { %v9419_v19 = vadd.f32 %v2309_v63, %v1711_v59  ;;  %v1712_v0 = vadd.f32 %v1554_v48, %v9178_v42  ;;  %v9428_v63 = vrot.slane %v3529_v33, 5  ;;  %v3535_v59 = vrot.slane %v3533_v37, 4 }
 0x14a   : > { %v1556_v3 = vpop.f32.mrf.mxu1  ;;  %v2313_v18 = vpop.f32.mrf.mxu0  ;;  %v3544_v48 = vshrl.u32 %v7858_v34, 16  ;;  %v9445_v54 = vrot.slane %v3553_v35, 5  ;;  %v3559_v44 = vrot.slane %v3557_v23, 4  ;;  %v7862_v35 = vld [vmem:[%s8772_s9 + $0xac] sm:$0xf] }
 0x14b   : > { %10985 = vst [vmem:[#allocation43_spill] sm:$0xff] %v9419_v19  ;;  %v9425_v49 = vadd.f32 %v2311_v6, %v1712_v0  ;;  %v1713_v40 = vadd.f32 %v1556_v3, %v9189_v53  ;;  %v3547_v19 = vshll.u32 %v7858_v34, 16  ;;  %v3508_v53 = vsel %vm8828_vm5, %v3503_v8, %v9402_v2  ;;  %v8492_v3 = vld [vmem:[%s8772_s9 + $0x84] sm:$0xff]  }
 0x14c   : > { %v1558_v42 = vpop.f32.mrf.mxu1  ;;  %v2315_v31 = vpop.f32.mrf.mxu0  ;;  %v3546_v6 = vrot.slane %v3544_v48, 4 }
 0x14d   : > { %v9431_v1 = vadd.f32 %v2313_v18, %v1713_v40  ;;  %v1714_v27 = vadd.f32 %v1558_v42, %v9195_v62  ;;  %v3536_v62 = vor.u32 %v3535_v59, %v9428_v63  ;;  %v3549_v0 = vrot.slane %v3547_v19, 5  ;;  %v7861_v40 = vld [vmem:[%s8772_s9 + $0xa8] sm:$0xf] }
 0x14e   : > { %v1562_v28 = vpop.f32.mrf.mxu1  ;;  %v2319_v21 = vpop.f32.mrf.mxu0  ;;  %3009 = vmatmul.mubr.bf16.gmra.mxu1 %v8491_v41  ;;  %3987 = vmatmul.mubr.bf16.gmra.mxu0 %v7879_v10  ;;  %v3539_v41 = vshll.u32 %v7857_v15, 16  ;;  %v7880_v18 = vcombine.low %v3508_v53, %v3518_v29  ;;  %v3568_v53 = vshrl.u32 %v7861_v40, 16  ;;  %v3571_v29 = vshll.u32 %v7861_v40, 16  ;;  %v8499_v40 = vld [vmem:[%s8772_s9 + $0x90] sm:$0xff]  }
 0x14f   : > { %v9439_v33 = vadd.f32 %v2315_v31, %v1714_v27  ;;  %v1715_v37 = vadd.f32 %v1562_v28, %v9199_v4  ;;  %3018 = vmatprep.mubr.bf16.mxu1 %v10971_v36  ;;  %3996 = vmatprep.mubr.bf16.mxu0 %v10971_v36  ;;  %v3537_v19 = vrot.slane %v3536_v62, 4  ;;  %v3550_v48 = vor.u32 %v3549_v0, %v3546_v6 }
 0x150   : > { %v1564_v10 = vpop.f32.mrf.mxu1  ;;  %v2321_v2 = vpop.f32.mrf.mxu0  ;;  %v3541_v31 = vrot.slane %v3539_v41, 5  ;;  %v3560_v27 = vor.u32 %v3559_v44, %v9445_v54  ;;  %v3577_v62 = vshll.u32 %v7862_v35, 16  ;;  %v3581_v41 = vshrl.u32 %v7862_v35, 16 }
 0x151   : > { %v9447_v8 = vadd.f32 %v2319_v21, %v1715_v37  ;;  %v1716_v4 = vadd.f32 %v1564_v10, %v9218_v14  ;;  %v3563_v14 = vshll.u32 %v7860_v60, 16  ;;  %v3551_v44 = vrot.slane %v3550_v48, 4  ;;  %v7865_v48 = vld [vmem:[%s8772_s9 + $0xb8] sm:$0xf] }
 0x152   : > { %v1566_v34 = vpop.f32.mrf.mxu1  ;;  %v2323_v5 = vpop.f32.mrf.mxu0  ;;  %v9476_v35 = vrot.slane %v3577_v62, 5 }
 0x153   : > { %v9453_v59 = vadd.f32 %v2321_v2, %v1716_v4  ;;  %v1717_v42 = vadd.f32 %v1566_v34, %v9224_v22  ;;  %v3532_v22 = vsel %vm8828_vm5, %v3527_v52, %v9428_v63  ;;  %v3561_v63 = vrot.slane %v3560_v27, 4 }
 0x154   : > { %v1568_v15 = vpop.f32.mrf.mxu1  ;;  %v2325_v23 = vpop.f32.mrf.mxu0  ;;  %v3565_v4 = vrot.slane %v3563_v14, 5 }
 0x155   : > { %v9458_v28 = vadd.f32 %v2323_v5, %v1717_v42  ;;  %v1718_v21 = vadd.f32 %v1568_v15, %v9231_v30  ;;  %v3542_v30 = vsel %vm8828_vm5, %v3537_v19, %v3541_v31  ;;  %v3573_v5 = vrot.slane %v3571_v29, 5 }
 0x156   : > { %v1572_v20 = vpop.f32.mrf.mxu1  ;;  %v2329_v37 = vpop.f32.mrf.mxu0  ;;  %3019 = vmatmul.mubr.bf16.gmra.mxu1 %v8492_v3  ;;  %3997 = vmatmul.mubr.bf16.gmra.mxu0 %v7880_v18  ;;  %v7864_v3 = vld [vmem:[%s8772_s9 + $0xb4] sm:$0xf]  ;;  %v7881_v42 = vcombine.low %v3532_v22, %v3542_v30  ;;  %v3583_v19 = vrot.slane %v3581_v41, 4  ;;  %v3601_v30 = vshll.u32 %v7865_v48, 16 }
 0x157   : > { %v9464_v10 = vadd.f32 %v2325_v23, %v1718_v21  ;;  %v1719_v2 = vadd.f32 %v1572_v20, %v9236_v39  ;;  %3028 = vmatprep.mubr.bf16.mxu1 %v10971_v36  ;;  %4006 = vmatprep.mubr.bf16.mxu0 %v10971_v36  ;;  %v3570_v39 = vrot.slane %v3568_v53, 4  ;;  %v7863_v23 = vld [vmem:[%s8772_s9 + $0xb0] sm:$0x1]  ;;  %v3566_v21 = vsel %vm8828_vm5, %v3561_v63, %v3565_v4 }
 0x158   : > { %v1574_v6 = vpop.f32.mrf.mxu1  ;;  %v2331_v0 = vpop.f32.mrf.mxu0  ;;  %v3592_v53 = vshrl.u32 %v7864_v3, 16  ;;  %v3595_v22 = vshll.u32 %v7864_v3, 16  ;;  %v3584_v41 = vor.u32 %v3583_v19, %v9476_v35  ;;  %v7866_v3 = vld [vmem:[%s8772_s9 + $0xbc] sm:$0x1] }
 0x159   : > { %v9471_v60 = vadd.f32 %v2329_v37, %v1719_v2  ;;  %v1720_v34 = vadd.f32 %v1574_v6, %v9250_v55  ;;  %v3556_v55 = vsel %vm8828_vm5, %v3551_v44, %v9445_v54  ;;  %v3574_v37 = vor.u32 %v3573_v5, %v3570_v39 }
 0x15a   : > { %v1576_v18 = vpop.f32.mrf.mxu1  ;;  %v2333_v52 = vpop.f32.mrf.mxu0  ;;  %v3587_v2 = vshll.u32 %v7863_v23, 16  ;;  %v3605_v54 = vshrl.u32 %v7865_v48, 16  ;;  %v7882_v63 = vcombine.low %v3556_v55, %v3566_v21  ;;  %v3594_v4 = vrot.slane %v3592_v53, 4  ;;  %v7868_v53 = vld [vmem:[%s8772_s9 + $0xc4] sm:$0xf] }
 0x15b   : > { %v9478_v31 = vadd.f32 %v2331_v0, %v1720_v34  ;;  %v1721_v15 = vadd.f32 %v1576_v18, %v9254_v56  ;;  %v3575_v5 = vrot.slane %v3574_v37, 4  ;;  %v3597_v18 = vrot.slane %v3595_v22, 5 }
 0x15c   : > { %v1578_v27 = vpop.f32.mrf.mxu1  ;;  %v2335_v14 = vpop.f32.mrf.mxu0  ;;  %v3589_v19 = vrot.slane %v3587_v2, 5  ;;  %v3607_v23 = vrot.slane %v3605_v54, 4 }
 0x15d   : > { %v9488_v29 = vadd.f32 %v2333_v52, %v1721_v15  ;;  %v1722_v20 = vadd.f32 %v1578_v27, %v9263_v16  ;;  %v9502_v15 = vrot.slane %v3601_v30, 5  ;;  %v3580_v22 = vsel %vm8828_vm5, %v3575_v5, %v9476_v35 }
 0x15e   : > { %v1582_v62 = vpop.f32.mrf.mxu1  ;;  %v2339_v56 = vpop.f32.mrf.mxu0  ;;  %3029 = vmatmul.mubr.bf16.gmra.mxu1 %v8499_v40  ;;  %4007 = vmatmul.mubr.bf16.gmra.mxu0 %v7881_v42  ;;  %v3585_v42 = vrot.slane %v3584_v41, 4  ;;  %v3625_v35 = vshll.u32 %v7868_v53, 16 }
 0x15f   : > { %v9492_v6 = vadd.f32 %v2335_v14, %v1722_v20  ;;  %v1723_v0 = vadd.f32 %v1582_v62, %v9268_v26  ;;  %3038 = vmatprep.mubr.bf16.mxu1 %v10971_v36  ;;  %4016 = vmatprep.mubr.bf16.mxu0 %v10971_v36  ;;  %v8500_v26 = vld [vmem:[%s8772_s9 + $0x9c] sm:$0xff]   ;;  %v3598_v62 = vor.u32 %v3597_v18, %v3594_v4 }
 0x160   : > { %v1584_v16 = vpop.f32.mrf.mxu1  ;;  %v2341_v44 = vpop.f32.mrf.mxu0  ;;  %v7867_v14 = vld [vmem:[%s8772_s9 + $0xc0] sm:$0xf]  ;;  %v3608_v2 = vor.u32 %v3607_v23, %v9502_v15 }
 0x161   : > { %v9497_v34 = vadd.f32 %v2339_v56, %v1723_v0  ;;  %v1724_v39 = vadd.f32 %v1584_v16, %v9280_v47  ;;  %v3611_v47 = vshll.u32 %v7866_v3, 16  ;;  %v3616_v30 = vshrl.u32 %v7867_v14, 16 }
 0x162   : > { %v1586_v52 = vpop.f32.mrf.mxu1  ;;  %v2343_v40 = vpop.f32.mrf.mxu0  ;;  %v3619_v54 = vshll.u32 %v7867_v14, 16  ;;  %v3629_v16 = vshrl.u32 %v7868_v53, 16  ;;  %v3627_v14 = vrot.slane %v3625_v35, 5 }
 0x163   : > { %v9504_v48 = vadd.f32 %v2341_v44, %v1724_v39  ;;  %v1725_v27 = vadd.f32 %v1586_v52, %v9284_v57  ;;  %v3590_v57 = vsel %vm8828_vm5, %v3585_v42, %v3589_v19  ;;  %v3613_v3 = vrot.slane %v3611_v47, 5 }
 0x164   : > { %v1588_v55 = vpop.f32.mrf.mxu1  ;;  %v2345_v21 = vpop.f32.mrf.mxu0  ;;  %v7883_v5 = vcombine.low %v3580_v22, %v3590_v57  ;;  %v3618_v42 = vrot.slane %v3616_v30, 4  ;;  %v3621_v19 = vrot.slane %v3619_v54, 5 }
 0x165   : > { %v9509_v20 = vadd.f32 %v2343_v40, %v1725_v27  ;;  %v1726_v37 = vadd.f32 %v1588_v55, %v9293_v12  ;;  %v8507_v40 = vld [vmem:[%s8772_s9 + $0xa8] sm:$0xff]   ;;  %v3631_v55 = vrot.slane %v3629_v16, 4 }
 0x166   : > { %v1592_v56 = vpop.f32.mrf.mxu1  ;;  %v2349_v41 = vpop.f32.mrf.mxu0  ;;  %3039 = vmatmul.mubr.bf16.gmra.mxu1 %v8500_v26  ;;  %4017 = vmatmul.mubr.bf16.gmra.mxu0 %v7882_v63  ;;  %v3599_v26 = vrot.slane %v3598_v62, 4 }
 0x167   : > { %v9518_v0 = vadd.f32 %v2345_v21, %v1726_v37  ;;  %v1727_v12 = vadd.f32 %v1592_v56, %v9298_v24  ;;  %3048 = vmatprep.mubr.bf16.mxu1 %v10971_v36  ;;  %4026 = vmatprep.mubr.bf16.mxu0 %v10971_v36  ;;  %v3609_v24 = vrot.slane %v3608_v2, 4  ;;  %v7869_v37 = vld [vmem:[%s8772_s9 + $0xc8] sm:$0x1] }
 0x168   : > { %v1594_v44 = vpop.f32.mrf.mxu1  ;;  %v2351_v63 = vpop.f32.mrf.mxu0  ;;  %v3604_v62 = vsel %vm8828_vm5, %v3599_v26, %v9502_v15  ;;  %v3635_v30 = vshll.u32 %v7869_v37, 16 }
 0x169   : > { %v9523_v4 = vadd.f32 %v2349_v41, %v1727_v12  ;;  %v1728_v39 = vadd.f32 %v1594_v44, %v9310_v46  ;;  %v3622_v41 = vor.u32 %v3621_v19, %v3618_v42 }
 0x16a   : > { %v1596_v18 = vpop.f32.mrf.mxu1  ;;  %v2353_v52 = vpop.f32.mrf.mxu0 }
 0x16b   : > { %v9527_v23 = vadd.f32 %v2351_v63, %v1728_v39  ;;  %v1729_v27 = vadd.f32 %v1596_v18, %v9314_v11  ;;  %v3614_v11 = vsel %vm8828_vm5, %v3609_v24, %v3613_v3  ;;  %v8508_v63 = vld [vmem:[%s8772_s9 + $0xb4] sm:$0xff]   ;;  %v7903_v24 = vld [vmem:[%s8772_s9 + $0x10] sm:$0xf] }
 0x16c   : > { %v1598_v21 = vpop.f32.mrf.mxu1  ;;  %v2355_v53 = vpop.f32.mrf.mxu0  ;;  %v7884_v39 = vcombine.low %v3604_v62, %v3614_v11  ;;  %v4283_v37 = vrot.slane %v7903_v24, 5 }
 0x16d   : > { %v9531_v46 = vadd.f32 %v2353_v52, %v1729_v27  ;;  %v1730_v47 = vadd.f32 %v1598_v21, %v9321_v13  ;;  %v3632_v13 = vor.u32 %v3631_v55, %v3627_v14  ;;  %v3637_v52 = vrot.slane %v3635_v30, 5 }
 0x16e   : > { %v1602_v22 = vpop.f32.mrf.mxu1  ;;  %v2359_v56 = vpop.f32.mrf.mxu0  ;;  %3049 = vmatmul.mubr.bf16.gmra.mxu1 %v8507_v40  ;;  %4027 = vmatmul.mubr.bf16.gmra.mxu0 %v7883_v5  ;;  %v3623_v5 = vrot.slane %v3622_v41, 4 }
 0x16f   : > { %v9539_v57 = vadd.f32 %v2355_v53, %v1730_v47  ;;  %v1731_v2 = vadd.f32 %v1602_v22, %v9326_v25  ;;  %3058 = vmatprep.mubr.bf16.mxu1 %v10971_v36  ;;  %4036 = vmatprep.mubr.bf16.mxu0 %v10971_v36  ;;  %v3633_v18 = vrot.slane %v3632_v13, 4 }
 0x170   : > { %v1604_v54 = vpop.f32.mrf.mxu1  ;;  %v2361_v12 = vpop.f32.mrf.mxu0  ;;  %v3628_v55 = vsel %vm8828_vm5, %v3623_v5, %v3627_v14 }
 0x171   : > { %v9544_v35 = vadd.f32 %v2359_v56, %v1731_v2  ;;  %v1732_v15 = vadd.f32 %v1604_v54, %v9337_v51  ;;  %v3638_v53 = vsel %vm8828_vm5, %v3633_v18, %v3637_v52  ;;  %v7904_v56 = vld [vmem:[%s8772_s9 + $0x14] sm:$0x1] }
 0x172   : > { %v1606_v16 = vpop.f32.mrf.mxu1  ;;  %v2363_v44 = vpop.f32.mrf.mxu0  ;;  %v7885_v2 = vcombine.low %v3628_v55, %v3638_v53 }
 0x173   : > { %v9548_v3 = vadd.f32 %v2361_v12, %v1732_v15  ;;  %v1733_v25 = vadd.f32 %v1606_v16, %v9341_v9  ;;  %v4285_v12 = vrot.slane %v4283_v37, 4  ;;  %v4286_v15 = vrot.slane %v7904_v56, 5  ;;  %v10986_v56 = vld [vmem:[#allocation39_spill] sm:$0xff] }
 0x174   : > { %v1608_v40 = vpop.f32.mrf.mxu1  ;;  %v2365_v26 = vpop.f32.mrf.mxu0 }
 0x175   : > { %v9552_v42 = vadd.f32 %v2363_v44, %v1733_v25  ;;  %v1734_v51 = vadd.f32 %v1608_v40, %v9348_v58  ;;  %v7902_v58 = vld [vmem:[%s8772_s9 + $0xc] sm:$0xe]  ;;  %v4287_v40 = vsel %vm8816_vm4, %v4285_v12, %v4286_v15 }
 0x176   : > { %v1612_v19 = vpop.f32.mrf.mxu1  ;;  %v2369_v27 = vpop.f32.mrf.mxu0  ;;  %3059 = vmatmul.mubr.bf16.gmra.mxu1 %v8508_v63  ;;  %4037 = vmatmul.mubr.bf16.gmra.mxu0 %v7884_v39  ;;  %v7950_v13 = vrot.slane %v7902_v58, 9  ;;  %v7906_v63 = vld [vmem:[%s8772_s9 + $0x1c] sm:$0xf] }
 0x177   : > { %v9557_v9 = vadd.f32 %v2365_v26, %v1734_v51  ;;  %v1735_v21 = vadd.f32 %v1612_v19, %v9353_v17  ;;  %3068 = vmatprep.mubr.bf16.mxu1 %v10971_v36  ;;  %4046 = vmatprep.mubr.bf16.mxu0 %v10971_v36  ;;  %v8515_v17 = vld [vmem:[%s8772_s9 + $0xc0] sm:$0xff]   ;;  %v4290_v26 = vrot.slane %v7906_v63, 5  ;;  %v8516_v58 = vld [vmem:[%s8772_s9 + $0x18] sm:$0xff]  }
 0x178   : > { %v1614_v47 = vpop.f32.mrf.mxu1  ;;  %v2371_v22 = vpop.f32.mrf.mxu0  ;;  %v4284_v18 = vsel %vm8816_vm4, %v7950_v13, %v4283_v37  ;;  %v7907_v19 = vld [vmem:[%s8772_s9 + $0x20] sm:$0x1]  ;;  %v8517_v37 = vld [vmem:[#allocation3 + $0x3f0] ss:$8 sps:$4 sm:$0xff]  }
 0x179   : > { %v9566_v62 = vadd.f32 %v2369_v27, %v1735_v21  ;;  %v1736_v14 = vadd.f32 %v1614_v47, %v9363_v45 }
 0x17a   : > { %v1616_v11 = vpop.f32.mrf.mxu1  ;;  %v2373_v41 = vpop.f32.mrf.mxu0 }
 0x17b   : > { %v9570_v30 = vadd.f32 %v2371_v22, %v1736_v14  ;;  %v1737_v54 = vadd.f32 %v1616_v11, %v9367_v50  ;;  %v8520_v11 = vld [vmem:[#allocation3 + $0x470] ss:$8 sps:$4 sm:$0xff]  }
 0x17c   : > { %v1618_v16 = vpop.f32.mrf.mxu1  ;;  %v2375_v44 = vpop.f32.mrf.mxu0 }
 0x17d   : > { %v9574_v39 = vadd.f32 %v2373_v41, %v1737_v54  ;;  %v1738_v45 = vadd.f32 %v1618_v16, %v9376_v61  ;;  %v7905_v61 = vld [vmem:[%s8772_s9 + $0x18] sm:$0xe]  ;;  %v4292_v41 = vrot.slane %v4290_v26, 4  ;;  %v8527_v16 = vld [vmem:[#allocation3 + $0x3e4] ss:$8 sps:$4 sm:$0xff]  }
 0x17e   : > { %v1622_v5 = vpop.f32.mrf.mxu1  ;;  %v2379_v25 = vpop.f32.mrf.mxu0  ;;  %3069 = vmatmul.mubr.bf16.gmra.mxu1 %v8515_v17  ;;  %4047 = vmatmul.mubr.bf16.gmra.mxu0 %v7885_v2  ;;  %v7951_v47 = vrot.slane %v7905_v61, 9  ;;  %v4293_v17 = vrot.slane %v7907_v19, 5  ;;  %v7909_v2 = vld [vmem:[%s8772_s9 + $0x28] sm:$0xf] }
 0x17f   : > { %v9579_v50 = vadd.f32 %v2375_v44, %v1738_v45  ;;  %v1739_v52 = vadd.f32 %v1622_v5, %v9381_v7  ;;  %4650 = vmatprep.mubr.bf16.mxu1 %v10971_v36  ;;  %5261 = vmatprep.mubr.bf16.mxu0 %v10971_v36  ;;  %v7966_v7 = vcombine.low %v4284_v18, %v4287_v40  ;;  %v8530_v44 = vld [vmem:[#allocation3 + $0x464] ss:$8 sps:$4 sm:$0xff]   ;;  %v8528_v19 = vld [vmem:[#allocation3 + $0x460] ss:$8 sps:$4 sm:$0xff]  }
 0x180   : > { %v1624_v24 = vpop.f32.mrf.mxu1  ;;  %v2381_v51 = vpop.f32.mrf.mxu0  ;;  %v4291_v5 = vsel %vm8816_vm4, %v7951_v47, %v4290_v26  ;;  %v4294_v61 = vsel %vm8816_vm4, %v4292_v41, %v4293_v17  ;;  %v7910_v26 = vld [vmem:[%s8772_s9 + $0x2c] sm:$0x1]  ;;  %v8523_v41 = vld [vmem:[%s8772_s9 + $0x24] sm:$0xff]  }
 0x181   : > { %v9588_v27 = vadd.f32 %v2379_v25, %v1739_v52  ;;  %v1740_v55 = vadd.f32 %v1624_v24, %v9392_v38  ;;  %v10987_v38 = vld [vmem:[#allocation41_spill] sm:$0xff]  ;;  %v4297_v25 = vrot.slane %v7909_v2, 5 }
 0x182   : > { %v1626_v21 = vpop.f32.mrf.mxu1  ;;  %v2383_v53 = vpop.f32.mrf.mxu0  ;;  %v10988_v52 = vld [vmem:[#allocation9_spill] sm:$0xff] }
 0x183   : > { %v9592_v22 = vadd.f32 %v2381_v51, %v1740_v55  ;;  %v1741_v14 = vadd.f32 %v1626_v21, %v10986_v56  ;;  %v7908_v24 = vld [vmem:[%s8772_s9 + $0x24] sm:$0xe]  ;;  %v8525_v51 = vld [vmem:[#allocation3 + $0x3e0] ss:$8 sps:$4 sm:$0xff]  }
 0x184   : > { %v1628_v13 = vpop.f32.mrf.mxu1  ;;  %v2385_v54 = vpop.f32.mrf.mxu0  ;;  %v7952_v17 = vrot.slane %v7908_v24, 9  ;;  %v8543_v24 = vld [vmem:[#allocation3 + $0x3c4] ss:$8 sps:$4 sm:$0xff]  }
 0x185   : > { %v9596_v12 = vadd.f32 %v2383_v53, %v1741_v14  ;;  %v1742_v15 = vadd.f32 %v1628_v13, %v10987_v38  ;;  %v8535_v53 = vld [vmem:[#allocation3 + $0x3d4] ss:$8 sps:$4 sm:$0xff]   ;;  %v4299_v38 = vrot.slane %v4297_v25, 4 }
 0x186   : > { %v1632_v63 = vpop.f32.mrf.mxu1  ;;  %v2389_v45 = vpop.f32.mrf.mxu0  ;;  %4651 = vmatmul.mubr.bf16.vlgmr.msra.gmra.mxu1 %v7966_v7  ;;  %5262 = vmatmul.mubr.bf16.vlgmr.msra.gmra.mxu0 %v8516_v58  ;;  %v8538_v7 = vld [vmem:[#allocation3 + $0x454] ss:$8 sps:$4 sm:$0xff]  }
 0x187   : > { %v9601_v18 = vadd.f32 %v2385_v54, %v1742_v15  ;;  %v1743_v40 = vadd.f32 %v1632_v63, %v10988_v52  ;;  %6208 = vmatpush1.bf16.msra.mxu1 %v8517_v37  ;;  %6962 = vmatpush1.bf16.msra.mxu0 %v8520_v11  ;;  %v10989_v37 = vld [vmem:[#allocation10_spill] sm:$0xff]  ;;  %v7967_v11 = vcombine.low %v4291_v5, %v4294_v61  ;;  %v10990_v13 = vld [vmem:[#allocation11_spill] sm:$0xff]  ;;  %v4300_v15 = vrot.slane %v7910_v26, 5  ;;  %v10992_v5 = vld [vmem:[#allocation12_spill] sm:$0xff] }
 0x188   : > { %v1634_v55 = vpop.f32.mrf.mxu1  ;;  %v2391_v21 = vpop.f32.mrf.mxu0  ;;  %4660 = vmatprep.mubr.bf16.mxu1 %v10971_v36  ;;  %5271 = vmatprep.mubr.bf16.mxu0 %v10971_v36  ;;  %v7912_v52 = vld [vmem:[%s8772_s9 + $0x34] sm:$0xf]  ;;  %v10994_v26 = vld [vmem:[#allocation13_spill] sm:$0xff] }
 0x189   : > { %v9610_v58 = vadd.f32 %v2389_v45, %v1743_v40  ;;  %v1744_v47 = vadd.f32 %v1634_v55, %v10989_v37  ;;  %6209 = vmatprep.subr.bf16.mxu1 %v8527_v16  ;;  %6963 = vmatprep.subr.bf16.mxu0 %v8530_v44  ;;  %v8533_v40 = vld [vmem:[#allocation3 + $0x3d0] ss:$8 sps:$4 sm:$0xff]   ;;  %v8546_v55 = vld [vmem:[#allocation3 + $0x444] ss:$8 sps:$4 sm:$0xff]  }
 0x18a   : > { %v1636_v56 = vpop.f32.mrf.mxu1  ;;  %v2393_v14 = vpop.f32.mrf.mxu0  ;;  %v8536_v16 = vld [vmem:[#allocation3 + $0x450] ss:$8 sps:$4 sm:$0xff]  }
 0x18b   : > { %v9614_v2 = vadd.f32 %v2391_v21, %v1744_v47  ;;  %v1745_v54 = vadd.f32 %v1636_v56, %v10990_v13  ;;  %6210 = vmatpush1.bf16.msra.mxu1 %v8525_v51  ;;  %6964 = vmatpush1.bf16.msra.mxu0 %v8528_v19  ;;  %v4298_v51 = vsel %vm8816_vm4, %v7952_v17, %v4297_v25  ;;  %v7911_v47 = vld [vmem:[%s8772_s9 + $0x30] sm:$0xe]  ;;  %v4304_v56 = vrot.slane %v7912_v52, 5  ;;  %v8541_v25 = vld [vmem:[#allocation3 + $0x3c0] ss:$8 sps:$4 sm:$0xff]  }
 0x18c   : > { %v1638_v63 = vpop.f32.mrf.mxu1  ;;  %v2395_v45 = vpop.f32.mrf.mxu0  ;;  %6211 = vmatprep.subr.bf16.mxu1 %v8535_v53  ;;  %6965 = vmatprep.subr.bf16.mxu0 %v8538_v7  ;;  %v4301_v7 = vsel %vm8816_vm4, %v4299_v38, %v4300_v15  ;;  %v8544_v17 = vld [vmem:[#allocation3 + $0x440] ss:$8 sps:$4 sm:$0xff]  }
 0x18d   : > { %v9618_v44 = vadd.f32 %v2393_v14, %v1745_v54  ;;  %v1746_v61 = vadd.f32 %v1638_v63, %v10992_v5  ;;  %v10996_v54 = vld [vmem:[#allocation14_spill] sm:$0xff]  ;;  %v8554_v5 = vld [vmem:[#allocation3 + $0x434] ss:$8 sps:$4 sm:$0xff]   ;;  %v7968_v52 = vcombine.low %v4298_v51, %v4301_v7 }
 0x18e   : > { %v1642_v21 = vpop.f32.mrf.mxu1  ;;  %v2399_v37 = vpop.f32.mrf.mxu0  ;;  %4661 = vmatmul.mubr.bf16.gmra.mxu1 %v7967_v11  ;;  %5272 = vmatmul.mubr.bf16.gmra.mxu0 %v8523_v41  ;;  %v7913_v41 = vld [vmem:[%s8772_s9 + $0x38] sm:$0x1]  ;;  %v8559_v7 = vld [vmem:[#allocation3 + $0x3a4] ss:$8 sps:$4 sm:$0xff]  }
 0x18f   : > { %10991 = vst [vmem:[#allocation39_spill] sm:$0xff] %v9618_v44  ;;  %v9623_v19 = vadd.f32 %v2395_v45, %v1746_v61  ;;  %v1747_v53 = vadd.f32 %v1642_v21, %v10994_v26  ;;  %4670 = vmatprep.mubr.bf16.mxu1 %v10971_v36  ;;  %5281 = vmatprep.mubr.bf16.mxu0 %v10971_v36  ;;  %v8551_v45 = vld [vmem:[#allocation3 + $0x3b4] ss:$8 sps:$4 sm:$0xff]   ;;  %v7953_v21 = vrot.slane %v7911_v47, 9  ;;  %v4307_v44 = vrot.slane %v7913_v41, 5 }
 0x190   : > { %v1644_v14 = vpop.f32.mrf.mxu1  ;;  %v2401_v11 = vpop.f32.mrf.mxu0  ;;  %6212 = vmatpush1.bf16.msra.mxu1 %v8533_v40  ;;  %6966 = vmatpush1.bf16.msra.mxu0 %v8536_v16  ;;  %v8524_v61 = vld [vmem:[%s8772_s9 + $0x30] sm:$0xff]   ;;  %v8562_v47 = vld [vmem:[#allocation3 + $0x424] ss:$8 sps:$4 sm:$0xff]  }
 0x191   : > { %10993 = vst [vmem:[#allocation41_spill] sm:$0xff] %v9623_v19  ;;  %v9632_v13 = vadd.f32 %v2399_v37, %v1747_v53  ;;  %v1748_v63 = vadd.f32 %v1644_v14, %v10996_v54  ;;  %6213 = vmatprep.subr.bf16.mxu1 %v8543_v24  ;;  %6967 = vmatprep.subr.bf16.mxu0 %v8546_v55  ;;  %v10998_v40 = vld [vmem:[#allocation15_spill] sm:$0xff]  ;;  %v4306_v19 = vrot.slane %v4304_v56, 4  ;;  %v11000_v54 = vld [vmem:[#allocation16_spill] sm:$0xff] }
 0x192   : > { %v1646_v38 = vpop.f32.mrf.mxu1  ;;  %v2403_v15 = vpop.f32.mrf.mxu0  ;;  %v8549_v24 = vld [vmem:[#allocation3 + $0x3b0] ss:$8 sps:$4 sm:$0xff]  }
 0x193   : > { %10995 = vst [vmem:[#allocation9_spill] sm:$0xff] %v9632_v13  ;;  %v9636_v26 = vadd.f32 %v2401_v11, %v1748_v63  ;;  %v1749_v16 = vadd.f32 %v1646_v38, %v10998_v40  ;;  %v9640_v13 = vld [vmem:[%s8772_s9 + $0x40] sm:$0xf]  ;;  %v8552_v55 = vld [vmem:[#allocation3 + $0x430] ss:$8 sps:$4 sm:$0xff]  }
 0x194   : > { %v1648_v37 = vpop.f32.mrf.mxu1  ;;  %v2405_v53 = vpop.f32.mrf.mxu0  ;;  %6214 = vmatpush1.bf16.msra.mxu1 %v8541_v25  ;;  %6968 = vmatpush1.bf16.msra.mxu0 %v8544_v17  ;;  %v4305_v25 = vsel %vm8816_vm4, %v7953_v21, %v4304_v56  ;;  %v11002_v63 = vld [vmem:[#allocation17_spill] sm:$0xff] }
 0x195   : > { %10997 = vst [vmem:[#allocation10_spill] sm:$0xff] %v9636_v26  ;;  %v9642_v14 = vadd.f32 %v2403_v15, %v1749_v16  ;;  %v1750_v51 = vadd.f32 %v1648_v37, %v11000_v54  ;;  %6215 = vmatprep.subr.bf16.mxu1 %v8551_v45  ;;  %6969 = vmatprep.subr.bf16.mxu0 %v8554_v5  ;;  %v7914_v5 = vld [vmem:[%s8772_s9 + $0x3c] sm:$0xe]  ;;  %v4311_v15 = vrot.slane %v9640_v13, 5  ;;  %v8557_v56 = vld [vmem:[#allocation3 + $0x3a0] ss:$8 sps:$4 sm:$0xff]  }
 0x196   : > { %v1652_v11 = vpop.f32.mrf.mxu1  ;;  %v2409_v41 = vpop.f32.mrf.mxu0  ;;  %4671 = vmatmul.mubr.bf16.gmra.mxu1 %v7968_v52  ;;  %5282 = vmatmul.mubr.bf16.gmra.mxu0 %v8524_v61  ;;  %v4308_v45 = vsel %vm8816_vm4, %v4306_v19, %v4307_v44  ;;  %v7916_v61 = vld [vmem:[%s8772_s9 + $0x44] sm:$0x1]  ;;  %v8560_v21 = vld [vmem:[#allocation3 + $0x420] ss:$8 sps:$4 sm:$0xff]   ;;  %v8567_v54 = vld [vmem:[#allocation3 + $0x394] ss:$8 sps:$4 sm:$0xff]  }
 0x197   : > { %10999 = vst [vmem:[#allocation11_spill] sm:$0xff] %v9642_v14  ;;  %v9647_v17 = vadd.f32 %v2405_v53, %v1750_v51  ;;  %v1751_v38 = vadd.f32 %v1652_v11, %v11002_v63  ;;  %4680 = vmatprep.mubr.bf16.mxu1 %v10971_v36  ;;  %5291 = vmatprep.mubr.bf16.mxu0 %v10971_v36  ;;  %v11004_v37 = vld [vmem:[#allocation18_spill] sm:$0xff]  ;;  %v8570_v44 = vld [vmem:[#allocation3 + $0x414] ss:$8 sps:$4 sm:$0xff]   ;;  %v7954_v63 = vrot.slane %v7914_v5, 9  ;;  %v4313_v14 = vrot.slane %v4311_v15, 4 }
 0x198   : > { %v1654_v40 = vpop.f32.mrf.mxu1  ;;  %v2411_v52 = vpop.f32.mrf.mxu0  ;;  %6216 = vmatpush1.bf16.msra.mxu1 %v8549_v24  ;;  %6970 = vmatpush1.bf16.msra.mxu0 %v8552_v55  ;;  %v7969_v13 = vcombine.low %v4305_v25, %v4308_v45  ;;  %v8531_v11 = vld [vmem:[%s8772_s9 + $0x3c] sm:$0xff]   ;;  %v11006_v24 = vld [vmem:[#allocation19_spill] sm:$0xff]  ;;  %v4314_v26 = vrot.slane %v7916_v61, 5  ;;  %v8575_v45 = vld [vmem:[#allocation3 + $0x384] ss:$8 sps:$4 sm:$0xff]  }
 0x199   : > { %11001 = vst [vmem:[#allocation12_spill] sm:$0xff] %v9647_v17  ;;  %v9657_v16 = vadd.f32 %v2409_v41, %v1751_v38  ;;  %v1752_v53 = vadd.f32 %v1654_v40, %v11004_v37  ;;  %6217 = vmatprep.subr.bf16.mxu1 %v8559_v7  ;;  %6971 = vmatprep.subr.bf16.mxu0 %v8562_v47  ;;  %v8565_v7 = vld [vmem:[#allocation3 + $0x390] ss:$8 sps:$4 sm:$0xff]   ;;  %v8578_v5 = vld [vmem:[#allocation3 + $0x404] ss:$8 sps:$4 sm:$0xff]  }
 0x19a   : > { %v1656_v19 = vpop.f32.mrf.mxu1  ;;  %v2413_v51 = vpop.f32.mrf.mxu0  ;;  %v8568_v47 = vld [vmem:[#allocation3 + $0x410] ss:$8 sps:$4 sm:$0xff]   ;;  %v4312_v61 = vsel %vm8816_vm4, %v7954_v63, %v4311_v15  ;;  %v8573_v15 = vld [vmem:[#allocation3 + $0x380] ss:$8 sps:$4 sm:$0xff]  }
 0x19b   : > { %11003 = vst [vmem:[#allocation13_spill] sm:$0xff] %v9657_v16  ;;  %v9661_v17 = vadd.f32 %v2411_v52, %v1752_v53  ;;  %v1753_v55 = vadd.f32 %v1656_v19, %v11006_v24  ;;  %v7918_v16 = vld [vmem:[%s8772_s9 + $0x4c] sm:$0xf]  ;;  %v11008_v37 = vld [vmem:[#allocation20_spill] sm:$0xff]  ;;  %v8576_v63 = vld [vmem:[#allocation3 + $0x400] ss:$8 sps:$4 sm:$0xff]  }
 0x19c   : > { %v1658_v41 = vpop.f32.mrf.mxu1  ;;  %v2415_v38 = vpop.f32.mrf.mxu0  ;;  %6218 = vmatpush1.bf16.msra.mxu1 %v8557_v56  ;;  %6972 = vmatpush1.bf16.msra.mxu0 %v8560_v21  ;;  %v11010_v21 = vld [vmem:[#allocation21_spill] sm:$0xff] }
 0x19d   : > { %11005 = vst [vmem:[#allocation14_spill] sm:$0xff] %v9661_v17  ;;  %v9665_v40 = vadd.f32 %v2413_v51, %v1753_v55  ;;  %v1754_v25 = vadd.f32 %v1658_v41, %v11008_v37  ;;  %6219 = vmatprep.subr.bf16.mxu1 %v8567_v54  ;;  %6973 = vmatprep.subr.bf16.mxu0 %v8570_v44  ;;  %v7917_v44 = vld [vmem:[%s8772_s9 + $0x48] sm:$0xe]  ;;  %v4318_v51 = vrot.slane %v7918_v16, 5 }
 0x19e   : > { %v1662_v52 = vpop.f32.mrf.mxu1  ;;  %v2419_v53 = vpop.f32.mrf.mxu0  ;;  %4681 = vmatmul.mubr.bf16.gmra.mxu1 %v7969_v13  ;;  %5292 = vmatmul.mubr.bf16.gmra.mxu0 %v8531_v11  ;;  %v4315_v54 = vsel %vm8816_vm4, %v4313_v14, %v4314_v26  ;;  %v7919_v11 = vld [vmem:[%s8772_s9 + $0x50] sm:$0x1]  ;;  %v11011_v41 = vld [vmem:[#allocation22_spill] sm:$0xff] }
 0x19f   : > { %11007 = vst [vmem:[#allocation15_spill] sm:$0xff] %v9665_v40  ;;  %v9670_v56 = vadd.f32 %v2415_v38, %v1754_v25  ;;  %v1755_v19 = vadd.f32 %v1662_v52, %v11010_v21  ;;  %4690 = vmatprep.mubr.bf16.mxu1 %v10971_v36  ;;  %5301 = vmatprep.mubr.bf16.mxu0 %v10971_v36  ;;  %v8532_v14 = vld [vmem:[%s8772_s9 + $0x48] sm:$0xff]   ;;  %v7955_v52 = vrot.slane %v7917_v44, 9  ;;  %v11012_v21 = vld [vmem:[#allocation23_spill] sm:$0xff] }
 0x1a0   : > { %v1664_v24 = vpop.f32.mrf.mxu1  ;;  %v2421_v13 = vpop.f32.mrf.mxu0  ;;  %6220 = vmatpush1.bf16.msra.mxu1 %v8565_v7  ;;  %6974 = vmatpush1.bf16.msra.mxu0 %v8568_v47  ;;  %v7970_v26 = vcombine.low %v4312_v61, %v4315_v54  ;;  %v4320_v7 = vrot.slane %v4318_v51, 4  ;;  %v4321_v47 = vrot.slane %v7919_v11, 5 }
 0x1a1   : > { %11009 = vst [vmem:[#allocation16_spill] sm:$0xff] %v9670_v56  ;;  %v9679_v55 = vadd.f32 %v2419_v53, %v1755_v19  ;;  %v1756_v38 = vadd.f32 %v1664_v24, %v11011_v41  ;;  %6221 = vmatprep.subr.bf16.mxu1 %v8575_v45  ;;  %6975 = vmatprep.subr.bf16.mxu0 %v8578_v5  ;;  %v7921_v53 = vld [vmem:[%s8772_s9 + $0x58] sm:$0xf] }
 0x1a2   : > { %v1666_v37 = vpop.f32.mrf.mxu1  ;;  %v2423_v25 = vpop.f32.mrf.mxu0  ;;  %v11014_v45 = vld [vmem:[#allocation24_spill] sm:$0xff]  ;;  %v4319_v44 = vsel %vm8816_vm4, %v7955_v52, %v4318_v51  ;;  %v11018_v51 = vld [vmem:[#allocation26_spill] sm:$0xff] }
 0x1a3   : > { %v9683_v16 = vadd.f32 %v2421_v13, %v1756_v38  ;;  %v1757_v56 = vadd.f32 %v1666_v37, %v11012_v21  ;;  %v11016_v13 = vld [vmem:[#allocation25_spill] sm:$0xff]  ;;  %v7922_v38 = vld [vmem:[%s8772_s9 + $0x5c] sm:$0x1]  ;;  %v8539_v52 = vld [vmem:[%s8772_s9 + $0x54] sm:$0xff]  }
 0x1a4   : > { %v1668_v40 = vpop.f32.mrf.mxu1  ;;  %v2425_v17 = vpop.f32.mrf.mxu0  ;;  %6222 = vmatpush1.bf16.msra.mxu1 %v8573_v15  ;;  %6976 = vmatpush1.bf16.msra.mxu0 %v8576_v63  ;;  %v4325_v15 = vrot.slane %v7921_v53, 5 }
 0x1a5   : > { %v9687_v19 = vadd.f32 %v2423_v25, %v1757_v56  ;;  %v1758_v5 = vadd.f32 %v1668_v40, %v11014_v45  ;;  %v4322_v56 = vsel %vm8816_vm4, %v4320_v7, %v4321_v47  ;;  %v7920_v40 = vld [vmem:[%s8772_s9 + $0x54] sm:$0xe]  ;;  %v4328_v47 = vrot.slane %v7922_v38, 5 }
 0x1a6   : > { %v1672_v61 = vpop.f32.mrf.mxu1  ;;  %v2429_v54 = vpop.f32.mrf.mxu0  ;;  %4691 = vmatmul.mubr.bf16.gmra.mxu1 %v7970_v26  ;;  %5302 = vmatmul.mubr.bf16.gmra.mxu0 %v8532_v14  ;;  %v7971_v14 = vcombine.low %v4319_v44, %v4322_v56  ;;  %v7956_v21 = vrot.slane %v7920_v40, 9  ;;  %v4327_v7 = vrot.slane %v4325_v15, 4  ;;  %v11024_v40 = vld [vmem:[#allocation29_spill] sm:$0xff] }
 0x1a7   : > { %11013 = vst [vmem:[#allocation17_spill] sm:$0xff] %v9687_v19  ;;  %v9692_v24 = vadd.f32 %v2425_v17, %v1758_v5  ;;  %v1759_v11 = vadd.f32 %v1672_v61, %v11016_v13  ;;  %4700 = vmatprep.mubr.bf16.mxu1 %v10971_v36  ;;  %5311 = vmatprep.mubr.bf16.mxu0 %v10971_v36  ;;  %v11020_v5 = vld [vmem:[#allocation27_spill] sm:$0xff] }
 0x1a8   : > { %v1674_v63 = vpop.f32.mrf.mxu1  ;;  %v2431_v41 = vpop.f32.mrf.mxu0  ;;  %v4326_v44 = vsel %vm8816_vm4, %v7956_v21, %v4325_v15  ;;  %v4329_v38 = vsel %vm8816_vm4, %v4327_v7, %v4328_v47  ;;  %v11026_v15 = vld [vmem:[#allocation30_spill] sm:$0xff] }
 0x1a9   : > { %11015 = vst [vmem:[#allocation18_spill] sm:$0xff] %v9692_v24  ;;  %v9701_v37 = vadd.f32 %v2429_v54, %v1759_v11  ;;  %v1760_v17 = vadd.f32 %v1674_v63, %v11018_v51  ;;  %v7924_v24 = vld [vmem:[%s8772_s9 + $0x64] sm:$0xf]  ;;  %v11022_v54 = vld [vmem:[#allocation28_spill] sm:$0xff] }
 0x1aa   : > { %v1676_v25 = vpop.f32.mrf.mxu1  ;;  %v2433_v26 = vpop.f32.mrf.mxu0 }
 0x1ab   : > { %11017 = vst [vmem:[#allocation19_spill] sm:$0xff] %v9701_v37  ;;  %v9705_v45 = vadd.f32 %v2431_v41, %v1760_v17  ;;  %v1761_v61 = vadd.f32 %v1676_v25, %v11020_v5  ;;  %v7923_v17 = vld [vmem:[%s8772_s9 + $0x60] sm:$0xe]  ;;  %v4332_v25 = vrot.slane %v7924_v24, 5 }
 0x1ac   : > { %v1678_v53 = vpop.f32.mrf.mxu1  ;;  %v2435_v13 = vpop.f32.mrf.mxu0 }
 0x1ad   : > { %11019 = vst [vmem:[#allocation20_spill] sm:$0xff] %v9705_v45  ;;  %v9709_v19 = vadd.f32 %v2433_v26, %v1761_v61  ;;  %v1762_v11 = vadd.f32 %v1678_v53, %v11022_v54  ;;  %v8540_v54 = vld [vmem:[%s8772_s9 + $0x60] sm:$0xff]   ;;  %v4334_v7 = vrot.slane %v4332_v25, 4  ;;  %v7927_v45 = vld [vmem:[%s8772_s9 + $0x70] sm:$0xf] }
 0x1ae   : > { %v1682_v63 = vpop.f32.mrf.mxu1  ;;  %v2439_v51 = vpop.f32.mrf.mxu0  ;;  %4701 = vmatmul.mubr.bf16.gmra.mxu1 %v7971_v14  ;;  %5312 = vmatmul.mubr.bf16.gmra.mxu0 %v8539_v52  ;;  %v7925_v52 = vld [vmem:[%s8772_s9 + $0x68] sm:$0x1] }
 0x1af   : > { %11021 = vst [vmem:[#allocation21_spill] sm:$0xff] %v9709_v19  ;;  %v9714_v56 = vadd.f32 %v2435_v13, %v1762_v11  ;;  %v1763_v41 = vadd.f32 %v1682_v63, %v11024_v40  ;;  %4710 = vmatprep.mubr.bf16.mxu1 %v10971_v36  ;;  %5321 = vmatprep.mubr.bf16.mxu0 %v10971_v36  ;;  %v7957_v11 = vrot.slane %v7923_v17, 9  ;;  %v11028_v40 = vld [vmem:[#allocation31_spill] sm:$0xff]  ;;  %v4335_v47 = vrot.slane %v7925_v52, 5  ;;  %v11032_v17 = vld [vmem:[#allocation33_spill] sm:$0xff] }
 0x1b0   : > { %v1684_v26 = vpop.f32.mrf.mxu1  ;;  %v2441_v14 = vpop.f32.mrf.mxu0  ;;  %v7972_v13 = vcombine.low %v4326_v44, %v4329_v38  ;;  %v7926_v52 = vld [vmem:[%s8772_s9 + $0x6c] sm:$0xe] }
 0x1b1   : > { %11023 = vst [vmem:[#allocation22_spill] sm:$0xff] %v9714_v56  ;;  %v9723_v5 = vadd.f32 %v2439_v51, %v1763_v41  ;;  %v1764_v21 = vadd.f32 %v1684_v26, %v11026_v15  ;;  %v11030_v51 = vld [vmem:[#allocation32_spill] sm:$0xff]  ;;  %v4333_v44 = vsel %vm8816_vm4, %v7957_v11, %v4332_v25  ;;  %v11034_v25 = vld [vmem:[#allocation34_spill] sm:$0xff] }
 0x1b2   : > { %v1686_v61 = vpop.f32.mrf.mxu1  ;;  %v2443_v53 = vpop.f32.mrf.mxu0 }
 0x1b3   : > { %11025 = vst [vmem:[#allocation23_spill] sm:$0xff] %v9723_v5  ;;  %v9727_v63 = vadd.f32 %v2441_v14, %v1764_v21  ;;  %v1765_v56 = vadd.f32 %v1686_v61, %v11028_v40  ;;  %v4339_v21 = vrot.slane %v7927_v45, 5 }
 0x1b4   : > { %v1688_v24 = vpop.f32.mrf.mxu1  ;;  %v2445_v19 = vpop.f32.mrf.mxu0 }
 0x1b5   : > { %11027 = vst [vmem:[#allocation24_spill] sm:$0xff] %v9727_v63  ;;  %v9731_v37 = vadd.f32 %v2443_v53, %v1765_v56  ;;  %v1766_v41 = vadd.f32 %v1688_v24, %v11030_v51  ;;  %v4336_v56 = vsel %vm8816_vm4, %v4334_v7, %v4335_v47  ;;  %v8547_v51 = vld [vmem:[%s8772_s9 + $0x6c] sm:$0xff]   ;;  %v4341_v7 = vrot.slane %v4339_v21, 4  ;;  %v7930_v63 = vld [vmem:[%s8772_s9 + $0x7c] sm:$0xf] }
 0x1b6   : > { %v1692_v26 = vpop.f32.mrf.mxu1  ;;  %v2449_v15 = vpop.f32.mrf.mxu0  ;;  %4711 = vmatmul.mubr.bf16.gmra.mxu1 %v7972_v13  ;;  %5322 = vmatmul.mubr.bf16.gmra.mxu0 %v8540_v54  ;;  %v7928_v13 = vld [vmem:[%s8772_s9 + $0x74] sm:$0x1]  ;;  %v7973_v24 = vcombine.low %v4333_v44, %v4336_v56 }
 0x1b7   : > { %11029 = vst [vmem:[#allocation25_spill] sm:$0xff] %v9731_v37  ;;  %v9736_v38 = vadd.f32 %v2445_v19, %v1766_v41  ;;  %v1767_v14 = vadd.f32 %v1692_v26, %v11032_v17  ;;  %4720 = vmatprep.mubr.bf16.mxu1 %v10971_v36  ;;  %5331 = vmatprep.mubr.bf16.mxu0 %v10971_v36  ;;  %v7958_v41 = vrot.slane %v7926_v52, 9  ;;  %v11036_v17 = vld [vmem:[#allocation35_spill] sm:$0xff]  ;;  %v4342_v47 = vrot.slane %v7928_v13, 5  ;;  %v11040_v52 = vld [vmem:[#allocation37_spill] sm:$0xff] }
 0x1b8   : > { %v1694_v61 = vpop.f32.mrf.mxu1  ;;  %v2451_v53 = vpop.f32.mrf.mxu0  ;;  %v7929_v13 = vld [vmem:[%s8772_s9 + $0x78] sm:$0xe] }
 0x1b9   : > { %11031 = vst [vmem:[#allocation26_spill] sm:$0xff] %v9736_v38  ;;  %v9745_v54 = vadd.f32 %v2449_v15, %v1767_v14  ;;  %v1768_v19 = vadd.f32 %v1694_v61, %v11034_v25  ;;  %v11038_v15 = vld [vmem:[#allocation36_spill] sm:$0xff]  ;;  %v4340_v44 = vsel %vm8816_vm4, %v7958_v41, %v4339_v21  ;;  %v11041_v21 = vld [vmem:[#allocation38_spill] sm:$0xff] }
 0x1ba   : > { %v1696_v11 = vpop.f32.mrf.mxu1  ;;  %v2453_v40 = vpop.f32.mrf.mxu0 }
 0x1bb   : > { %11033 = vst [vmem:[#allocation27_spill] sm:$0xff] %v9745_v54  ;;  %v9749_v26 = vadd.f32 %v2451_v53, %v1768_v19  ;;  %v1769_v38 = vadd.f32 %v1696_v11, %v11036_v17  ;;  %v4346_v19 = vrot.slane %v7930_v63, 5 }
 0x1bc   : > { %v1698_v45 = vpop.f32.mrf.mxu1  ;;  %v2455_v37 = vpop.f32.mrf.mxu0 }
 0x1bd   : > { %11035 = vst [vmem:[#allocation28_spill] sm:$0xff] %v9749_v26  ;;  %v9753_v5 = vadd.f32 %v2453_v40, %v1769_v38  ;;  %v1770_v14 = vadd.f32 %v1698_v45, %v11038_v15  ;;  %v4343_v38 = vsel %vm8816_vm4, %v4341_v7, %v4342_v47  ;;  %v8548_v15 = vld [vmem:[%s8772_s9 + $0x78] sm:$0xff]   ;;  %v4348_v7 = vrot.slane %v4346_v19, 4  ;;  %v7933_v26 = vld [vmem:[%s8772_s9 + $0x88] sm:$0xf] }
 0x1be   : > { %v1702_v61 = vpop.f32.mrf.mxu1  ;;  %v2459_v25 = vpop.f32.mrf.mxu0  ;;  %4721 = vmatmul.mubr.bf16.gmra.mxu1 %v7973_v24  ;;  %5332 = vmatmul.mubr.bf16.gmra.mxu0 %v8547_v51  ;;  %v7931_v24 = vld [vmem:[%s8772_s9 + $0x80] sm:$0x1]  ;;  %v7974_v45 = vcombine.low %v4340_v44, %v4343_v38 }
 0x1bf   : > { %11037 = vst [vmem:[#allocation29_spill] sm:$0xff] %v9753_v5  ;;  %v9758_v56 = vadd.f32 %v2455_v37, %v1770_v14  ;;  %v1771_v53 = vadd.f32 %v1702_v61, %v11040_v52  ;;  %4730 = vmatprep.mubr.bf16.mxu1 %v10971_v36  ;;  %5341 = vmatprep.mubr.bf16.mxu0 %v10971_v36  ;;  %v7959_v14 = vrot.slane %v7929_v13, 9  ;;  %v11042_v52 = vld [vmem:[#allocation40_spill] sm:$0xff]  ;;  %v4349_v47 = vrot.slane %v7931_v24, 5  ;;  %v11046_v13 = vld [vmem:[#allocation43_spill] sm:$0xff] }
 0x1c0   : > { %v1704_v11 = vpop.f32.mrf.mxu1  ;;  %v2461_v40 = vpop.f32.mrf.mxu0  ;;  %v7932_v24 = vld [vmem:[%s8772_s9 + $0x84] sm:$0xe] }
 0x1c1   : > { %11039 = vst [vmem:[#allocation30_spill] sm:$0xff] %v9758_v56  ;;  %v9767_v51 = vadd.f32 %v2459_v25, %v1771_v53  ;;  %v1772_v37 = vadd.f32 %v1704_v11, %v11041_v21  ;;  %v11044_v25 = vld [vmem:[#allocation42_spill] sm:$0xff]  ;;  %v4347_v44 = vsel %vm8816_vm4, %v7959_v14, %v4346_v19 }
 0x1c2   : > { %v1706_v41 = vpop.f32.mrf.mxu1  ;;  %v2463_v17 = vpop.f32.mrf.mxu0 }
 0x1c3   : > { %v9771_v61 = vadd.f32 %v2461_v40, %v1772_v37  ;;  %v1773_v56 = vadd.f32 %v1706_v41, %v11042_v52  ;;  %v4353_v37 = vrot.slane %v7933_v26, 5 }
 0x1c4   : > { %v1708_v63 = vpop.f32.mrf.mxu1  ;;  %v2465_v5 = vpop.f32.mrf.mxu0 }
 0x1c5   : > { %v9775_v54 = vadd.f32 %v2463_v17, %v1773_v56  ;;  %v1774_v53 = vadd.f32 %v1708_v63, %v11044_v25  ;;  %v4350_v56 = vsel %vm8816_vm4, %v4348_v7, %v4349_v47  ;;  %v8555_v63 = vld [vmem:[%s8772_s9 + $0x84] sm:$0xff]   ;;  %v7960_v25 = vrot.slane %v7932_v24, 9 }
 0x1c6   : > { %v2920_v11 = vpop.f32.mrf.mxu1  ;;  %v3898_v21 = vpop.f32.mrf.mxu0  ;;  %4731 = vmatmul.mubr.bf16.gmra.mxu1 %v7974_v45  ;;  %5342 = vmatmul.mubr.bf16.gmra.mxu0 %v8548_v15  ;;  %v7934_v45 = vld [vmem:[%s8772_s9 + $0x8c] sm:$0x1]  ;;  %v7975_v52 = vcombine.low %v4347_v44, %v4350_v56  ;;  %v4355_v7 = vrot.slane %v4353_v37, 4 }
 0x1c7   : > { %11043 = vst [vmem:[#allocation31_spill] sm:$0xff] %v9775_v54  ;;  %v9780_v38 = vadd.f32 %v2465_v5, %v1774_v53  ;;  %v3079_v40 = vadd.f32 %v2920_v11, %v11046_v13  ;;  %4740 = vmatprep.mubr.bf16.mxu1 %v10971_v36  ;;  %5351 = vmatprep.mubr.bf16.mxu0 %v10971_v36  ;;  %v4356_v47 = vrot.slane %v7934_v45, 5 }
 0x1c8   : > { %v2922_v41 = vpop.f32.mrf.mxu1  ;;  %v3900_v17 = vpop.f32.mrf.mxu0  ;;  %v4354_v44 = vsel %vm8816_vm4, %v7960_v25, %v4353_v37 }
 0x1c9   : > { %11045 = vst [vmem:[#allocation32_spill] sm:$0xff] %v9780_v38  ;;  %v9789_v15 = vadd.f32 %v3898_v21, %v3079_v40  ;;  %v3080_v5 = vadd.f32 %v2922_v41, %v9425_v49  ;;  %v7936_v38 = vld [vmem:[%s8772_s9 + $0x94] sm:$0xf]  ;;  %v4357_v24 = vsel %vm8816_vm4, %v4355_v7, %v4356_v47 }
 0x1ca   : > { %v2924_v19 = vpop.f32.mrf.mxu1  ;;  %v3902_v14 = vpop.f32.mrf.mxu0  ;;  %v4360_v41 = vrot.slane %v7936_v38, 5 }
 0x1cb   : > { %v9793_v53 = vadd.f32 %v3900_v17, %v3080_v5  ;;  %v3081_v11 = vadd.f32 %v2924_v19, %v9431_v1  ;;  %v7937_v5 = vld [vmem:[%s8772_s9 + $0x98] sm:$0x1] }
 0x1cc   : > { %v2926_v26 = vpop.f32.mrf.mxu1  ;;  %v3904_v13 = vpop.f32.mrf.mxu0  ;;  %v4362_v7 = vrot.slane %v4360_v41, 4  ;;  %v4363_v47 = vrot.slane %v7937_v5, 5 }
 0x1cd   : > { %v9797_v54 = vadd.f32 %v3902_v14, %v3081_v11  ;;  %v3082_v49 = vadd.f32 %v2926_v26, %v9439_v33  ;;  %v7935_v33 = vld [vmem:[%s8772_s9 + $0x90] sm:$0xe] }
 0x1ce   : > { %v2930_v21 = vpop.f32.mrf.mxu1  ;;  %v3908_v40 = vpop.f32.mrf.mxu0  ;;  %4741 = vmatmul.mubr.bf16.gmra.mxu1 %v7975_v52  ;;  %5352 = vmatmul.mubr.bf16.gmra.mxu0 %v8555_v63  ;;  %v8556_v63 = vld [vmem:[%s8772_s9 + $0x90] sm:$0xff]   ;;  %v7961_v25 = vrot.slane %v7935_v33, 9  ;;  %v4364_v33 = vsel %vm8816_vm4, %v4362_v7, %v4363_v47 }
 0x1cf   : > { %v9802_v1 = vadd.f32 %v3904_v13, %v3082_v49  ;;  %v3083_v56 = vadd.f32 %v2930_v21, %v9447_v8  ;;  %4750 = vmatprep.mubr.bf16.mxu1 %v10971_v36  ;;  %5361 = vmatprep.mubr.bf16.mxu0 %v10971_v36  ;;  %v7976_v8 = vcombine.low %v4354_v44, %v4357_v24  ;;  %v7939_v49 = vld [vmem:[%s8772_s9 + $0xa0] sm:$0xf] }
 0x1d0   : > { %v2932_v17 = vpop.f32.mrf.mxu1  ;;  %v3910_v45 = vpop.f32.mrf.mxu0  ;;  %v4361_v44 = vsel %vm8816_vm4, %v7961_v25, %v4360_v41 }
 0x1d1   : > { %v9811_v19 = vadd.f32 %v3908_v40, %v3083_v56  ;;  %v3084_v37 = vadd.f32 %v2932_v17, %v9453_v59  ;;  %v4367_v17 = vrot.slane %v7939_v49, 5 }
 0x1d2   : > { %v2934_v14 = vpop.f32.mrf.mxu1  ;;  %v3912_v52 = vpop.f32.mrf.mxu0 }
 0x1d3   : > { %v9815_v11 = vadd.f32 %v3910_v45, %v3084_v37  ;;  %v3085_v26 = vadd.f32 %v2934_v14, %v9458_v28  ;;  %v7940_v37 = vld [vmem:[%s8772_s9 + $0xa4] sm:$0x1]  ;;  %v4369_v47 = vrot.slane %v4367_v17, 4 }
 0x1d4   : > { %v2936_v38 = vpop.f32.mrf.mxu1  ;;  %v3914_v13 = vpop.f32.mrf.mxu0 }
 0x1d5   : > { %v9819_v21 = vadd.f32 %v3912_v52, %v3085_v26  ;;  %v3086_v59 = vadd.f32 %v2936_v38, %v9464_v10  ;;  %v7938_v10 = vld [vmem:[%s8772_s9 + $0x9c] sm:$0xe]  ;;  %v4370_v38 = vrot.slane %v7940_v37, 5 }
 0x1d6   : > { %v2940_v40 = vpop.f32.mrf.mxu1  ;;  %v3918_v56 = vpop.f32.mrf.mxu0  ;;  %4751 = vmatmul.mubr.bf16.gmra.mxu1 %v7976_v8  ;;  %5362 = vmatmul.mubr.bf16.gmra.mxu0 %v8556_v63  ;;  %v8563_v63 = vld [vmem:[%s8772_s9 + $0x9c] sm:$0xff]   ;;  %v7962_v25 = vrot.slane %v7938_v10, 9 }
 0x1d7   : > { %v9824_v28 = vadd.f32 %v3914_v13, %v3086_v59  ;;  %v3087_v24 = vadd.f32 %v2940_v40, %v9471_v60  ;;  %4760 = vmatprep.mubr.bf16.mxu1 %v10971_v36  ;;  %5371 = vmatprep.mubr.bf16.mxu0 %v10971_v36  ;;  %v7977_v60 = vcombine.low %v4361_v44, %v4364_v33  ;;  %v7942_v13 = vld [vmem:[%s8772_s9 + $0xac] sm:$0xf]  ;;  %v7941_v33 = vld [vmem:[%s8772_s9 + $0xa8] sm:$0xe] }
 0x1d8   : > { %v2942_v45 = vpop.f32.mrf.mxu1  ;;  %v3920_v5 = vpop.f32.mrf.mxu0  ;;  %v4368_v44 = vsel %vm8816_vm4, %v7962_v25, %v4367_v17 }
 0x1d9   : > { %v9833_v14 = vadd.f32 %v3918_v56, %v3087_v24  ;;  %v3088_v41 = vadd.f32 %v2942_v45, %v9478_v31 }
 0x1da   : > { %v2944_v52 = vpop.f32.mrf.mxu1  ;;  %v3922_v8 = vpop.f32.mrf.mxu0 }
 0x1db   : > { %11047 = vst [vmem:[#allocation33_spill] sm:$0xff] %v9833_v14  ;;  %v9837_v26 = vadd.f32 %v3920_v5, %v3088_v41  ;;  %v3089_v7 = vadd.f32 %v2944_v52, %v9488_v29  ;;  %v4374_v29 = vrot.slane %v7942_v13, 5  ;;  %v7943_v5 = vld [vmem:[%s8772_s9 + $0xb0] sm:$0x1]  ;;  %v8066_v14 = vld [vmem:[%s8772_s9 + $0x28] sm:$0xf] }
 0x1dc   : > { %v2946_v49 = vpop.f32.mrf.mxu1  ;;  %v3924_v59 = vpop.f32.mrf.mxu0 }
 0x1dd   : > { %11048 = vst [vmem:[#allocation34_spill] sm:$0xff] %v9837_v26  ;;  %v9841_v40 = vadd.f32 %v3922_v8, %v3089_v7  ;;  %v3090_v31 = vadd.f32 %v2946_v49, %v9492_v6  ;;  %v4371_v6 = vsel %vm8816_vm4, %v4369_v47, %v4370_v38  ;;  %v7963_v8 = vrot.slane %v7941_v33, 9  ;;  %v8564_v7 = vld [vmem:[%s8772_s9 + $0xa8] sm:$0xff]   ;;  %v8063_v33 = vld [vmem:[%s8772_s9 + $0x1c] sm:$0xf] }
 0x1de   : > { %v2950_v56 = vpop.f32.mrf.mxu1  ;;  %v3928_v24 = vpop.f32.mrf.mxu0  ;;  %4761 = vmatmul.mubr.bf16.gmra.mxu1 %v7977_v60  ;;  %5372 = vmatmul.mubr.bf16.gmra.mxu0 %v8563_v63  ;;  %v9859_v60 = vld [vmem:[%s8772_s9 + $0xb8] sm:$0xf]  ;;  %v7978_v25 = vcombine.low %v4368_v44, %v4371_v6  ;;  %v4376_v47 = vrot.slane %v4374_v29, 4  ;;  %v4377_v38 = vrot.slane %v7943_v5, 5  ;;  %v7944_v5 = vld [vmem:[%s8772_s9 + $0xb4] sm:$0xe] }
 0x1df   : > { %11049 = vst [vmem:[#allocation35_spill] sm:$0xff] %v9841_v40  ;;  %v9847_v10 = vadd.f32 %v3924_v59, %v3090_v31  ;;  %v3091_v45 = vadd.f32 %v2950_v56, %v9497_v34  ;;  %4770 = vmatprep.mubr.bf16.mxu1 %v10971_v36  ;;  %5381 = vmatprep.mubr.bf16.mxu0 %v10971_v36  ;;  %v9866_v59 = vld [vmem:[%s8772_s9 + $0xc4] sm:$0xf] }
 0x1e0   : > { %v2952_v37 = vpop.f32.mrf.mxu1  ;;  %v3930_v41 = vpop.f32.mrf.mxu0  ;;  %v4375_v6 = vsel %vm8816_vm4, %v7963_v8, %v4374_v29  ;;  %v7949_v8 = vld [vmem:[%s8772_s9 + $0xc8] sm:$0x1] }
 0x1e1   : > { %11050 = vst [vmem:[#allocation36_spill] sm:$0xff] %v9847_v10  ;;  %v9855_v17 = vadd.f32 %v3928_v24, %v3091_v45  ;;  %v3092_v52 = vadd.f32 %v2952_v37, %v9504_v48  ;;  %v8062_v48 = vld [vmem:[%s8772_s9 + $0x18] sm:$0xf]  ;;  %v4381_v24 = vrot.slane %v9859_v60, 5  ;;  %v7946_v37 = vld [vmem:[%s8772_s9 + $0xbc] sm:$0x1] }
 0x1e2   : > { %v2954_v34 = vpop.f32.mrf.mxu1  ;;  %v3932_v63 = vpop.f32.mrf.mxu0  ;;  %v4388_v60 = vrot.slane %v9866_v59, 5  ;;  %v4391_v40 = vrot.slane %v7949_v8, 5 }
 0x1e3   : > { %11051 = vst [vmem:[#allocation37_spill] sm:$0xff] %v9855_v17  ;;  %v9862_v13 = vadd.f32 %v3930_v41, %v3092_v52  ;;  %v3093_v49 = vadd.f32 %v2954_v34, %v9509_v20  ;;  %v4378_v52 = vsel %vm8816_vm4, %v4376_v47, %v4377_v38  ;;  %v7947_v34 = vld [vmem:[%s8772_s9 + $0xc0] sm:$0xe]  ;;  %v7964_v38 = vrot.slane %v7944_v5, 9 }
 0x1e4   : > { %v2956_v31 = vpop.f32.mrf.mxu1  ;;  %v3934_v56 = vpop.f32.mrf.mxu0  ;;  %v4383_v59 = vrot.slane %v4381_v24, 4  ;;  %v4390_v10 = vrot.slane %v4388_v60, 4 }
 0x1e5   : > { %11052 = vst [vmem:[#allocation38_spill] sm:$0xff] %v9862_v13  ;;  %v9871_v45 = vadd.f32 %v3932_v63, %v3093_v49  ;;  %v3094_v44 = vadd.f32 %v2956_v31, %v9518_v0  ;;  %v5599_v63 = vshrl.u32 %v8062_v48, 16  ;;  %v5602_v49 = vshll.u32 %v8062_v48, 16 }
 0x1e6   : > { %v2960_v20 = vpop.f32.mrf.mxu1  ;;  %v3938_v41 = vpop.f32.mrf.mxu0  ;;  %4771 = vmatmul.mubr.bf16.gmra.mxu1 %v7978_v25  ;;  %5382 = vmatmul.mubr.bf16.gmra.mxu0 %v8564_v7  ;;  %v5608_v25 = vshll.u32 %v8063_v33, 16  ;;  %v5612_v7 = vshrl.u32 %v8063_v33, 16 }
 0x1e7   : > { %11053 = vst [vmem:[#allocation40_spill] sm:$0xff] %v9871_v45  ;;  %v9882_v0 = vadd.f32 %v3934_v56, %v3094_v44  ;;  %v3095_v29 = vadd.f32 %v2960_v20, %v9523_v4  ;;  %4780 = vmatprep.mubr.bf16.mxu1 %v10971_v36  ;;  %5391 = vmatprep.mubr.bf16.mxu0 %v10971_v36  ;;  %v4384_v45 = vrot.slane %v7946_v37, 5  ;;  %v8571_v44 = vld [vmem:[%s8772_s9 + $0xb4] sm:$0xff]   ;;  %v7965_v20 = vrot.slane %v7947_v34, 9 }
 0x1e8   : > { %v2962_v31 = vpop.f32.mrf.mxu1  ;;  %v3940_v47 = vpop.f32.mrf.mxu0  ;;  %v7979_v4 = vcombine.low %v4375_v6, %v4378_v52  ;;  %v5601_v33 = vrot.slane %v5599_v63, 4  ;;  %v5604_v26 = vrot.slane %v5602_v49, 5  ;;  %v4382_v34 = vsel %vm8816_vm4, %v7964_v38, %v4381_v24 }
 0x1e9   : > { %11054 = vst [vmem:[#allocation42_spill] sm:$0xff] %v9882_v0  ;;  %v9888_v48 = vadd.f32 %v3938_v41, %v3095_v29  ;;  %v3096_v56 = vadd.f32 %v2962_v31, %v9527_v23  ;;  %v8065_v0 = vld [vmem:[%s8772_s9 + $0x24] sm:$0xf]  ;;  %v8064_v41 = vld [vmem:[%s8772_s9 + $0x20] sm:$0x1]  ;;  %v9898_v29 = vrot.slane %v5608_v25, 5  ;;  %v4385_v8 = vsel %vm8816_vm4, %v4383_v59, %v4384_v45 }
 0x1ea   : > { %v2964_v13 = vpop.f32.mrf.mxu1  ;;  %v3942_v17 = vpop.f32.mrf.mxu0  ;;  %v5614_v23 = vrot.slane %v5612_v7, 4  ;;  %v5623_v63 = vshrl.u32 %v8065_v0, 16  ;;  %v5626_v31 = vshll.u32 %v8065_v0, 16  ;;  %v9910_v24 = vsel %vm8816_vm4, %v7965_v20, %v4388_v60  ;;  %v8142_v60 = vld [vmem:[%s8772_s9 + $0x18] sm:$0xe] }
 0x1eb   : > { %11055 = vst [vmem:[#allocation43_spill] sm:$0xff] %v9888_v48  ;;  %v9894_v5 = vadd.f32 %v3940_v47, %v3096_v56  ;;  %v3097_v37 = vadd.f32 %v2964_v13, %v9531_v46  ;;  %v8143_v56 = vld [vmem:[%s8772_s9 + $0x1c] sm:$0xf]  ;;  %v5632_v46 = vshll.u32 %v8066_v14, 16  ;;  %v5636_v13 = vshrl.u32 %v8066_v14, 16 }
 0x1ec   : > { %v2966_v6 = vpop.f32.mrf.mxu1  ;;  %v3944_v52 = vpop.f32.mrf.mxu0  ;;  %v9914_v45 = vsel %vm8816_vm4, %v4390_v10, %v4391_v40  ;;  %v5618_v0 = vshll.u32 %v8064_v41, 16  ;;  %v5615_v38 = vor.u32 %v5614_v23, %v9898_v29  ;;  %v6626_v40 = vrot.slane %v8143_v56, 5  ;;  %v8068_v41 = vld [vmem:[%s8772_s9 + $0x30] sm:$0xf] }
 0x1ed   : > { %11056 = vst [vmem:[#allocation44_spill] sm:$0xff] %v9894_v5  ;;  %v9904_v49 = vadd.f32 %v3942_v17, %v3097_v37  ;;  %v3098_v47 = vadd.f32 %v2966_v6, %v9539_v57  ;;  %v5605_v17 = vor.u32 %v5604_v26, %v5601_v33  ;;  %v5625_v10 = vrot.slane %v5623_v63, 4  ;;  %v8067_v33 = vld [vmem:[%s8772_s9 + $0x2c] sm:$0x1]  ;;  %v8146_v5 = vld [vmem:[%s8772_s9 + $0x28] sm:$0xf] }
 0x1ee   : > { %v2970_v25 = vpop.f32.mrf.mxu1  ;;  %v3948_v7 = vpop.f32.mrf.mxu0  ;;  %4781 = vmatmul.mubr.bf16.gmra.mxu1 %v7979_v4  ;;  %5392 = vmatmul.mubr.bf16.gmra.mxu0 %v8571_v44  ;;  %v5628_v44 = vrot.slane %v5626_v31, 5  ;;  %v5638_v37 = vrot.slane %v5636_v13, 4  ;;  %v5620_v31 = vrot.slane %v5618_v0, 5  ;;  %v8190_v56 = vrot.slane %v8142_v60, 9 }
 0x1ef   : > { %11057 = vst [vmem:[#allocation45_spill] sm:$0xff] %v9904_v49  ;;  %v9916_v57 = vadd.f32 %v3944_v52, %v3098_v47  ;;  %v3099_v14 = vadd.f32 %v2970_v25, %v9544_v35  ;;  %4790 = vmatprep.mubr.bf16.mxu1 %v10971_v36  ;;  %5401 = vmatprep.mubr.bf16.mxu0 %v10971_v36  ;;  %v9927_v35 = vrot.slane %v5632_v46, 5  ;;  %v8572_v47 = vld [vmem:[%s8772_s9 + $0xc0] sm:$0xff]   ;;  %v5642_v49 = vshll.u32 %v8067_v33, 16 }
 0x1f0   : > { %v2972_v59 = vpop.f32.mrf.mxu1  ;;  %v3950_v4 = vpop.f32.mrf.mxu0  ;;  %v7980_v52 = vcombine.low %v4382_v34, %v4385_v8  ;;  %v8144_v46 = vld [vmem:[%s8772_s9 + $0x20] sm:$0x1]  ;;  %v5647_v34 = vshrl.u32 %v8068_v41, 16  ;;  %v5650_v8 = vshll.u32 %v8068_v41, 16  ;;  %v5629_v60 = vor.u32 %v5628_v44, %v5625_v10  ;;  %v8145_v44 = vld [vmem:[%s8772_s9 + $0x24] sm:$0xe] }
 0x1f1   : > { %11058 = vst [vmem:[#allocation46_spill] sm:$0xff] %v9916_v57  ;;  %v9923_v26 = vadd.f32 %v3948_v7, %v3099_v14  ;;  %v3100_v20 = vadd.f32 %v2972_v59, %v9548_v3  ;;  %v5606_v7 = vrot.slane %v5605_v17, 4  ;;  %v5616_v14 = vrot.slane %v5615_v38, 4  ;;  %v8069_v59 = vld [vmem:[%s8772_s9 + $0x34] sm:$0xf] }
 0x1f2   : > { %v2974_v6 = vpop.f32.mrf.mxu1  ;;  %v3952_v23 = vpop.f32.mrf.mxu0  ;;  %v6628_v57 = vrot.slane %v6626_v40, 4  ;;  %v9945_v38 = vsel %vm8816_vm4, %v8190_v56, %v6626_v40  ;;  %v5656_v33 = vshll.u32 %v8069_v59, 16  ;;  %v5660_v41 = vshrl.u32 %v8069_v59, 16 }
 0x1f3   : > { %11059 = vst [vmem:[#allocation47_spill] sm:$0xff] %v9923_v26  ;;  %v9933_v25 = vadd.f32 %v3950_v4, %v3100_v20  ;;  %v3101_v3 = vadd.f32 %v2974_v6, %v9552_v42  ;;  %v5639_v4 = vor.u32 %v5638_v37, %v9927_v35  ;;  %v6629_v20 = vrot.slane %v8144_v46, 5 }
 0x1f4   : > { %v2976_v13 = vpop.f32.mrf.mxu1  ;;  %v3954_v26 = vpop.f32.mrf.mxu0  ;;  %v5611_v10 = vsel %vm8828_vm5, %v5606_v7, %v9898_v29  ;;  %v6633_v40 = vrot.slane %v8146_v5, 5  ;;  %v5652_v56 = vrot.slane %v5650_v8, 5  ;;  %v5630_v59 = vrot.slane %v5629_v60, 4 }
 0x1f5   : > { %v9939_v48 = vadd.f32 %v3952_v23, %v3101_v3  ;;  %v3102_v0 = vadd.f32 %v2976_v13, %v9557_v9  ;;  %v5640_v13 = vrot.slane %v5639_v4, 4  ;;  %v9966_v5 = vsel %vm8816_vm4, %v6628_v57, %v6629_v20 }
 0x1f6   : > { %v2980_v42 = vpop.f32.mrf.mxu1  ;;  %v3958_v17 = vpop.f32.mrf.mxu0  ;;  %4791 = vmatmul.mubr.bf16.gmra.mxu1 %v7980_v52  ;;  %5402 = vmatmul.mubr.bf16.gmra.mxu0 %v8572_v47  ;;  %v5644_v52 = vrot.slane %v5642_v49, 5  ;;  %v8147_v47 = vld [vmem:[%s8772_s9 + $0x2c] sm:$0x1]  ;;  %v8191_v63 = vrot.slane %v8145_v44, 9  ;;  %v9968_v49 = vrot.slane %v5656_v33, 5  ;;  %v5635_v33 = vsel %vm8828_vm5, %v5630_v59, %v9927_v35 }
 0x1f7   : > { %v9947_v6 = vadd.f32 %v3954_v26, %v3102_v0  ;;  %v3103_v9 = vadd.f32 %v2980_v42, %v9566_v62  ;;  %4800 = vmatprep.mubr.bf16.mxu1 %v10971_v36  ;;  %5411 = vmatprep.mubr.bf16.mxu0 %v10971_v36  ;;  %v5621_v26 = vsel %vm8828_vm5, %v5616_v14, %v5620_v31  ;;  %v5649_v62 = vrot.slane %v5647_v34, 4  ;;  %v8070_v0 = vld [vmem:[%s8772_s9 + $0x38] sm:$0x1]  ;;  %v8579_v42 = vld [vmem:[%s8772_s9 + $0xcc] sm:$0xff]  }
 0x1f8   : > { %v2982_v37 = vpop.f32.mrf.mxu1  ;;  %v3960_v23 = vpop.f32.mrf.mxu0  ;;  %v5662_v31 = vrot.slane %v5660_v41, 4  ;;  %v6636_v8 = vrot.slane %v8147_v47, 5  ;;  %v9982_v41 = vld [vmem:[%s8772_s9 + $0x30] sm:$0xe]  ;;  %v8071_v47 = vld [vmem:[%s8772_s9 + $0x3c] sm:$0xf] }
 0x1f9   : > { %v9959_v3 = vadd.f32 %v3958_v17, %v3103_v9  ;;  %v3104_v46 = vadd.f32 %v2982_v37, %v9570_v30  ;;  %v6635_v30 = vrot.slane %v6633_v40, 4  ;;  %v8110_v17 = vcombine.low %v5611_v10, %v5621_v26 }
 0x1fa   : > { %v2984_v29 = vpop.f32.mrf.mxu1  ;;  %v3962_v7 = vpop.f32.mrf.mxu0  ;;  %v5653_v9 = vor.u32 %v5652_v56, %v5649_v62  ;;  %v5666_v37 = vshll.u32 %v8070_v0, 16  ;;  %v11060_v10 = vcombine.low %v9910_v24, %v9914_v45  ;;  %v9991_v26 = vsel %vm8816_vm4, %v8191_v63, %v6633_v40  ;;  %v8072_v63 = vld [vmem:[%s8772_s9 + $0x40] sm:$0xf]  ;;  %v8074_v0 = vld [vmem:[%s8772_s9 + $0x48] sm:$0xf] }
 0x1fb   : > { %v9970_v14 = vadd.f32 %v3960_v23, %v3104_v46  ;;  %v3105_v34 = vadd.f32 %v2984_v29, %v9574_v39  ;;  %v5645_v39 = vsel %vm8828_vm5, %v5640_v13, %v5644_v52  ;;  %v5663_v35 = vor.u32 %v5662_v31, %v9968_v49  ;;  %v9995_v52 = vld [vmem:[%s8772_s9 + $0x34] sm:$0xf]  ;;  %v8075_v31 = vld [vmem:[%s8772_s9 + $0x4c] sm:$0xf] }
 0x1fc   : > { %v2986_v60 = vpop.f32.mrf.mxu1  ;;  %v3964_v4 = vpop.f32.mrf.mxu0  ;;  %v10005_v45 = vsel %vm8816_vm4, %v6635_v30, %v6636_v8  ;;  %v10008_v56 = vcombine.low %v5635_v33, %v5645_v39  ;;  %v5654_v46 = vrot.slane %v5653_v9, 4  ;;  %v5668_v59 = vrot.slane %v5666_v37, 5 }
 0x1fd   : > { %v9973_v57 = vadd.f32 %v3962_v7, %v3105_v34  ;;  %v3106_v20 = vadd.f32 %v2986_v60, %v9579_v50  ;;  %v8206_v50 = vcombine.low %v9945_v38, %v9966_v5  ;;  %v8192_v13 = vrot.slane %v9982_v41, 9  ;;  %v8150_v7 = vld [vmem:[%s8772_s9 + $0x38] sm:$0x1] }
 0x1fe   : > { %v2990_v44 = vpop.f32.mrf.mxu1  ;;  %v3968_v23 = vpop.f32.mrf.mxu0  ;;  %4801 = vmatmul.mubr.bf16.gmra.mxu1 %v11060_v10  ;;  %5412 = vmatmul.mubr.bf16.gmra.mxu0 %v8579_v42  ;;  %v6640_v42 = vrot.slane %v9995_v52, 5  ;;  %v5671_v5 = vshrl.u32 %v8071_v47, 16  ;;  %v5664_v8 = vrot.slane %v5663_v35, 4  ;;  %v5674_v60 = vshll.u32 %v8071_v47, 16 }
 0x1ff   : > { %v9998_v62 = vadd.f32 %v3964_v4, %v3106_v20  ;;  %v3107_v24 = vadd.f32 %v2990_v44, %v9588_v27  ;;  %6239 = vmatprep.mubr.bf16.mxu1 %v10971_v36  ;;  %6993 = vmatprep.mubr.bf16.mxu0 %v10971_v36  ;;  %v5680_v4 = vshll.u32 %v8072_v63, 16  ;;  %v5684_v9 = vshrl.u32 %v8072_v63, 16  ;;  %v8073_v63 = vld [vmem:[%s8772_s9 + $0x44] sm:$0x1] }
 0x200   : > { %v2992_v38 = vpop.f32.mrf.mxu1  ;;  %v3970_v40 = vpop.f32.mrf.mxu0  ;;  %v5695_v33 = vshrl.u32 %v8074_v0, 16  ;;  %v5698_v39 = vshll.u32 %v8074_v0, 16  ;;  %v5659_v44 = vsel %vm8828_vm5, %v5654_v46, %v9968_v49  ;;  %v5704_v10 = vshll.u32 %v8075_v31, 16 }
 0x201   : > { %v10012_v27 = vadd.f32 %v3968_v23, %v3107_v24  ;;  %v3108_v29 = vadd.f32 %v2992_v38, %v9592_v22  ;;  %v6643_v23 = vrot.slane %v8150_v7, 5  ;;  %v5708_v52 = vshrl.u32 %v8075_v31, 16 }
 0x202   : > { %v2994_v34 = vpop.f32.mrf.mxu1  ;;  %v3972_v30 = vpop.f32.mrf.mxu0  ;;  %v6642_v24 = vrot.slane %v6640_v42, 4  ;;  %v5673_v38 = vrot.slane %v5671_v5, 4  ;;  %v5669_v0 = vsel %vm8828_vm5, %v5664_v8, %v5668_v59  ;;  %v5676_v49 = vrot.slane %v5674_v60, 5  ;;  %v10038_v5 = vld [vmem:[%s8772_s9 + $0x40] sm:$0xf] }
 0x203   : > { %v10018_v37 = vadd.f32 %v3970_v40, %v3108_v29  ;;  %v3109_v20 = vadd.f32 %v2994_v34, %v9596_v12  ;;  %v10030_v46 = vrot.slane %v5680_v4, 5  ;;  %v5686_v29 = vrot.slane %v5684_v9, 4  ;;  %v8076_v8 = vld [vmem:[%s8772_s9 + $0x50] sm:$0x1] }
 0x204   : > { %v2996_v41 = vpop.f32.mrf.mxu1  ;;  %v3974_v22 = vpop.f32.mrf.mxu0  ;;  %v8207_v59 = vcombine.low %v9991_v26, %v10005_v45  ;;  %v10043_v60 = vrot.slane %v5704_v10, 5  ;;  %v8151_v26 = vld [vmem:[%s8772_s9 + $0x3c] sm:$0xe] }
 0x205   : > { %v10024_v35 = vadd.f32 %v3972_v30, %v3109_v20  ;;  %v3110_v47 = vadd.f32 %v2996_v41, %v9601_v18  ;;  %v5690_v30 = vshll.u32 %v8073_v63, 16  ;;  %v10050_v20 = vsel %vm8816_vm4, %v8192_v13, %v6640_v42  ;;  %v11062_v13 = vld [vmem:[#allocation39_spill] sm:$0xff]  ;;  %v8153_v63 = vld [vmem:[%s8772_s9 + $0x44] sm:$0x1] }
 0x206   : > { %v3000_v12 = vpop.f32.mrf.mxu1  ;;  %v3978_v40 = vpop.f32.mrf.mxu0  ;;  %6240 = vmatmul.mubr.bf16.vlgmr.msra.gmra.mxu1 %v8110_v17  ;;  %6994 = vmatmul.mubr.bf16.vlgmr.msra.gmra.mxu0 %v8206_v50  ;;  %v5697_v17 = vrot.slane %v5695_v33, 4  ;;  %v5700_v50 = vrot.slane %v5698_v39, 5  ;;  %v10054_v33 = vsel %vm8816_vm4, %v6642_v24, %v6643_v23  ;;  %v10057_v41 = vcombine.low %v5659_v44, %v5669_v0 }
 0x207   : > { %v10032_v7 = vadd.f32 %v3974_v22, %v3110_v47  ;;  %v3111_v18 = vadd.f32 %v3000_v12, %v9610_v58  ;;  %6249 = vmatprep.mubr.bf16.mxu1 %v10971_v36  ;;  %7003 = vmatprep.mubr.bf16.mxu0 %v10971_v36  ;;  %v5710_v58 = vrot.slane %v5708_v52, 4  ;;  %v5677_v22 = vor.u32 %v5676_v49, %v5673_v38 }
 0x208   : > { %v3002_v31 = vpop.f32.mrf.mxu1  ;;  %v3980_v34 = vpop.f32.mrf.mxu0  ;;  %v5687_v10 = vor.u32 %v5686_v29, %v10030_v46  ;;  %v6647_v52 = vrot.slane %v10038_v5, 5  ;;  %v5701_v23 = vor.u32 %v5700_v50, %v5697_v17  ;;  %v5714_v24 = vshll.u32 %v8076_v8, 16 }
 0x209   : > { %v10045_v4 = vadd.f32 %v3978_v40, %v3111_v18  ;;  %v3112_v9 = vadd.f32 %v3002_v31, %v9614_v2  ;;  %v8077_v2 = vld [vmem:[%s8772_s9 + $0x54] sm:$0xf]  ;;  %v8208_v44 = vcombine.low %v10050_v20, %v10054_v33  ;;  %v5692_v38 = vrot.slane %v5690_v30, 5  ;;  %v11064_v18 = vld [vmem:[#allocation41_spill] sm:$0xff]  ;;  %v10073_v31 = vld [vmem:[%s8772_s9 + $0x4c] sm:$0xf] }
 0x20a   : > { %v3004_v45 = vpop.f32.mrf.mxu1  ;;  %v3982_v39 = vpop.f32.mrf.mxu0  ;;  %v8193_v0 = vrot.slane %v8151_v26, 9  ;;  %v5711_v49 = vor.u32 %v5710_v58, %v10043_v60  ;;  %v5722_v17 = vshll.u32 %v8077_v2, 16  ;;  %v5678_v30 = vrot.slane %v5677_v22, 4 }
 0x20b   : > { %v10062_v47 = vadd.f32 %v3980_v34, %v3112_v9  ;;  %v3113_v42 = vadd.f32 %v3004_v45, %v11062_v13  ;;  %v8078_v34 = vld [vmem:[%s8772_s9 + $0x58] sm:$0xf]  ;;  %v5719_v9 = vshrl.u32 %v8077_v2, 16  ;;  %v5688_v20 = vrot.slane %v5687_v10, 4  ;;  %v11066_v45 = vld [vmem:[#allocation9_spill] sm:$0xff] }
 0x20c   : > { %v3006_v12 = vpop.f32.mrf.mxu1  ;;  %v3984_v40 = vpop.f32.mrf.mxu0  ;;  %v6649_v33 = vrot.slane %v6647_v52, 4  ;;  %v6650_v58 = vrot.slane %v8153_v63, 5  ;;  %v5702_v13 = vrot.slane %v5701_v23, 4  ;;  %v5716_v2 = vrot.slane %v5714_v24, 5 }
 0x20d   : > { %11061 = vst [vmem:[#allocation48_spill] sm:$0xff] %v10062_v47  ;;  %v10069_v29 = vadd.f32 %v3982_v39, %v3113_v42  ;;  %v3114_v5 = vadd.f32 %v3006_v12, %v11064_v18  ;;  %v8154_v42 = vld [vmem:[%s8772_s9 + $0x48] sm:$0xe]  ;;  %v5728_v22 = vshll.u32 %v8078_v34, 16  ;;  %v5732_v10 = vshrl.u32 %v8078_v34, 16 }
 0x20e   : > { %v3010_v50 = vpop.f32.mrf.mxu1  ;;  %v3988_v8 = vpop.f32.mrf.mxu0  ;;  %6250 = vmatmul.mubr.bf16.gmra.mxu1 %v10008_v56  ;;  %7004 = vmatmul.mubr.bf16.gmra.mxu0 %v8207_v59  ;;  %v5712_v56 = vrot.slane %v5711_v49, 4  ;;  %v6654_v59 = vrot.slane %v10073_v31, 5  ;;  %v5683_v23 = vsel %vm8828_vm5, %v5678_v30, %v10030_v46  ;;  %v5693_v24 = vsel %vm8828_vm5, %v5688_v20, %v5692_v38 }
 0x20f   : > { %11063 = vst [vmem:[#allocation39_spill] sm:$0xff] %v10069_v29  ;;  %v10077_v26 = vadd.f32 %v3984_v40, %v3114_v5  ;;  %v3115_v39 = vadd.f32 %v3010_v50, %v11066_v45  ;;  %6259 = vmatprep.mubr.bf16.mxu1 %v10971_v36  ;;  %7013 = vmatprep.mubr.bf16.mxu0 %v10971_v36  ;;  %v8156_v29 = vld [vmem:[%s8772_s9 + $0x50] sm:$0x1]  ;;  %v11068_v40 = vld [vmem:[#allocation10_spill] sm:$0xff]  ;;  %v5721_v50 = vrot.slane %v5719_v9, 4  ;;  %v5724_v45 = vrot.slane %v5722_v17, 5 }
 0x210   : > { %v3012_v12 = vpop.f32.mrf.mxu1  ;;  %v3990_v18 = vpop.f32.mrf.mxu0  ;;  %v10095_v49 = vsel %vm8816_vm4, %v8193_v0, %v6647_v52  ;;  %v10099_v31 = vsel %vm8816_vm4, %v6649_v33, %v6650_v58  ;;  %v11070_v9 = vld [vmem:[#allocation11_spill] sm:$0xff]  ;;  %v5707_v38 = vsel %vm8828_vm5, %v5702_v13, %v10043_v60  ;;  %v6656_v52 = vrot.slane %v6654_v59, 4  ;;  %v11072_v33 = vld [vmem:[#allocation12_spill] sm:$0xff] }
 0x211   : > { %11065 = vst [vmem:[#allocation41_spill] sm:$0xff] %v10077_v26  ;;  %v10085_v63 = vadd.f32 %v3988_v8, %v3115_v39  ;;  %v3116_v5 = vadd.f32 %v3012_v12, %v11068_v40  ;;  %v8194_v8 = vrot.slane %v8154_v42, 9  ;;  %v6657_v39 = vrot.slane %v8156_v29, 5  ;;  %v8079_v12 = vld [vmem:[%s8772_s9 + $0x5c] sm:$0x1] }
 0x212   : > { %v3014_v26 = vpop.f32.mrf.mxu1  ;;  %v3992_v47 = vpop.f32.mrf.mxu0  ;;  %v10108_v0 = vrot.slane %v5728_v22, 5  ;;  %v5734_v30 = vrot.slane %v5732_v10, 4  ;;  %v5717_v29 = vsel %vm8828_vm5, %v5712_v56, %v5716_v2  ;;  %v8113_v60 = vcombine.low %v5683_v23, %v5693_v24  ;;  %v8158_v22 = vld [vmem:[%s8772_s9 + $0x58] sm:$0xf]  ;;  %v8157_v56 = vld [vmem:[%s8772_s9 + $0x54] sm:$0xe] }
 0x213   : > { %11067 = vst [vmem:[#allocation9_spill] sm:$0xff] %v10085_v63  ;;  %v10101_v34 = vadd.f32 %v3990_v18, %v3116_v5  ;;  %v3117_v17 = vadd.f32 %v3014_v26, %v11070_v9  ;;  %v5725_v26 = vor.u32 %v5724_v45, %v5721_v50  ;;  %v5738_v13 = vshll.u32 %v8079_v12, 16 }
 0x214   : > { %v3016_v40 = vpop.f32.mrf.mxu1  ;;  %v3994_v46 = vpop.f32.mrf.mxu0  ;;  %v8209_v2 = vcombine.low %v10095_v49, %v10099_v31  ;;  %v10126_v45 = vcombine.low %v5707_v38, %v5717_v29  ;;  %v10130_v23 = vsel %vm8816_vm4, %v8194_v8, %v6654_v59  ;;  %v10134_v24 = vsel %vm8816_vm4, %v6656_v52, %v6657_v39  ;;  %v11076_v49 = vld [vmem:[#allocation14_spill] sm:$0xff] }
 0x215   : > { %11069 = vst [vmem:[#allocation10_spill] sm:$0xff] %v10101_v34  ;;  %v10110_v20 = vadd.f32 %v3992_v47, %v3117_v17  ;;  %v3118_v58 = vadd.f32 %v3016_v40, %v11072_v33  ;;  %v11074_v47 = vld [vmem:[#allocation13_spill] sm:$0xff]  ;;  %v5735_v9 = vor.u32 %v5734_v30, %v10108_v0  ;;  %v10141_v40 = vrot.slane %v5725_v26, 4  ;;  %v8083_v33 = vld [vmem:[%s8772_s9 + $0x6c] sm:$0xf]  ;;  %v11078_v30 = vld [vmem:[#allocation15_spill] sm:$0xff] }
 0x216   : > { %v3020_v42 = vpop.f32.mrf.mxu1  ;;  %v3998_v18 = vpop.f32.mrf.mxu0  ;;  %6260 = vmatmul.mubr.bf16.gmra.mxu1 %v10057_v41  ;;  %7014 = vmatmul.mubr.bf16.gmra.mxu0 %v8208_v44  ;;  %v8080_v41 = vld [vmem:[%s8772_s9 + $0x60] sm:$0xf]  ;;  %v8081_v17 = vld [vmem:[%s8772_s9 + $0x64] sm:$0xf]  ;;  %v6661_v38 = vrot.slane %v8158_v22, 5  ;;  %v5740_v8 = vrot.slane %v5738_v13, 5 }
 0x217   : > { %11071 = vst [vmem:[#allocation11_spill] sm:$0xff] %v10110_v20  ;;  %v10117_v10 = vadd.f32 %v3994_v46, %v3118_v58  ;;  %v3119_v5 = vadd.f32 %v3020_v42, %v11074_v47  ;;  %6269 = vmatprep.mubr.bf16.mxu1 %v10971_v36  ;;  %7023 = vmatprep.mubr.bf16.mxu0 %v10971_v36  ;;  %v8159_v46 = vld [vmem:[%s8772_s9 + $0x5c] sm:$0x1]  ;;  %v8195_v29 = vrot.slane %v8157_v56, 9  ;;  %v5743_v42 = vshrl.u32 %v8080_v41, 16 }
 0x218   : > { %v3022_v44 = vpop.f32.mrf.mxu1  ;;  %v4000_v50 = vpop.f32.mrf.mxu0  ;;  %v5746_v39 = vshll.u32 %v8080_v41, 16  ;;  %v5767_v22 = vshrl.u32 %v8083_v33, 16  ;;  %v5770_v20 = vshll.u32 %v8083_v33, 16  ;;  %v11080_v13 = vld [vmem:[#allocation16_spill] sm:$0xff]  ;;  %v5731_v41 = vsel %vm8828_vm5, %v10141_v40, %v10108_v0 }
 0x219   : > { %11073 = vst [vmem:[#allocation12_spill] sm:$0xff] %v10117_v10  ;;  %v10138_v12 = vadd.f32 %v3998_v18, %v3119_v5  ;;  %v3120_v31 = vadd.f32 %v3022_v44, %v11076_v49  ;;  %v5752_v18 = vshll.u32 %v8081_v17, 16  ;;  %v5756_v5 = vshrl.u32 %v8081_v17, 16 }
 0x21a   : > { %v3024_v58 = vpop.f32.mrf.mxu1  ;;  %v4002_v59 = vpop.f32.mrf.mxu0  ;;  %v5736_v49 = vrot.slane %v5735_v9, 4  ;;  %v6664_v10 = vrot.slane %v8159_v46, 5  ;;  %v5745_v9 = vrot.slane %v5743_v42, 4  ;;  %v5748_v46 = vrot.slane %v5746_v39, 5  ;;  %v10171_v39 = vld [vmem:[%s8772_s9 + $0x64] sm:$0xf] }
 0x21b   : > { %11075 = vst [vmem:[#allocation13_spill] sm:$0xff] %v10138_v12  ;;  %v10145_v52 = vadd.f32 %v4000_v50, %v3120_v31  ;;  %v3121_v47 = vadd.f32 %v3024_v58, %v11078_v30  ;;  %v8084_v12 = vld [vmem:[%s8772_s9 + $0x70] sm:$0xf]  ;;  %v6663_v50 = vrot.slane %v6661_v38, 4  ;;  %v8082_v58 = vld [vmem:[%s8772_s9 + $0x68] sm:$0x1] }
 0x21c   : > { %v3026_v44 = vpop.f32.mrf.mxu1  ;;  %v4004_v26 = vpop.f32.mrf.mxu0  ;;  %v5776_v30 = vshll.u32 %v8084_v12, 16  ;;  %v5780_v33 = vshrl.u32 %v8084_v12, 16  ;;  %v10162_v0 = vrot.slane %v5752_v18, 5  ;;  %v5758_v40 = vrot.slane %v5756_v5, 4 }
 0x21d   : > { %11077 = vst [vmem:[#allocation14_spill] sm:$0xff] %v10145_v52  ;;  %v10149_v34 = vadd.f32 %v4002_v59, %v3121_v47  ;;  %v3122_v56 = vadd.f32 %v3026_v44, %v11080_v13  ;;  %v5741_v42 = vsel %vm8828_vm5, %v5736_v49, %v5740_v8  ;;  %v10168_v12 = vsel %vm8816_vm4, %v8195_v29, %v6661_v38  ;;  %v8085_v8 = vld [vmem:[%s8772_s9 + $0x74] sm:$0x1] }
 0x21e   : > { %v3030_v31 = vpop.f32.mrf.mxu1  ;;  %v4008_v17 = vpop.f32.mrf.mxu0  ;;  %6270 = vmatmul.mubr.bf16.gmra.mxu1 %v8113_v60  ;;  %7024 = vmatmul.mubr.bf16.gmra.mxu0 %v8209_v2  ;;  %v5772_v44 = vrot.slane %v5770_v20, 5  ;;  %v10178_v5 = vsel %vm8816_vm4, %v6663_v50, %v6664_v10  ;;  %v5762_v13 = vshll.u32 %v8082_v58, 16  ;;  %v8210_v38 = vcombine.low %v10130_v23, %v10134_v24  ;;  %v8162_v50 = vld [vmem:[%s8772_s9 + $0x68] sm:$0x1] }
 0x21f   : > { %11079 = vst [vmem:[#allocation15_spill] sm:$0xff] %v10149_v34  ;;  %v10157_v59 = vadd.f32 %v4004_v26, %v3122_v56  ;;  %v3123_v47 = vadd.f32 %v3030_v31, %v9679_v55  ;;  %6279 = vmatprep.mubr.bf16.mxu1 %v10971_v36  ;;  %7033 = vmatprep.mubr.bf16.mxu0 %v10971_v36  ;;  %v5769_v55 = vrot.slane %v5767_v22, 4  ;;  %v8160_v22 = vld [vmem:[%s8772_s9 + $0x60] sm:$0xe]  ;;  %v10184_v20 = vrot.slane %v5776_v30, 5 }
 0x220   : > { %v3032_v60 = vpop.f32.mrf.mxu1  ;;  %v4010_v2 = vpop.f32.mrf.mxu0  ;;  %v5749_v29 = vor.u32 %v5748_v46, %v5745_v9  ;;  %v5782_v31 = vrot.slane %v5780_v33, 4  ;;  %v5759_v10 = vor.u32 %v5758_v40, %v10162_v0  ;;  %v6668_v58 = vrot.slane %v10171_v39, 5  ;;  %v11086_v33 = vld [vmem:[#allocation18_spill] sm:$0xff] }
 0x221   : > { %11081 = vst [vmem:[#allocation16_spill] sm:$0xff] %v10157_v59  ;;  %v10173_v26 = vadd.f32 %v4008_v17, %v3123_v47  ;;  %v3124_v18 = vadd.f32 %v3032_v60, %v9683_v16  ;;  %v11084_v16 = vld [vmem:[#allocation17_spill] sm:$0xff]  ;;  %v8164_v60 = vld [vmem:[%s8772_s9 + $0x70] sm:$0xf]  ;;  %v8115_v23 = vcombine.low %v5731_v41, %v5741_v42  ;;  %v8211_v24 = vcombine.low %v10168_v12, %v10178_v5 }
 0x222   : > { %v3034_v49 = vpop.f32.mrf.mxu1  ;;  %v4012_v56 = vpop.f32.mrf.mxu0  ;;  %v5773_v9 = vor.u32 %v5772_v44, %v5769_v55  ;;  %v5786_v46 = vshll.u32 %v8085_v8, 16  ;;  %v8196_v40 = vrot.slane %v8160_v22, 9  ;;  %v5750_v41 = vrot.slane %v5749_v29, 4  ;;  %v8086_v44 = vld [vmem:[%s8772_s9 + $0x78] sm:$0xf] }
 0x223   : > { %11082 = vst [vmem:[#allocation49_spill] sm:$0xff] %v10173_v26  ;;  %v10186_v17 = vadd.f32 %v4010_v2, %v3124_v18  ;;  %v3125_v47 = vadd.f32 %v3034_v49, %v11084_v16  ;;  %v10198_v18 = vrot.slane %v5762_v13, 5  ;;  %v8163_v49 = vld [vmem:[%s8772_s9 + $0x6c] sm:$0xe]  ;;  %v8165_v16 = vld [vmem:[%s8772_s9 + $0x74] sm:$0x1]  ;;  %v5783_v12 = vor.u32 %v5782_v31, %v10184_v20 }
 0x224   : > { %v3036_v26 = vpop.f32.mrf.mxu1  ;;  %v4014_v59 = vpop.f32.mrf.mxu0  ;;  %v6671_v42 = vrot.slane %v8162_v50, 5  ;;  %v6675_v55 = vrot.slane %v8164_v60, 5  ;;  %v5760_v8 = vrot.slane %v5759_v10, 4  ;;  %v8087_v22 = vld [vmem:[%s8772_s9 + $0x7c] sm:$0xf]  ;;  %v5788_v29 = vrot.slane %v5786_v46, 5 }
 0x225   : > { %11083 = vst [vmem:[#allocation50_spill] sm:$0xff] %v10186_v17  ;;  %v10195_v30 = vadd.f32 %v4012_v56, %v3125_v47  ;;  %v3126_v2 = vadd.f32 %v3036_v26, %v11086_v33  ;;  %v11088_v26 = vld [vmem:[#allocation19_spill] sm:$0xff]  ;;  %v6670_v56 = vrot.slane %v6668_v58, 4  ;;  %v8197_v50 = vrot.slane %v8163_v49, 9  ;;  %v11089_v60 = vld [vmem:[#allocation20_spill] sm:$0xff] }
 0x226   : > { %v3040_v39 = vpop.f32.mrf.mxu1  ;;  %v4018_v17 = vpop.f32.mrf.mxu0  ;;  %6280 = vmatmul.mubr.bf16.gmra.mxu1 %v10126_v45  ;;  %7034 = vmatmul.mubr.bf16.gmra.mxu0 %v8210_v38  ;;  %v5774_v38 = vrot.slane %v5773_v9, 4  ;;  %v6678_v33 = vrot.slane %v8165_v16, 5  ;;  %v6677_v34 = vrot.slane %v6675_v55, 4  ;;  %v5800_v10 = vshll.u32 %v8087_v22, 16  ;;  %v11090_v9 = vld [vmem:[#allocation21_spill] sm:$0xff] }
 0x227   : > { %11085 = vst [vmem:[#allocation17_spill] sm:$0xff] %v10195_v30  ;;  %v10205_v5 = vadd.f32 %v4014_v59, %v3126_v2  ;;  %v3127_v13 = vadd.f32 %v3040_v39, %v11088_v26  ;;  %6289 = vmatprep.mubr.bf16.mxu1 %v10971_v36  ;;  %7043 = vmatprep.mubr.bf16.mxu0 %v10971_v36  ;;  %v5791_v2 = vshrl.u32 %v8086_v44, 16  ;;  %v5784_v30 = vrot.slane %v5783_v12, 4 }
 0x228   : > { %v3042_v47 = vpop.f32.mrf.mxu1  ;;  %v4020_v45 = vpop.f32.mrf.mxu0  ;;  %v5804_v52 = vshrl.u32 %v8087_v22, 16  ;;  %v10222_v49 = vsel %vm8816_vm4, %v8196_v40, %v6668_v58  ;;  %v5765_v12 = vsel %vm8828_vm5, %v5760_v8, %v10198_v18  ;;  %v5779_v22 = vsel %vm8828_vm5, %v5774_v38, %v10184_v20  ;;  %v11092_v40 = vld [vmem:[#allocation22_spill] sm:$0xff] }
 0x229   : > { %11087 = vst [vmem:[#allocation18_spill] sm:$0xff] %v10205_v5  ;;  %v10211_v31 = vadd.f32 %v4018_v17, %v3127_v13  ;;  %v3128_v59 = vadd.f32 %v3042_v47, %v11089_v60  ;;  %v5794_v5 = vshll.u32 %v8086_v44, 16  ;;  %v5755_v17 = vsel %vm8828_vm5, %v5750_v41, %v10162_v0  ;;  %v8089_v41 = vld [vmem:[%s8772_s9 + $0x84] sm:$0xf] }
 0x22a   : > { %v3044_v39 = vpop.f32.mrf.mxu1  ;;  %v4022_v26 = vpop.f32.mrf.mxu0  ;;  %v6672_v13 = vsel %vm8816_vm4, %v6670_v56, %v6671_v42  ;;  %v10234_v0 = vsel %vm8816_vm4, %v8197_v50, %v6675_v55  ;;  %v5793_v60 = vrot.slane %v5791_v2, 4  ;;  %v5789_v20 = vsel %vm8828_vm5, %v5784_v30, %v5788_v29  ;;  %v11094_v50 = vld [vmem:[#allocation23_spill] sm:$0xff] }
 0x22b   : > { %v10214_v63 = vadd.f32 %v4020_v45, %v3128_v59  ;;  %v3129_v46 = vadd.f32 %v3044_v39, %v11090_v9  ;;  %v8088_v45 = vld [vmem:[%s8772_s9 + $0x80] sm:$0x1]  ;;  %v5796_v18 = vrot.slane %v5794_v5, 5  ;;  %v10245_v42 = vsel %vm8816_vm4, %v6677_v34, %v6678_v33 }
 0x22c   : > { %v3046_v16 = vpop.f32.mrf.mxu1  ;;  %v4024_v44 = vpop.f32.mrf.mxu0  ;;  %v10247_v55 = vrot.slane %v5800_v10, 5  ;;  %v5806_v56 = vrot.slane %v5804_v52, 4  ;;  %v5818_v30 = vshll.u32 %v8089_v41, 16  ;;  %v8116_v33 = vcombine.low %v5755_v17, %v5765_v12  ;;  %v11096_v52 = vld [vmem:[#allocation24_spill] sm:$0xff]  ;;  %v8168_v12 = vld [vmem:[%s8772_s9 + $0x80] sm:$0x1] }
 0x22d   : > { %v10237_v58 = vadd.f32 %v4022_v26, %v3129_v46  ;;  %v3130_v47 = vadd.f32 %v3046_v16, %v11092_v40  ;;  %v5810_v2 = vshll.u32 %v8088_v45, 16  ;;  %v8212_v10 = vcombine.low %v10222_v49, %v6672_v13  ;;  %v8166_v46 = vld [vmem:[%s8772_s9 + $0x78] sm:$0xe]  ;;  %v8090_v16 = vld [vmem:[%s8772_s9 + $0x88] sm:$0xf] }
 0x22e   : > { %v3050_v8 = vpop.f32.mrf.mxu1  ;;  %v4028_v59 = vpop.f32.mrf.mxu0  ;;  %6290 = vmatmul.mubr.bf16.gmra.mxu1 %v8115_v23  ;;  %7044 = vmatmul.mubr.bf16.gmra.mxu0 %v8211_v24  ;;  %v8167_v23 = vld [vmem:[%s8772_s9 + $0x7c] sm:$0xf]  ;;  %v5815_v24 = vshrl.u32 %v8089_v41, 16  ;;  %v5797_v9 = vor.u32 %v5796_v18, %v5793_v60  ;;  %v5807_v17 = vor.u32 %v5806_v56, %v10247_v55  ;;  %v5820_v13 = vrot.slane %v5818_v30, 5  ;;  %v8092_v60 = vld [vmem:[%s8772_s9 + $0x90] sm:$0xf] }
 0x22f   : > { %11091 = vst [vmem:[#allocation19_spill] sm:$0xff] %v10237_v58  ;;  %v10249_v38 = vadd.f32 %v4024_v44, %v3130_v47  ;;  %v3131_v5 = vadd.f32 %v3050_v8, %v11094_v50  ;;  %6299 = vmatprep.mubr.bf16.mxu1 %v10971_v36  ;;  %7053 = vmatprep.mubr.bf16.mxu0 %v10971_v36  ;;  %v6682_v45 = vrot.slane %v8167_v23, 5  ;;  %v11100_v41 = vld [vmem:[#allocation26_spill] sm:$0xff]  ;;  %v6685_v23 = vrot.slane %v8168_v12, 5  ;;  %v8093_v58 = vld [vmem:[%s8772_s9 + $0x94] sm:$0xf] }
 0x230   : > { %v3052_v29 = vpop.f32.mrf.mxu1  ;;  %v4030_v34 = vpop.f32.mrf.mxu0  ;;  %v10261_v47 = vcombine.low %v5779_v22, %v5789_v20  ;;  %v5817_v49 = vrot.slane %v5815_v24, 4  ;;  %v8198_v22 = vrot.slane %v8166_v46, 9  ;;  %v5824_v20 = vshll.u32 %v8090_v16, 16  ;;  %v11102_v46 = vld [vmem:[#allocation27_spill] sm:$0xff]  ;;  %v8091_v12 = vld [vmem:[%s8772_s9 + $0x8c] sm:$0x1] }
 0x231   : > { %11093 = vst [vmem:[#allocation20_spill] sm:$0xff] %v10249_v38  ;;  %v10255_v39 = vadd.f32 %v4028_v59, %v3131_v5  ;;  %v3132_v26 = vadd.f32 %v3052_v29, %v11096_v52  ;;  %v11098_v59 = vld [vmem:[#allocation25_spill] sm:$0xff]  ;;  %v5812_v29 = vrot.slane %v5810_v2, 5  ;;  %v5828_v52 = vshrl.u32 %v8090_v16, 16 }
 0x232   : > { %v3054_v44 = vpop.f32.mrf.mxu1  ;;  %v4032_v40 = vpop.f32.mrf.mxu0  ;;  %v5798_v38 = vrot.slane %v5797_v9, 4  ;;  %v5808_v24 = vrot.slane %v5807_v17, 4  ;;  %v6684_v30 = vrot.slane %v6682_v45, 4  ;;  %v5821_v9 = vor.u32 %v5820_v13, %v5817_v49 }
 0x233   : > { %11095 = vst [vmem:[#allocation21_spill] sm:$0xff] %v10255_v39  ;;  %v10267_v8 = vadd.f32 %v4030_v34, %v3132_v26  ;;  %v3133_v50 = vadd.f32 %v3054_v44, %v11098_v59  ;;  %v5839_v44 = vshrl.u32 %v8092_v60, 16  ;;  %v5842_v59 = vshll.u32 %v8092_v60, 16 }
 0x234   : > { %v3056_v18 = vpop.f32.mrf.mxu1  ;;  %v4034_v5 = vpop.f32.mrf.mxu0  ;;  %v5852_v17 = vshrl.u32 %v8093_v58, 16  ;;  %v10291_v49 = vsel %vm8816_vm4, %v8198_v22, %v6682_v45  ;;  %v5834_v45 = vshll.u32 %v8091_v12, 16  ;;  %v8169_v22 = vld [vmem:[%s8772_s9 + $0x84] sm:$0xe] }
 0x235   : > { %11097 = vst [vmem:[#allocation22_spill] sm:$0xff] %v10267_v8  ;;  %v10271_v39 = vadd.f32 %v4032_v40, %v3133_v50  ;;  %v3134_v56 = vadd.f32 %v3056_v18, %v11100_v41  ;;  %v10281_v50 = vrot.slane %v5824_v20, 5  ;;  %v11104_v18 = vld [vmem:[#allocation28_spill] sm:$0xff] }
 0x236   : > { %v3060_v34 = vpop.f32.mrf.mxu1  ;;  %v4038_v26 = vpop.f32.mrf.mxu0  ;;  %6300 = vmatmul.mubr.bf16.gmra.mxu1 %v8116_v33  ;;  %7054 = vmatmul.mubr.bf16.gmra.mxu0 %v8212_v10  ;;  %v5830_v33 = vrot.slane %v5828_v52, 4  ;;  %v5848_v10 = vshll.u32 %v8093_v58, 16  ;;  %v5813_v52 = vsel %vm8828_vm5, %v5808_v24, %v5812_v29  ;;  %v10297_v58 = vsel %vm8816_vm4, %v6684_v30, %v6685_v23  ;;  %v10309_v24 = vld [vmem:[%s8772_s9 + $0x8c] sm:$0x1] }
 0x237   : > { %11099 = vst [vmem:[#allocation23_spill] sm:$0xff] %v10271_v39  ;;  %v10275_v2 = vadd.f32 %v4034_v5, %v3134_v56  ;;  %v3135_v16 = vadd.f32 %v3060_v34, %v11102_v46  ;;  %6309 = vmatprep.mubr.bf16.mxu1 %v10971_v36  ;;  %7063 = vmatprep.mubr.bf16.mxu0 %v10971_v36  ;;  %v8170_v34 = vld [vmem:[%s8772_s9 + $0x88] sm:$0xf]  ;;  %v5844_v46 = vrot.slane %v5842_v59, 5  ;;  %v5854_v30 = vrot.slane %v5852_v17, 4 }
 0x238   : > { %v3062_v40 = vpop.f32.mrf.mxu1  ;;  %v4040_v41 = vpop.f32.mrf.mxu0  ;;  %v5803_v56 = vsel %vm8828_vm5, %v5798_v38, %v10247_v55  ;;  %v11106_v55 = vld [vmem:[#allocation29_spill] sm:$0xff]  ;;  %v5831_v29 = vor.u32 %v5830_v33, %v10281_v50  ;;  %v10311_v23 = vrot.slane %v5848_v10, 5  ;;  %v11108_v59 = vld [vmem:[#allocation30_spill] sm:$0xff]  ;;  %v8214_v12 = vcombine.low %v10291_v49, %v10297_v58 }
 0x239   : > { %11101 = vst [vmem:[#allocation24_spill] sm:$0xff] %v10275_v2  ;;  %v10283_v60 = vadd.f32 %v4038_v26, %v3135_v16  ;;  %v3136_v5 = vadd.f32 %v3062_v40, %v11104_v18  ;;  %v5841_v26 = vrot.slane %v5839_v44, 4  ;;  %v8094_v40 = vld [vmem:[%s8772_s9 + $0x98] sm:$0x1]  ;;  %v10305_v2 = vrot.slane %v5821_v9, 4 }
 0x23a   : > { %v3064_v13 = vpop.f32.mrf.mxu1  ;;  %v4042_v20 = vpop.f32.mrf.mxu0  ;;  %v11109_v33 = vcombine.low %v10234_v0, %v10245_v42  ;;  %v8199_v10 = vrot.slane %v8169_v22, 9  ;;  %v6689_v17 = vrot.slane %v8170_v34, 5  ;;  %v6692_v0 = vrot.slane %v10309_v24, 5  ;;  %v8174_v22 = vld [vmem:[%s8772_s9 + $0x98] sm:$0x1] }
 0x23b   : > { %11103 = vst [vmem:[#allocation25_spill] sm:$0xff] %v10283_v60  ;;  %v10300_v16 = vadd.f32 %v4040_v41, %v3136_v5  ;;  %v3137_v38 = vadd.f32 %v3064_v13, %v11106_v55  ;;  %v8118_v5 = vcombine.low %v5803_v56, %v5813_v52  ;;  %v10319_v13 = vld [vmem:[%s8772_s9 + $0x94] sm:$0xf]  ;;  %v8095_v56 = vld [vmem:[%s8772_s9 + $0x9c] sm:$0xf]  ;;  %v5827_v34 = vsel %vm8828_vm5, %v10305_v2, %v10281_v50 }
 0x23c   : > { %v3066_v18 = vpop.f32.mrf.mxu1  ;;  %v4044_v60 = vpop.f32.mrf.mxu0  ;;  %v5863_v24 = vshrl.u32 %v8095_v56, 16  ;;  %v6691_v2 = vrot.slane %v6689_v17, 4 }
 0x23d   : > { %11105 = vst [vmem:[#allocation26_spill] sm:$0xff] %v10300_v16  ;;  %v10313_v44 = vadd.f32 %v4042_v20, %v3137_v38  ;;  %v3138_v41 = vadd.f32 %v3066_v18, %v11108_v59  ;;  %v5845_v20 = vor.u32 %v5844_v46, %v5841_v26  ;;  %v5858_v38 = vshll.u32 %v8094_v40, 16  ;;  %v8172_v46 = vld [vmem:[%s8772_s9 + $0x90] sm:$0xe]  ;;  %v8096_v18 = vld [vmem:[%s8772_s9 + $0xa0] sm:$0xf] }
 0x23e   : > { %v3070_v9 = vpop.f32.mrf.mxu1  ;;  %v4048_v55 = vpop.f32.mrf.mxu0  ;;  %6310 = vmatmul.mubr.bf16.gmra.mxu1 %v10261_v47  ;;  %7064 = vmatmul.mubr.bf16.gmra.mxu0 %v11109_v33  ;;  %v5836_v47 = vrot.slane %v5834_v45, 5  ;;  %v5832_v26 = vrot.slane %v5831_v29, 4  ;;  %v5866_v59 = vshll.u32 %v8095_v56, 16  ;;  %v10346_v33 = vsel %vm8816_vm4, %v8199_v10, %v6689_v17  ;;  %v11113_v10 = vld [vmem:[#allocation32_spill] sm:$0xff]  ;;  %v8097_v17 = vld [vmem:[%s8772_s9 + $0xa4] sm:$0x1] }
 0x23f   : > { %11107 = vst [vmem:[#allocation27_spill] sm:$0xff] %v10313_v44  ;;  %v10326_v52 = vadd.f32 %v4044_v60, %v3138_v41  ;;  %v3139_v49 = vadd.f32 %v3070_v9, %v9767_v51  ;;  %6319 = vmatprep.mubr.bf16.mxu1 %v10971_v36  ;;  %7073 = vmatprep.mubr.bf16.mxu0 %v10971_v36  ;;  %v6696_v51 = vrot.slane %v10319_v13, 5  ;;  %v5846_v50 = vrot.slane %v5845_v20, 4  ;;  %v11112_v13 = vld [vmem:[#allocation31_spill] sm:$0xff] }
 0x240   : > { %v3072_v42 = vpop.f32.mrf.mxu1  ;;  %v4050_v58 = vpop.f32.mrf.mxu0  ;;  %v5855_v60 = vor.u32 %v5854_v30, %v10311_v23  ;;  %v5860_v29 = vrot.slane %v5858_v38, 5  ;;  %v5872_v44 = vshll.u32 %v8096_v18, 16  ;;  %v5876_v16 = vshrl.u32 %v8096_v18, 16 }
 0x241   : > { %11110 = vst [vmem:[#allocation28_spill] sm:$0xff] %v10326_v52  ;;  %v10340_v40 = vadd.f32 %v4048_v55, %v3139_v49  ;;  %v3140_v45 = vadd.f32 %v3072_v42, %v9771_v61  ;;  %v8200_v49 = vrot.slane %v8172_v46, 9  ;;  %v6698_v56 = vrot.slane %v6696_v51, 4 }
 0x242   : > { %v3074_v41 = vpop.f32.mrf.mxu1  ;;  %v4052_v9 = vpop.f32.mrf.mxu0  ;;  %v5856_v52 = vrot.slane %v5855_v60, 4  ;;  %v5865_v20 = vrot.slane %v5863_v24, 4  ;;  %v5868_v38 = vrot.slane %v5866_v59, 5  ;;  %v5837_v46 = vsel %vm8828_vm5, %v5832_v26, %v5836_v47 }
 0x243   : > { %11111 = vst [vmem:[#allocation29_spill] sm:$0xff] %v10340_v40  ;;  %v10348_v30 = vadd.f32 %v4050_v58, %v3140_v45  ;;  %v3141_v55 = vadd.f32 %v3074_v41, %v11112_v13  ;;  %v6699_v40 = vrot.slane %v8174_v22, 5  ;;  %v6693_v60 = vsel %vm8816_vm4, %v6691_v2, %v6692_v0 }
 0x244   : > { %v3076_v61 = vpop.f32.mrf.mxu1  ;;  %v4054_v42 = vpop.f32.mrf.mxu0  ;;  %v5851_v22 = vsel %vm8828_vm5, %v5846_v50, %v10311_v23  ;;  %v5861_v26 = vsel %vm8828_vm5, %v5856_v52, %v5860_v29  ;;  %v10374_v23 = vrot.slane %v5872_v44, 5  ;;  %v8119_v13 = vcombine.low %v5827_v34, %v5837_v46  ;;  %v8176_v44 = vld [vmem:[%s8772_s9 + $0xa0] sm:$0xf] }
 0x245   : > { %v10351_v39 = vadd.f32 %v4052_v9, %v3141_v55  ;;  %v3142_v8 = vadd.f32 %v3076_v61, %v11113_v10  ;;  %v5869_v9 = vor.u32 %v5868_v38, %v5865_v20  ;;  %v8215_v52 = vcombine.low %v10346_v33, %v6693_v60  ;;  %v8101_v10 = vld [vmem:[%s8772_s9 + $0xb4] sm:$0xf] }
 0x246   : > { %v4652_v58 = vpop.f32.mrf.mxu1  ;;  %v5263_v45 = vpop.f32.mrf.mxu0  ;;  %6320 = vmatmul.mubr.bf16.gmra.mxu1 %v8118_v5  ;;  %7074 = vmatmul.mubr.bf16.gmra.mxu0 %v8214_v12  ;;  %v10369_v5 = vsel %vm8816_vm4, %v8200_v49, %v6696_v51  ;;  %v8098_v12 = vld [vmem:[%s8772_s9 + $0xa8] sm:$0xf]  ;;  %v10381_v51 = vsel %vm8816_vm4, %v6698_v56, %v6699_v40  ;;  %v8099_v49 = vld [vmem:[%s8772_s9 + $0xac] sm:$0xf] }
 0x247   : > { %v10362_v18 = vadd.f32 %v4054_v42, %v3142_v8  ;;  %v4811_v41 = vadd.f32 %v4652_v58, %v9789_v15  ;;  %6329 = vmatprep.mubr.bf16.mxu1 %v10971_v36  ;;  %7083 = vmatprep.mubr.bf16.mxu0 %v10971_v36  ;;  %v5878_v8 = vrot.slane %v5876_v16, 4  ;;  %v5882_v15 = vshll.u32 %v8097_v17, 16 }
 0x248   : > { %v4654_v47 = vpop.f32.mrf.mxu1  ;;  %v5265_v0 = vpop.f32.mrf.mxu0  ;;  %v5887_v29 = vshrl.u32 %v8098_v12, 16  ;;  %v5890_v16 = vshll.u32 %v8098_v12, 16  ;;  %v8120_v42 = vcombine.low %v5851_v22, %v5861_v26  ;;  %v8216_v56 = vcombine.low %v10369_v5, %v10381_v51  ;;  %v8177_v22 = vld [vmem:[%s8772_s9 + $0xa4] sm:$0x1] }
 0x249   : > { %v10376_v24 = vadd.f32 %v5263_v45, %v4811_v41  ;;  %v4812_v59 = vadd.f32 %v4654_v47, %v9793_v53  ;;  %v5879_v34 = vor.u32 %v5878_v8, %v10374_v23  ;;  %v10392_v33 = vrot.slane %v5882_v15, 5  ;;  %v8102_v45 = vld [vmem:[%s8772_s9 + $0xb8] sm:$0xf] }
 0x24a   : > { %v4656_v2 = vpop.f32.mrf.mxu1  ;;  %v5267_v50 = vpop.f32.mrf.mxu0  ;;  %v10398_v38 = vrot.slane %v5869_v9, 4  ;;  %v6703_v58 = vrot.slane %v8176_v44, 5  ;;  %v5889_v41 = vrot.slane %v5887_v29, 4  ;;  %v5892_v5 = vrot.slane %v5890_v16, 5 }
 0x24b   : > { %v10385_v55 = vadd.f32 %v5265_v0, %v4812_v59  ;;  %v4813_v53 = vadd.f32 %v4656_v2, %v9797_v54  ;;  %v8175_v54 = vld [vmem:[%s8772_s9 + $0x9c] sm:$0xe]  ;;  %v5896_v12 = vshll.u32 %v8099_v49, 16  ;;  %v5900_v47 = vshrl.u32 %v8099_v49, 16  ;;  %v8100_v49 = vld [vmem:[%s8772_s9 + $0xb0] sm:$0x1] }
 0x24c   : > { %v4658_v61 = vpop.f32.mrf.mxu1  ;;  %v5269_v40 = vpop.f32.mrf.mxu0  ;;  %v5914_v8 = vshll.u32 %v8101_v10, 16  ;;  %v5880_v51 = vrot.slane %v5879_v34, 4  ;;  %v8201_v9 = vrot.slane %v8175_v54, 9  ;;  %v5920_v2 = vshll.u32 %v8102_v45, 16 }
 0x24d   : > { %v10395_v17 = vadd.f32 %v5267_v50, %v4813_v53  ;;  %v4814_v20 = vadd.f32 %v4658_v61, %v9802_v1  ;;  %v5911_v1 = vshrl.u32 %v8101_v10, 16  ;;  %v5924_v50 = vshrl.u32 %v8102_v45, 16 }
 0x24e   : > { %v4662_v46 = vpop.f32.mrf.mxu1  ;;  %v5273_v60 = vpop.f32.mrf.mxu0  ;;  %6330 = vmatmul.mubr.bf16.gmra.mxu1 %v8119_v13  ;;  %7084 = vmatmul.mubr.bf16.gmra.mxu0 %v8215_v52  ;;  %v6705_v44 = vrot.slane %v6703_v58, 4  ;;  %v5875_v53 = vsel %vm8828_vm5, %v10398_v38, %v10374_v23  ;;  %v5893_v61 = vor.u32 %v5892_v5, %v5889_v41  ;;  %v5902_v34 = vrot.slane %v5900_v47, 4 }
 0x24f   : > { %v10403_v0 = vadd.f32 %v5269_v40, %v4814_v20  ;;  %v4815_v26 = vadd.f32 %v4662_v46, %v9811_v19  ;;  %6339 = vmatprep.mubr.bf16.mxu1 %v10971_v36  ;;  %7093 = vmatprep.mubr.bf16.mxu0 %v10971_v36  ;;  %v6706_v19 = vrot.slane %v8177_v22, 5  ;;  %v10416_v40 = vrot.slane %v5896_v12, 5  ;;  %v8103_v22 = vld [vmem:[%s8772_s9 + $0xbc] sm:$0x1] }
 0x250   : > { %v4664_v15 = vpop.f32.mrf.mxu1  ;;  %v5275_v59 = vpop.f32.mrf.mxu0  ;;  %v5913_v54 = vrot.slane %v5911_v1, 4  ;;  %v5916_v45 = vrot.slane %v5914_v8, 5  ;;  %v5885_v23 = vsel %vm8828_vm5, %v5880_v51, %v10392_v33  ;;  %v6704_v38 = vsel %vm8816_vm4, %v8201_v9, %v6703_v58  ;;  %v11116_v9 = vld [vmem:[#allocation33_spill] sm:$0xff] }
 0x251   : > { %v10408_v13 = vadd.f32 %v5273_v60, %v4815_v26  ;;  %v4816_v52 = vadd.f32 %v4664_v15, %v9815_v11  ;;  %v10422_v11 = vld [vmem:[%s8772_s9 + $0xac] sm:$0xf]  ;;  %v10430_v41 = vrot.slane %v5920_v2, 5  ;;  %v5926_v5 = vrot.slane %v5924_v50, 4  ;;  %v8178_v15 = vld [vmem:[%s8772_s9 + $0xa8] sm:$0xe] }
 0x252   : > { %v4666_v29 = vpop.f32.mrf.mxu1  ;;  %v5277_v16 = vpop.f32.mrf.mxu0  ;;  %v6707_v47 = vsel %vm8816_vm4, %v6705_v44, %v6706_v19  ;;  %v5906_v26 = vshll.u32 %v8100_v49, 16  ;;  %v10437_v33 = vrot.slane %v5893_v61, 4  ;;  %v5903_v58 = vor.u32 %v5902_v34, %v10416_v40  ;;  %v8180_v2 = vld [vmem:[%s8772_s9 + $0xb0] sm:$0x1]  ;;  %v11118_v49 = vld [vmem:[#allocation34_spill] sm:$0xff] }
 0x253   : > { %v10418_v10 = vadd.f32 %v5275_v59, %v4816_v52  ;;  %v4817_v20 = vadd.f32 %v4666_v29, %v9819_v21  ;;  %v6710_v59 = vrot.slane %v10422_v11, 5  ;;  %v8121_v44 = vcombine.low %v5875_v53, %v5885_v23  ;;  %v8182_v11 = vld [vmem:[%s8772_s9 + $0xb8] sm:$0xf] }
 0x254   : > { %v4668_v46 = vpop.f32.mrf.mxu1  ;;  %v5279_v60 = vpop.f32.mrf.mxu0  ;;  %v8217_v19 = vcombine.low %v6704_v38, %v6707_v47  ;;  %v5927_v29 = vor.u32 %v5926_v5, %v10430_v41  ;;  %v5908_v34 = vrot.slane %v5906_v26, 5  ;;  %v5899_v53 = vsel %vm8828_vm5, %v10437_v33, %v10416_v40  ;;  %v11120_v40 = vld [vmem:[#allocation36_spill] sm:$0xff] }
 0x255   : > { %v10432_v12 = vadd.f32 %v5277_v16, %v4817_v20  ;;  %v4818_v21 = vadd.f32 %v4668_v46, %v9824_v28  ;;  %v8202_v20 = vrot.slane %v8178_v15, 9  ;;  %v8104_v46 = vld [vmem:[%s8772_s9 + $0xc0] sm:$0xf]  ;;  %v6712_v23 = vrot.slane %v6710_v59, 4 }
 0x256   : > { %v4672_v1 = vpop.f32.mrf.mxu1  ;;  %v5283_v8 = vpop.f32.mrf.mxu0  ;;  %6340 = vmatmul.mubr.bf16.gmra.mxu1 %v8120_v42  ;;  %7094 = vmatmul.mubr.bf16.gmra.mxu0 %v8216_v56  ;;  %v5917_v42 = vor.u32 %v5916_v45, %v5913_v54  ;;  %v5930_v56 = vshll.u32 %v8103_v22, 16  ;;  %v5904_v45 = vrot.slane %v5903_v58, 4  ;;  %v6713_v38 = vrot.slane %v8180_v2, 5  ;;  %v8105_v22 = vld [vmem:[%s8772_s9 + $0xc4] sm:$0xf] }
 0x257   : > { %11114 = vst [vmem:[#allocation30_spill] sm:$0xff] %v10432_v12  ;;  %v10442_v51 = vadd.f32 %v5279_v60, %v4818_v21  ;;  %v4819_v28 = vadd.f32 %v4672_v1, %v11116_v9  ;;  %6349 = vmatprep.mubr.bf16.mxu1 %v10971_v36  ;;  %7103 = vmatprep.mubr.bf16.mxu0 %v10971_v36  ;;  %v11119_v21 = vld [vmem:[#allocation35_spill] sm:$0xff]  ;;  %v5944_v58 = vshll.u32 %v8105_v22, 16  ;;  %v5948_v2 = vshrl.u32 %v8105_v22, 16 }
 0x258   : > { %v4674_v50 = vpop.f32.mrf.mxu1  ;;  %v5285_v52 = vpop.f32.mrf.mxu0  ;;  %v5918_v26 = vrot.slane %v5917_v42, 4  ;;  %v5932_v1 = vrot.slane %v5930_v56, 5  ;;  %v5909_v42 = vsel %vm8828_vm5, %v5904_v45, %v5908_v34  ;;  %v6711_v56 = vsel %vm8816_vm4, %v8202_v20, %v6710_v59 }
 0x259   : > { %11115 = vst [vmem:[#allocation31_spill] sm:$0xff] %v10442_v51  ;;  %v10449_v16 = vadd.f32 %v5283_v8, %v4819_v28  ;;  %v4820_v61 = vadd.f32 %v4674_v50, %v11118_v49  ;;  %v8181_v8 = vld [vmem:[%s8772_s9 + $0xb4] sm:$0xe]  ;;  %v5928_v28 = vrot.slane %v5927_v29, 4  ;;  %v8183_v50 = vld [vmem:[%s8772_s9 + $0xbc] sm:$0x1]  ;;  %v6714_v29 = vsel %vm8816_vm4, %v6712_v23, %v6713_v38 }
 0x25a   : > { %v4676_v60 = vpop.f32.mrf.mxu1  ;;  %v5287_v54 = vpop.f32.mrf.mxu0  ;;  %v6717_v49 = vrot.slane %v8182_v11, 5  ;;  %v5938_v51 = vshll.u32 %v8104_v46, 16  ;;  %v8203_v11 = vrot.slane %v8181_v8, 9  ;;  %v8106_v8 = vld [vmem:[%s8772_s9 + $0xc8] sm:$0x1] }
 0x25b   : > { %11117 = vst [vmem:[#allocation32_spill] sm:$0xff] %v10449_v16  ;;  %v10459_v5 = vadd.f32 %v5285_v52, %v4820_v61  ;;  %v4821_v47 = vadd.f32 %v4676_v60, %v11119_v21  ;;  %v5935_v16 = vshrl.u32 %v8104_v46, 16  ;;  %v11121_v60 = vld [vmem:[#allocation37_spill] sm:$0xff]  ;;  %v5933_v20 = vsel %vm8828_vm5, %v5928_v28, %v5932_v1  ;;  %v11122_v21 = vld [vmem:[#allocation38_spill] sm:$0xff] }
 0x25c   : > { %v4678_v15 = vpop.f32.mrf.mxu1  ;;  %v5289_v9 = vpop.f32.mrf.mxu0  ;;  %v6719_v45 = vrot.slane %v6717_v49, 4  ;;  %v5940_v38 = vrot.slane %v5938_v51, 5  ;;  %v6718_v51 = vsel %vm8816_vm4, %v8203_v11, %v6717_v49 }
 0x25d   : > { %v10464_v12 = vadd.f32 %v5287_v54, %v4821_v47  ;;  %v4822_v33 = vadd.f32 %v4678_v15, %v11120_v40  ;;  %v5937_v23 = vrot.slane %v5935_v16, 4  ;;  %v10487_v15 = vrot.slane %v5944_v58, 5  ;;  %v11124_v16 = vld [vmem:[#allocation40_spill] sm:$0xff] }
 0x25e   : > { %v4682_v52 = vpop.f32.mrf.mxu1  ;;  %v5293_v61 = vpop.f32.mrf.mxu0  ;;  %6350 = vmatmul.mubr.bf16.gmra.mxu1 %v8121_v44  ;;  %7104 = vmatmul.mubr.bf16.gmra.mxu0 %v8217_v19  ;;  %v5923_v44 = vsel %vm8828_vm5, %v5918_v26, %v10430_v41  ;;  %v6720_v19 = vrot.slane %v8183_v50, 5  ;;  %v5950_v41 = vrot.slane %v5948_v2, 4  ;;  %v8122_v50 = vcombine.low %v5899_v53, %v5909_v42 }
 0x25f   : > { %v10473_v46 = vadd.f32 %v5289_v9, %v4822_v33  ;;  %v4823_v54 = vadd.f32 %v4682_v52, %v11121_v60  ;;  %6359 = vmatprep.mubr.bf16.mxu1 %v10971_v36  ;;  %7113 = vmatprep.mubr.bf16.mxu0 %v10971_v36  ;;  %v8218_v40 = vcombine.low %v6711_v56, %v6714_v29  ;;  %v8185_v33 = vld [vmem:[%s8772_s9 + $0xc4] sm:$0xf]  ;;  %v8107_v52 = vld [vmem:[%s8772_s9 + $0xcc] sm:$0xf]  ;;  %v5954_v42 = vshll.u32 %v8106_v8, 16 }
 0x260   : > { %v4684_v59 = vpop.f32.mrf.mxu1  ;;  %v5295_v34 = vpop.f32.mrf.mxu0  ;;  %v6721_v2 = vsel %vm8816_vm4, %v6719_v45, %v6720_v19  ;;  %v5941_v53 = vor.u32 %v5940_v38, %v5937_v23  ;;  %v11125_v29 = vld [vmem:[#allocation42_spill] sm:$0xff]  ;;  %v11127_v45 = vld [vmem:[#allocation43_spill] sm:$0xff] }
 0x261   : > { %v10483_v22 = vadd.f32 %v5293_v61, %v4823_v54  ;;  %v4824_v47 = vadd.f32 %v4684_v59, %v11122_v21  ;;  %v8108_v61 = vld [vmem:[%s8772_s9 + $0xd0] sm:$0xf]  ;;  %v8123_v54 = vcombine.low %v5923_v44, %v5933_v20  ;;  %v8184_v21 = vld [vmem:[%s8772_s9 + $0xc0] sm:$0xe]  ;;  %v5962_v44 = vshll.u32 %v8107_v52, 16 }
 0x262   : > { %v4686_v26 = vpop.f32.mrf.mxu1  ;;  %v5297_v9 = vpop.f32.mrf.mxu0  ;;  %v5968_v20 = vshll.u32 %v8108_v61, 16  ;;  %v8219_v38 = vcombine.low %v6718_v51, %v6721_v2 }
 0x263   : > { %v10490_v1 = vadd.f32 %v5295_v34, %v4824_v47  ;;  %v4825_v28 = vadd.f32 %v4686_v26, %v11124_v16  ;;  %v5951_v34 = vor.u32 %v5950_v41, %v10487_v15  ;;  %v8186_v47 = vld [vmem:[%s8772_s9 + $0xc8] sm:$0x1]  ;;  %v6724_v26 = vrot.slane %v8185_v33, 5 }
 0x264   : > { %v4688_v60 = vpop.f32.mrf.mxu1  ;;  %v5299_v58 = vpop.f32.mrf.mxu0  ;;  %v5959_v16 = vshrl.u32 %v8107_v52, 16  ;;  %v5956_v33 = vrot.slane %v5954_v42, 5  ;;  %v11128_v52 = vld [vmem:[#allocation44_spill] sm:$0xff] }
 0x265   : > { %11123 = vst [vmem:[#allocation33_spill] sm:$0xff] %v10490_v1  ;;  %v10499_v56 = vadd.f32 %v5297_v9, %v4825_v28  ;;  %v4826_v59 = vadd.f32 %v4688_v60, %v11125_v29  ;;  %v5972_v1 = vshrl.u32 %v8108_v61, 16  ;;  %v5942_v9 = vrot.slane %v5941_v53, 4  ;;  %v11129_v53 = vld [vmem:[#allocation45_spill] sm:$0xff] }
 0x266   : > { %v4692_v49 = vpop.f32.mrf.mxu1  ;;  %v5303_v11 = vpop.f32.mrf.mxu0  ;;  %6360 = vmatmul.mubr.bf16.gmra.mxu1 %v8122_v50  ;;  %7114 = vmatmul.mubr.bf16.gmra.mxu0 %v8218_v40  ;;  %v8204_v50 = vrot.slane %v8184_v21, 9  ;;  %v6727_v40 = vrot.slane %v8186_v47, 5  ;;  %v5952_v60 = vrot.slane %v5951_v34, 4  ;;  %v8109_v21 = vld [vmem:[%s8772_s9 + $0xd4] sm:$0x1] }
 0x267   : > { %v10505_v19 = vadd.f32 %v5299_v58, %v4826_v59  ;;  %v4827_v23 = vadd.f32 %v4692_v49, %v11127_v45  ;;  %6369 = vmatprep.mubr.bf16.mxu1 %v10971_v36  ;;  %7123 = vmatprep.mubr.bf16.mxu0 %v10971_v36  ;;  %v6726_v58 = vrot.slane %v6724_v26, 4  ;;  %v5961_v49 = vrot.slane %v5959_v16, 4  ;;  %v8188_v34 = vld [vmem:[%s8772_s9 + $0xd0] sm:$0xf] }
 0x268   : > { %v4694_v8 = vpop.f32.mrf.mxu1  ;;  %v5305_v41 = vpop.f32.mrf.mxu0  ;;  %v5964_v45 = vrot.slane %v5962_v44, 5  ;;  %v5974_v51 = vrot.slane %v5972_v1, 4  ;;  %v5957_v1 = vsel %vm8828_vm5, %v5952_v60, %v5956_v33  ;;  %v6725_v44 = vsel %vm8816_vm4, %v8204_v50, %v6724_v26  ;;  %v8187_v26 = vld [vmem:[%s8772_s9 + $0xcc] sm:$0xe] }
 0x269   : > { %11126 = vst [vmem:[#allocation34_spill] sm:$0xff] %v10505_v19  ;;  %v10510_v28 = vadd.f32 %v5303_v11, %v4827_v23  ;;  %v4828_v61 = vadd.f32 %v4694_v8, %v11128_v52  ;;  %v10513_v19 = vrot.slane %v5968_v20, 5  ;;  %v5947_v23 = vsel %vm8828_vm5, %v5942_v9, %v10487_v15  ;;  %v11131_v52 = vld [vmem:[#allocation46_spill] sm:$0xff] }
 0x26a   : > { %v4696_v29 = vpop.f32.mrf.mxu1  ;;  %v5307_v59 = vpop.f32.mrf.mxu0  ;;  %v6728_v15 = vsel %vm8816_vm4, %v6726_v58, %v6727_v40  ;;  %v5965_v9 = vor.u32 %v5964_v45, %v5961_v49  ;;  %v6731_v33 = vrot.slane %v8188_v34, 5  ;;  %v8124_v58 = vcombine.low %v5947_v23, %v5957_v1 }
 0x26b   : > { %v10515_v2 = vadd.f32 %v5305_v41, %v4828_v61  ;;  %v4829_v42 = vadd.f32 %v4696_v29, %v11129_v53  ;;  %v5975_v61 = vor.u32 %v5974_v51, %v10513_v19  ;;  %v5978_v29 = vshll.u32 %v8109_v21, 16  ;;  %v11133_v53 = vld [vmem:[#allocation47_spill] sm:$0xff] }
 0x26c   : > { %v4698_v47 = vpop.f32.mrf.mxu1  ;;  %v5309_v11 = vpop.f32.mrf.mxu0  ;;  %v8220_v49 = vcombine.low %v6725_v44, %v6728_v15  ;;  %v5966_v21 = vrot.slane %v5965_v9, 4  ;;  %v6733_v34 = vrot.slane %v6731_v33, 4 }
 0x26d   : > { %v10523_v8 = vadd.f32 %v5307_v59, %v4829_v42  ;;  %v4830_v16 = vadd.f32 %v4698_v47, %v11131_v52  ;;  %v5976_v47 = vrot.slane %v5975_v61, 4  ;;  %v8205_v52 = vrot.slane %v8187_v26, 9 }
 0x26e   : > { %v4702_v20 = vpop.f32.mrf.mxu1  ;;  %v5313_v41 = vpop.f32.mrf.mxu0  ;;  %6370 = vmatmul.mubr.bf16.gmra.mxu1 %v8123_v54  ;;  %7124 = vmatmul.mubr.bf16.gmra.mxu0 %v8219_v38  ;;  %v8189_v38 = vld [vmem:[%s8772_s9 + $0xd4] sm:$0x1]  ;;  %v5971_v44 = vsel %vm8828_vm5, %v5966_v21, %v10513_v19 }
 0x26f   : > { %11130 = vst [vmem:[#allocation35_spill] sm:$0xff] %v10523_v8  ;;  %v10533_v59 = vadd.f32 %v5309_v11, %v4830_v16  ;;  %v4831_v42 = vadd.f32 %v4702_v20, %v11133_v53  ;;  %6379 = vmatprep.mubr.bf16.mxu1 %v10971_v36  ;;  %7133 = vmatprep.mubr.bf16.mxu0 %v10971_v36  ;;  %v5980_v11 = vrot.slane %v5978_v29, 5  ;;  %v6734_v53 = vrot.slane %v8189_v38, 5 }
 0x270   : > { %v4704_v50 = vpop.f32.mrf.mxu1  ;;  %v5315_v54 = vpop.f32.mrf.mxu0 }
 0x271   : > { %11132 = vst [vmem:[#allocation36_spill] sm:$0xff] %v10533_v59  ;;  %v10540_v60 = vadd.f32 %v5313_v41, %v4831_v42  ;;  %v4832_v40 = vadd.f32 %v4704_v50, %v9933_v25  ;;  %v5981_v15 = vsel %vm8828_vm5, %v5976_v47, %v5980_v11 }
 0x272   : > { %v4706_v45 = vpop.f32.mrf.mxu1  ;;  %v5317_v51 = vpop.f32.mrf.mxu0 }
 0x273   : > { %v10543_v16 = vadd.f32 %v5315_v54, %v4832_v40  ;;  %v4833_v20 = vadd.f32 %v4706_v45, %v9939_v48  ;;  %v6732_v48 = vsel %vm8816_vm4, %v8205_v52, %v6731_v33  ;;  %v8125_v33 = vcombine.low %v5971_v44, %v5981_v15 }
 0x274   : > { %v4708_v59 = vpop.f32.mrf.mxu1  ;;  %v5319_v8 = vpop.f32.mrf.mxu0 }
 0x275   : > { %v10546_v41 = vadd.f32 %v5317_v51, %v4833_v20  ;;  %v4834_v25 = vadd.f32 %v4708_v59, %v9947_v6  ;;  %v6735_v6 = vsel %vm8816_vm4, %v6733_v34, %v6734_v53 }
 0x276   : > { %v4712_v23 = vpop.f32.mrf.mxu1  ;;  %v5323_v1 = vpop.f32.mrf.mxu0  ;;  %6380 = vmatmul.mubr.bf16.gmra.mxu1 %v8124_v58  ;;  %7134 = vmatmul.mubr.bf16.gmra.mxu0 %v8220_v49 }
 0x277   : > { %v10556_v9 = vadd.f32 %v5319_v8, %v4834_v25  ;;  %v4835_v61 = vadd.f32 %v4712_v23, %v9959_v3  ;;  %6389 = vmatprep.mubr.bf16.mxu1 %v10971_v36  ;;  %7143 = vmatprep.mubr.bf16.mxu0 %v10971_v36  ;;  %v8221_v8 = vcombine.low %v6732_v48, %v6735_v6 }
 0x278   : > { %v4714_v29 = vpop.f32.mrf.mxu1  ;;  %v5325_v59 = vpop.f32.mrf.mxu0 }
 0x279   : > { %v10563_v19 = vadd.f32 %v5323_v1, %v4835_v61  ;;  %v4836_v43 = vadd.f32 %v4714_v29, %v9970_v14  ;;  %v11134_v61 = vld [vmem:[#allocation48_spill] sm:$0xff] }
 0x27a   : > { %v4716_v42 = vpop.f32.mrf.mxu1  ;;  %v5327_v26 = vpop.f32.mrf.mxu0 }
 0x27b   : > { %v10566_v50 = vadd.f32 %v5325_v59, %v4836_v43  ;;  %v4837_v3 = vadd.f32 %v4716_v42, %v9973_v57  ;;  %v11135_v43 = vld [vmem:[#allocation39_spill] sm:$0xff] }
 0x27c   : > { %v4718_v54 = vpop.f32.mrf.mxu1  ;;  %v5329_v38 = vpop.f32.mrf.mxu0 }
 0x27d   : > { %v10569_v36 = vadd.f32 %v5327_v26, %v4837_v3  ;;  %v4838_v32 = vadd.f32 %v4718_v54, %v9998_v62 }
 0x27e   : > { %v4722_v40 = vpop.f32.mrf.mxu1  ;;  %v5333_v58 = vpop.f32.mrf.mxu0  ;;  %6390 = vmatmul.mubr.bf16.gmra.mxu1 %v8125_v33  ;;  %7144 = vmatmul.mubr.bf16.gmra.mxu0 %v8221_v8  ;;  %v11136_v8 = vld [vmem:[#allocation41_spill] sm:$0xff] }
 0x27f   : > { %v10572_v49 = vadd.f32 %v5329_v38, %v4838_v32  ;;  %v4839_v14 = vadd.f32 %v4722_v40, %v10012_v27  ;;  %v11137_v32 = vld [vmem:[#allocation9_spill] sm:$0xff] }
 0x280   : > { %v4724_v45 = vpop.f32.mrf.mxu1  ;;  %v5335_v51 = vpop.f32.mrf.mxu0 }
 0x281   : > { %v10575_v21 = vadd.f32 %v5333_v58, %v4839_v14  ;;  %v4840_v57 = vadd.f32 %v4724_v45, %v10018_v37 }
 0x282   : > { %v4726_v47 = vpop.f32.mrf.mxu1  ;;  %v5337_v11 = vpop.f32.mrf.mxu0 }
 0x283   : > { %v10578_v52 = vadd.f32 %v5335_v51, %v4840_v57  ;;  %v4841_v62 = vadd.f32 %v4726_v47, %v10024_v35  ;;  %v11138_v51 = vld [vmem:[#allocation10_spill] sm:$0xff] }
 0x284   : > { %v4728_v20 = vpop.f32.mrf.mxu1  ;;  %v5339_v34 = vpop.f32.mrf.mxu0 }
 0x285   : > { %v10581_v53 = vadd.f32 %v5337_v11, %v4841_v62  ;;  %v4842_v25 = vadd.f32 %v4728_v20, %v10032_v7  ;;  %v11139_v20 = vld [vmem:[#allocation11_spill] sm:$0xff] }
 0x286   : > { %v4732_v23 = vpop.f32.mrf.mxu1  ;;  %v5343_v27 = vpop.f32.mrf.mxu0 }
 0x287   : > { %v10584_v1 = vadd.f32 %v5339_v34, %v4842_v25  ;;  %v4843_v44 = vadd.f32 %v4732_v23, %v10045_v4 }
 0x288   : > { %v4734_v15 = vpop.f32.mrf.mxu1  ;;  %v5345_v37 = vpop.f32.mrf.mxu0 }
 0x289   : > { %v10587_v48 = vadd.f32 %v5343_v27, %v4843_v44  ;;  %v4844_v6 = vadd.f32 %v4734_v15, %v11134_v61  ;;  %v11140_v44 = vld [vmem:[#allocation12_spill] sm:$0xff] }
 0x28a   : > { %v4736_v29 = vpop.f32.mrf.mxu1  ;;  %v5347_v35 = vpop.f32.mrf.mxu0 }
 0x28b   : > { %v10590_v59 = vadd.f32 %v5345_v37, %v4844_v6  ;;  %v4845_v42 = vadd.f32 %v4736_v29, %v11135_v43  ;;  %v11141_v29 = vld [vmem:[#allocation13_spill] sm:$0xff] }
 0x28c   : > { %v4738_v26 = vpop.f32.mrf.mxu1  ;;  %v5349_v7 = vpop.f32.mrf.mxu0 }
 0x28d   : > { %v10593_v33 = vadd.f32 %v5347_v35, %v4845_v42  ;;  %v4846_v3 = vadd.f32 %v4738_v26, %v11136_v8 }
 0x28e   : > { %v4742_v54 = vpop.f32.mrf.mxu1  ;;  %v5353_v4 = vpop.f32.mrf.mxu0 }
 0x28f   : > { %v10596_v38 = vadd.f32 %v5349_v7, %v4846_v3  ;;  %v4847_v40 = vadd.f32 %v4742_v54, %v11137_v32  ;;  %v11142_v7 = vld [vmem:[#allocation14_spill] sm:$0xff]  ;;  %v11143_v32 = vld [vmem:[#allocation15_spill] sm:$0xff] }
 0x290   : > { %v4744_v58 = vpop.f32.mrf.mxu1  ;;  %v5355_v14 = vpop.f32.mrf.mxu0 }
 0x291   : > { %v10599_v45 = vadd.f32 %v5353_v4, %v4847_v40  ;;  %v4848_v57 = vadd.f32 %v4744_v58, %v11138_v51 }
 0x292   : > { %v4746_v47 = vpop.f32.mrf.mxu1  ;;  %v5357_v11 = vpop.f32.mrf.mxu0 }
 0x293   : > { %v10602_v62 = vadd.f32 %v5355_v14, %v4848_v57  ;;  %v4849_v34 = vadd.f32 %v4746_v47, %v11139_v20  ;;  %v11144_v57 = vld [vmem:[#allocation16_spill] sm:$0xff] }
 0x294   : > { %v4748_v25 = vpop.f32.mrf.mxu1  ;;  %v5359_v23 = vpop.f32.mrf.mxu0 }
 0x295   : > { %v10605_v27 = vadd.f32 %v5357_v11, %v4849_v34  ;;  %v4850_v15 = vadd.f32 %v4748_v25, %v11140_v44  ;;  %v11145_v25 = vld [vmem:[#allocation49_spill] sm:$0xff] }
 0x296   : > { %v4752_v37 = vpop.f32.mrf.mxu1  ;;  %v5363_v61 = vpop.f32.mrf.mxu0 }
 0x297   : > { %v10608_v6 = vadd.f32 %v5359_v23, %v4850_v15  ;;  %v4851_v35 = vadd.f32 %v4752_v37, %v11141_v29 }
 0x298   : > { %v4754_v43 = vpop.f32.mrf.mxu1  ;;  %v5365_v42 = vpop.f32.mrf.mxu0 }
 0x299   : > { %v10611_v26 = vadd.f32 %v5363_v61, %v4851_v35  ;;  %v4852_v8 = vadd.f32 %v4754_v43, %v11142_v7  ;;  %v11146_v61 = vld [vmem:[#allocation50_spill] sm:$0xff]  ;;  %v11147_v7 = vld [vmem:[#allocation17_spill] sm:$0xff] }
 0x29a   : > { %v4756_v3 = vpop.f32.mrf.mxu1  ;;  %v5367_v54 = vpop.f32.mrf.mxu0 }
 0x29b   : > { %v10614_v4 = vadd.f32 %v5365_v42, %v4852_v8  ;;  %v4853_v40 = vadd.f32 %v4756_v3, %v11143_v32 }
 0x29c   : > { %v4758_v58 = vpop.f32.mrf.mxu1  ;;  %v5369_v14 = vpop.f32.mrf.mxu0 }
 0x29d   : > { %v10617_v51 = vadd.f32 %v5367_v54, %v4853_v40  ;;  %v4854_v47 = vadd.f32 %v4758_v58, %v11144_v57  ;;  %v11148_v40 = vld [vmem:[#allocation18_spill] sm:$0xff] }
 0x29e   : > { %v4762_v11 = vpop.f32.mrf.mxu1  ;;  %v5373_v20 = vpop.f32.mrf.mxu0 }
 0x29f   : > { %v10620_v34 = vadd.f32 %v5369_v14, %v4854_v47  ;;  %v4855_v23 = vadd.f32 %v4762_v11, %v11145_v25 }
 0x2a0   : > { %v4764_v44 = vpop.f32.mrf.mxu1  ;;  %v5375_v15 = vpop.f32.mrf.mxu0 }
 0x2a1   : > { %v10623_v37 = vadd.f32 %v5373_v20, %v4855_v23  ;;  %v4856_v29 = vadd.f32 %v4764_v44, %v11146_v61 }
 0x2a2   : > { %v4766_v35 = vpop.f32.mrf.mxu1  ;;  %v5377_v43 = vpop.f32.mrf.mxu0 }
 0x2a3   : > { %v10626_v42 = vadd.f32 %v5375_v15, %v4856_v29  ;;  %v4857_v8 = vadd.f32 %v4766_v35, %v11147_v7  ;;  %v11152_v35 = vld [vmem:[#allocation19_spill] sm:$0xff] }
 0x2a4   : > { %v4768_v3 = vpop.f32.mrf.mxu1  ;;  %v5379_v54 = vpop.f32.mrf.mxu0 }
 0x2a5   : > { %v10629_v32 = vadd.f32 %v5377_v43, %v4857_v8  ;;  %v4858_v58 = vadd.f32 %v4768_v3, %v11148_v40 }
 0x2a6   : > { %v4772_v14 = vpop.f32.mrf.mxu1  ;;  %v5383_v57 = vpop.f32.mrf.mxu0 }
 0x2a7   : > { %v10632_v47 = vadd.f32 %v5379_v54, %v4858_v58  ;;  %v4859_v11 = vadd.f32 %v4772_v14, %v10211_v31  ;;  %v11154_v54 = vld [vmem:[#allocation20_spill] sm:$0xff] }
 0x2a8   : > { %v4774_v20 = vpop.f32.mrf.mxu1  ;;  %v5385_v25 = vpop.f32.mrf.mxu0 }
 0x2a9   : > { %11149 = vst [vmem:[#allocation37_spill] sm:$0xff] %v10632_v47  ;;  %v10635_v23 = vadd.f32 %v5383_v57, %v4859_v11  ;;  %v4860_v44 = vadd.f32 %v4774_v20, %v10214_v63  ;;  %v11156_v57 = vld [vmem:[#allocation21_spill] sm:$0xff] }
 0x2aa   : > { %v4776_v15 = vpop.f32.mrf.mxu1  ;;  %v5387_v61 = vpop.f32.mrf.mxu0 }
 0x2ab   : > { %11150 = vst [vmem:[#allocation38_spill] sm:$0xff] %v10635_v23  ;;  %v10638_v29 = vadd.f32 %v5385_v25, %v4860_v44  ;;  %v4861_v43 = vadd.f32 %v4776_v15, %v11152_v35  ;;  %v11158_v25 = vld [vmem:[#allocation22_spill] sm:$0xff] }
 0x2ac   : > { %v4778_v7 = vpop.f32.mrf.mxu1  ;;  %v5389_v8 = vpop.f32.mrf.mxu0 }
 0x2ad   : > { %11151 = vst [vmem:[#allocation40_spill] sm:$0xff] %v10638_v29  ;;  %v10641_v3 = vadd.f32 %v5387_v61, %v4861_v43  ;;  %v4862_v40 = vadd.f32 %v4778_v7, %v11154_v54  ;;  %v11160_v61 = vld [vmem:[#allocation23_spill] sm:$0xff] }
 0x2ae   : > { %v4782_v58 = vpop.f32.mrf.mxu1  ;;  %v5393_v31 = vpop.f32.mrf.mxu0 }
 0x2af   : > { %11153 = vst [vmem:[#allocation42_spill] sm:$0xff] %v10641_v3  ;;  %v10644_v14 = vadd.f32 %v5389_v8, %v4862_v40  ;;  %v4863_v11 = vadd.f32 %v4782_v58, %v11156_v57  ;;  %v11162_v8 = vld [vmem:[#allocation24_spill] sm:$0xff] }
 0x2b0   : > { %v4784_v23 = vpop.f32.mrf.mxu1  ;;  %v5395_v63 = vpop.f32.mrf.mxu0 }
 0x2b1   : > { %11155 = vst [vmem:[#allocation43_spill] sm:$0xff] %v10644_v14  ;;  %v10647_v20 = vadd.f32 %v5393_v31, %v4863_v11  ;;  %v4864_v44 = vadd.f32 %v4784_v23, %v11158_v25  ;;  %v11164_v31 = vld [vmem:[#allocation25_spill] sm:$0xff] }
 0x2b2   : > { %v4786_v29 = vpop.f32.mrf.mxu1  ;;  %v5397_v15 = vpop.f32.mrf.mxu0 }
 0x2b3   : > { %11157 = vst [vmem:[#allocation44_spill] sm:$0xff] %v10647_v20  ;;  %v10650_v35 = vadd.f32 %v5395_v63, %v4864_v44  ;;  %v4865_v43 = vadd.f32 %v4786_v29, %v11160_v61  ;;  %v11165_v63 = vld [vmem:[#allocation26_spill] sm:$0xff] }
 0x2b4   : > { %v4788_v3 = vpop.f32.mrf.mxu1  ;;  %v5399_v7 = vpop.f32.mrf.mxu0 }
 0x2b5   : > { %11159 = vst [vmem:[#allocation45_spill] sm:$0xff] %v10650_v35  ;;  %v10653_v54 = vadd.f32 %v5397_v15, %v4865_v43  ;;  %v4866_v40 = vadd.f32 %v4788_v3, %v11162_v8  ;;  %v11167_v15 = vld [vmem:[#allocation27_spill] sm:$0xff] }
 0x2b6   : > { %v4792_v14 = vpop.f32.mrf.mxu1  ;;  %v5403_v58 = vpop.f32.mrf.mxu0 }
 0x2b7   : > { %11161 = vst [vmem:[#allocation46_spill] sm:$0xff] %v10653_v54  ;;  %v10656_v57 = vadd.f32 %v5399_v7, %v4866_v40  ;;  %v4867_v11 = vadd.f32 %v4792_v14, %v11164_v31  ;;  %v7348_v54 = vlaneseq  ;;  %v11168_v7 = vld [vmem:[#allocation28_spill] sm:$0xff] }
 0x2b8   : > { %v4794_v20 = vpop.f32.mrf.mxu1  ;;  %v5405_v23 = vpop.f32.mrf.mxu0 }
 0x2b9   : > { %11163 = vst [vmem:[#allocation47_spill] sm:$0xff] %v10656_v57  ;;  %v10659_v25 = vadd.f32 %v5403_v58, %v4867_v11  ;;  %v4868_v44 = vadd.f32 %v4794_v20, %v11165_v63  ;;  %v11169_v58 = vld [vmem:[#allocation29_spill] sm:$0xff]  ;;  %v7349_v20 = vshrl.u32 %v7348_v54, 7 }
 0x2ba   : > { %v4796_v35 = vpop.f32.mrf.mxu1  ;;  %v5407_v29 = vpop.f32.mrf.mxu0  ;;  %v7346_v54 = vld [vmem:[%s10939_s2] sm:$0x3] }
 0x2bb   : > { %v10662_v61 = vadd.f32 %v5405_v23, %v4868_v44  ;;  %v4869_v43 = vadd.f32 %v4796_v35, %v11167_v15 }
 0x2bc   : > { %v4798_v3 = vpop.f32.mrf.mxu1  ;;  %v5409_v8 = vpop.f32.mrf.mxu0 }
 0x2bd   : > { %11166 = vst [vmem:[#allocation48_spill] sm:$0xff] %v10662_v61  ;;  %v10665_v47 = vadd.f32 %v5407_v29, %v4869_v43  ;;  %v4870_v40 = vadd.f32 %v4798_v3, %v11168_v7  ;;  %v7350_v3 = vsub.s32 0, %v7349_v20 }
 0x2be   : > { %v4802_v14 = vpop.f32.mrf.mxu1  ;;  %v5413_v31 = vpop.f32.mrf.mxu0 }
 0x2bf   : > { %v10668_v57 = vadd.f32 %v5409_v8, %v4870_v40  ;;  %v4871_v11 = vadd.f32 %v4802_v14, %v11169_v58 }
 0x2c0   : > { %v4804_v63 = vpop.f32.mrf.mxu1  ;;  %v5415_v23 = vpop.f32.mrf.mxu0 }
 0x2c1   : > { %v10671_v44 = vadd.f32 %v5413_v31, %v4871_v11  ;;  %v4872_v35 = vadd.f32 %v4804_v63, %v10348_v30  ;;  %v7354_v31 = vsub.s32 1, %v7349_v20  ;;  %v10687_v63 = vrot.slane %v7346_v54, %v7350_v3 }
 0x2c2   : > { %v4806_v15 = vpop.f32.mrf.mxu1  ;;  %v5417_v61 = vpop.f32.mrf.mxu0 }
 0x2c3   : > { %v10674_v29 = vadd.f32 %v5415_v23, %v4872_v35  ;;  %v4873_v43 = vadd.f32 %v4806_v15, %v10351_v39 }
 0x2c4   : > { %v4808_v8 = vpop.f32.mrf.mxu1  ;;  %v5419_v7 = vpop.f32.mrf.mxu0 }
 0x2c5   : > { %11170 = vst [vmem:[#allocation39_spill] sm:$0xff] %v10674_v29  ;;  %v10680_v40 = vadd.f32 %v5417_v61, %v4873_v43  ;;  %v4874_v14 = vadd.f32 %v4808_v8, %v10362_v18  ;;  %v10692_v43 = vrot.slane %v7346_v54, %v7354_v31 }
 0x2c6   : > { %v6241_v30 = vpop.f32.mrf.mxu1  ;;  %v6995_v58 = vpop.f32.mrf.mxu0 }
 0x2c7   : > { %11171 = vst [vmem:[#allocation41_spill] sm:$0xff] %v10680_v40  ;;  %v10684_v11 = vadd.f32 %v5419_v7, %v4874_v14  ;;  %v6400_v39 = vadd.f32 %v6241_v30, %v10376_v24 }
 0x2c8   : > { %v6243_v23 = vpop.f32.mrf.mxu1  ;;  %v6997_v35 = vpop.f32.mrf.mxu0 }
 0x2c9   : > { %11172 = vst [vmem:[#allocation9_spill] sm:$0xff] %v10684_v11  ;;  %v7154_v15 = vadd.f32 %v6995_v58, %v6400_v39  ;;  %v6401_v61 = vadd.f32 %v6243_v23, %v10385_v55 }
 0x2ca   : > { %v6245_v18 = vpop.f32.mrf.mxu1  ;;  %v6999_v20 = vpop.f32.mrf.mxu0 }
 0x2cb   : > { %v7358_v8 = vadd.f32 %v10687_v63, %v7154_v15  ;;  %v7155_v40 = vadd.f32 %v6997_v35, %v6401_v61  ;;  %v6402_v7 = vadd.f32 %v6245_v18, %v10395_v17 }
 0x2cc   : > { %v6247_v14 = vpop.f32.mrf.mxu1  ;;  %v7001_v24 = vpop.f32.mrf.mxu0 }
 0x2cd   : > { %v7422_v3 = vmax.f32 %v7358_v8, 0.0  ;;  %v7359_v30 = vadd.f32 %v10692_v43, %v7155_v40  ;;  %v7156_v11 = vadd.f32 %v6999_v20, %v6402_v7  ;;  %v6403_v29 = vadd.f32 %v6247_v14, %v10403_v0  ;;  %v11173_v7 = vld [vmem:[#allocation30_spill] sm:$0xff] }
 0x2ce   : > { %v6251_v58 = vpop.f32.mrf.mxu1  ;;  %v7005_v39 = vpop.f32.mrf.mxu0 }
 0x2cf   : > { %7486 = vst [vmem:[%s10698_s20] sm:$0xff] %v7422_v3  ;;  %v7423_v55 = vmax.f32 %v7359_v30, 0.0  ;;  %v7360_v54 = vadd.f32 %v10687_v63, %v7156_v11  ;;  %v7157_v17 = vadd.f32 %v7001_v24, %v6403_v29  ;;  %v6404_v31 = vadd.f32 %v6251_v58, %v10408_v13 }
 0x2d0   : > { %v6253_v23 = vpop.f32.mrf.mxu1  ;;  %v7007_v40 = vpop.f32.mrf.mxu0 }
 0x2d1   : > { %7487 = vst [vmem:[%s10698_s20 + $0x8] sm:$0xff] %v7423_v55  ;;  %v7424_v35 = vmax.f32 %v7360_v54, 0.0  ;;  %v7361_v0 = vadd.f32 %v10692_v43, %v7157_v17  ;;  %v7158_v15 = vadd.f32 %v7005_v39, %v6404_v31  ;;  %v6405_v61 = vadd.f32 %v6253_v23, %v10418_v10  ;;  %v11174_v39 = vld [vmem:[#allocation31_spill] sm:$0xff] }
 0x2d2   : > { %v6255_v18 = vpop.f32.mrf.mxu1  ;;  %v7009_v20 = vpop.f32.mrf.mxu0 }
 0x2d3   : > { %7488 = vst [vmem:[%s10698_s20 + $0x10] sm:$0xff] %v7424_v35  ;;  %v7425_v8 = vmax.f32 %v7361_v0, 0.0  ;;  %v7362_v11 = vadd.f32 %v10687_v63, %v7158_v15  ;;  %v7159_v29 = vadd.f32 %v7007_v40, %v6405_v61  ;;  %v6406_v13 = vadd.f32 %v6255_v18, %v11173_v7  ;;  %v11175_v40 = vld [vmem:[#allocation32_spill] sm:$0xff] }
 0x2d4   : > { %v6257_v14 = vpop.f32.mrf.mxu1  ;;  %v7011_v24 = vpop.f32.mrf.mxu0 }
 0x2d5   : > { %7489 = vst [vmem:[%s10698_s20 + $0x18] sm:$0xff] %v7425_v8  ;;  %v7426_v3 = vmax.f32 %v7362_v11, 0.0  ;;  %v7363_v30 = vadd.f32 %v10692_v43, %v7159_v29  ;;  %v7160_v58 = vadd.f32 %v7009_v20, %v6406_v13  ;;  %v6407_v10 = vadd.f32 %v6257_v14, %v11174_v39 }
 0x2d6   : > { %v6261_v55 = vpop.f32.mrf.mxu1  ;;  %v7015_v54 = vpop.f32.mrf.mxu0 }
 0x2d7   : > { %7490 = vst [vmem:[%s10698_s20 + $0x20] sm:$0xff] %v7426_v3  ;;  %v7427_v17 = vmax.f32 %v7363_v30, 0.0  ;;  %v7364_v31 = vadd.f32 %v10687_v63, %v7160_v58  ;;  %v7161_v23 = vadd.f32 %v7011_v24, %v6407_v10  ;;  %v6408_v35 = vadd.f32 %v6261_v55, %v11175_v40 }
 0x2d8   : > { %v6263_v0 = vpop.f32.mrf.mxu1  ;;  %v7017_v15 = vpop.f32.mrf.mxu0 }
 0x2d9   : > { %7491 = vst [vmem:[%s10698_s20 + $0x28] sm:$0xff] %v7427_v17  ;;  %v7428_v61 = vmax.f32 %v7364_v31, 0.0  ;;  %v7365_v18 = vadd.f32 %v10692_v43, %v7161_v23  ;;  %v7162_v20 = vadd.f32 %v7015_v54, %v6408_v35  ;;  %v6409_v8 = vadd.f32 %v6263_v0, %v10459_v5 }
 0x2da   : > { %v6265_v11 = vpop.f32.mrf.mxu1  ;;  %v7019_v29 = vpop.f32.mrf.mxu0 }
 0x2db   : > { %7492 = vst [vmem:[%s10698_s20 + $0x30] sm:$0xff] %v7428_v61  ;;  %v7429_v7 = vmax.f32 %v7365_v18, 0.0  ;;  %v7366_v13 = vadd.f32 %v10687_v63, %v7162_v20  ;;  %v7163_v14 = vadd.f32 %v7017_v15, %v6409_v8  ;;  %v6410_v24 = vadd.f32 %v6265_v11, %v10464_v12  ;;  %v11176_v18 = vld [vmem:[#allocation33_spill] sm:$0xff] }
 0x2dc   : > { %v6267_v3 = vpop.f32.mrf.mxu1  ;;  %v7021_v30 = vpop.f32.mrf.mxu0 }
 0x2dd   : > { %7493 = vst [vmem:[%s10698_s20 + $0x38] sm:$0xff] %v7429_v7  ;;  %v7430_v58 = vmax.f32 %v7366_v13, 0.0  ;;  %v7367_v39 = vadd.f32 %v10692_v43, %v7163_v14  ;;  %v7164_v10 = vadd.f32 %v7019_v29, %v6410_v24  ;;  %v6411_v5 = vadd.f32 %v6267_v3, %v10473_v46 }
 0x2de   : > { %v6271_v55 = vpop.f32.mrf.mxu1  ;;  %v7025_v54 = vpop.f32.mrf.mxu0 }
 0x2df   : > { %7494 = vst [vmem:[%s10698_s20 + $0x40] sm:$0xff] %v7430_v58  ;;  %v7431_v17 = vmax.f32 %v7367_v39, 0.0  ;;  %v7368_v31 = vadd.f32 %v10687_v63, %v7164_v10  ;;  %v7165_v23 = vadd.f32 %v7021_v30, %v6411_v5  ;;  %v6412_v12 = vadd.f32 %v6271_v55, %v10483_v22  ;;  %v11177_v58 = vld [vmem:[#allocation34_spill] sm:$0xff] }
 0x2e0   : > { %v6273_v40 = vpop.f32.mrf.mxu1  ;;  %v7027_v35 = vpop.f32.mrf.mxu0 }
 0x2e1   : > { %7495 = vst [vmem:[%s10698_s20 + $0x48] sm:$0xff] %v7431_v17  ;;  %v7432_v0 = vmax.f32 %v7368_v31, 0.0  ;;  %v7369_v15 = vadd.f32 %v10692_v43, %v7165_v23  ;;  %v7166_v61 = vadd.f32 %v7025_v54, %v6412_v12  ;;  %v6413_v46 = vadd.f32 %v6273_v40, %v11176_v18 }
 0x2e2   : > { %v6275_v20 = vpop.f32.mrf.mxu1  ;;  %v7029_v8 = vpop.f32.mrf.mxu0 }
 0x2e3   : > { %7496 = vst [vmem:[%s10698_s20 + $0x50] sm:$0xff] %v7432_v0  ;;  %v7433_v11 = vmax.f32 %v7369_v15, 0.0  ;;  %v7370_v29 = vadd.f32 %v10687_v63, %v7166_v61  ;;  %v7167_v7 = vadd.f32 %v7027_v35, %v6413_v46  ;;  %v6414_v22 = vadd.f32 %v6275_v20, %v10499_v56 }
 0x2e4   : > { %v6277_v13 = vpop.f32.mrf.mxu1  ;;  %v7031_v14 = vpop.f32.mrf.mxu0 }
 0x2e5   : > { %7497 = vst [vmem:[%s10698_s20 + $0x58] sm:$0xff] %v7433_v11  ;;  %v7434_v24 = vmax.f32 %v7370_v29, 0.0  ;;  %v7371_v3 = vadd.f32 %v10692_v43, %v7167_v7  ;;  %v7168_v30 = vadd.f32 %v7029_v8, %v6414_v22  ;;  %v6415_v39 = vadd.f32 %v6277_v13, %v11177_v58  ;;  %v11178_v8 = vld [vmem:[#allocation35_spill] sm:$0xff] }
 0x2e6   : > { %v6281_v10 = vpop.f32.mrf.mxu1  ;;  %v7035_v5 = vpop.f32.mrf.mxu0 }
 0x2e7   : > { %7498 = vst [vmem:[%s10698_s20 + $0x60] sm:$0xff] %v7434_v24  ;;  %v7435_v55 = vmax.f32 %v7371_v3, 0.0  ;;  %v7372_v54 = vadd.f32 %v10687_v63, %v7168_v30  ;;  %v7169_v17 = vadd.f32 %v7031_v14, %v6415_v39  ;;  %v6416_v56 = vadd.f32 %v6281_v10, %v10510_v28  ;;  %v11179_v14 = vld [vmem:[#allocation36_spill] sm:$0xff] }
 0x2e8   : > { %v6283_v31 = vpop.f32.mrf.mxu1  ;;  %v7037_v23 = vpop.f32.mrf.mxu0 }
 0x2e9   : > { %7499 = vst [vmem:[%s10698_s20 + $0x68] sm:$0xff] %v7435_v55  ;;  %v7436_v12 = vmax.f32 %v7372_v54, 0.0  ;;  %v7373_v40 = vadd.f32 %v10692_v43, %v7169_v17  ;;  %v7170_v35 = vadd.f32 %v7035_v5, %v6416_v56  ;;  %v6417_v0 = vadd.f32 %v6283_v31, %v10515_v2 }
 0x2ea   : > { %v6285_v15 = vpop.f32.mrf.mxu1  ;;  %v7039_v61 = vpop.f32.mrf.mxu0 }
 0x2eb   : > { %7500 = vst [vmem:[%s10698_s20 + $0x70] sm:$0xff] %v7436_v12  ;;  %v7437_v18 = vmax.f32 %v7373_v40, 0.0  ;;  %v7374_v46 = vadd.f32 %v10687_v63, %v7170_v35  ;;  %v7171_v20 = vadd.f32 %v7037_v23, %v6417_v0  ;;  %v6418_v28 = vadd.f32 %v6285_v15, %v11178_v8 }
 0x2ec   : > { %v6287_v11 = vpop.f32.mrf.mxu1  ;;  %v7041_v29 = vpop.f32.mrf.mxu0 }
 0x2ed   : > { %7501 = vst [vmem:[%s10698_s20 + $0x78] sm:$0xff] %v7437_v18  ;;  %v7438_v7 = vmax.f32 %v7374_v46, 0.0  ;;  %v7375_v22 = vadd.f32 %v10692_v43, %v7171_v20  ;;  %v7172_v13 = vadd.f32 %v7039_v61, %v6418_v28  ;;  %v6419_v2 = vadd.f32 %v6287_v11, %v11179_v14 }
 0x2ee   : > { %v6291_v24 = vpop.f32.mrf.mxu1  ;;  %v7045_v3 = vpop.f32.mrf.mxu0 }
 0x2ef   : > { %7502 = vst [vmem:[%s10698_s20 + $0x80] sm:$0xff] %v7438_v7  ;;  %v7439_v30 = vmax.f32 %v7375_v22, 0.0  ;;  %v7376_v58 = vadd.f32 %v10687_v63, %v7172_v13  ;;  %v7173_v39 = vadd.f32 %v7041_v29, %v6419_v2  ;;  %v6420_v10 = vadd.f32 %v6291_v24, %v10540_v60 }
 0x2f0   : > { %v6293_v5 = vpop.f32.mrf.mxu1  ;;  %v7047_v55 = vpop.f32.mrf.mxu0 }
 0x2f1   : > { %7503 = vst [vmem:[%s10698_s20 + $0x88] sm:$0xff] %v7439_v30  ;;  %v7440_v54 = vmax.f32 %v7376_v58, 0.0  ;;  %v7377_v17 = vadd.f32 %v10692_v43, %v7173_v39  ;;  %v7174_v56 = vadd.f32 %v7045_v3, %v6420_v10  ;;  %v6421_v31 = vadd.f32 %v6293_v5, %v10543_v16 }
 0x2f2   : > { %v6295_v23 = vpop.f32.mrf.mxu1  ;;  %v7049_v12 = vpop.f32.mrf.mxu0 }
 0x2f3   : > { %7504 = vst [vmem:[%s10698_s20 + $0x90] sm:$0xff] %v7440_v54  ;;  %v7441_v40 = vmax.f32 %v7377_v17, 0.0  ;;  %v7378_v35 = vadd.f32 %v10687_v63, %v7174_v56  ;;  %v7175_v0 = vadd.f32 %v7047_v55, %v6421_v31  ;;  %v6422_v60 = vadd.f32 %v6295_v23, %v10546_v41 }
 0x2f4   : > { %v6297_v15 = vpop.f32.mrf.mxu1  ;;  %v7051_v61 = vpop.f32.mrf.mxu0 }
 0x2f5   : > { %7505 = vst [vmem:[%s10698_s20 + $0x98] sm:$0xff] %v7441_v40  ;;  %v7442_v18 = vmax.f32 %v7378_v35, 0.0  ;;  %v7379_v46 = vadd.f32 %v10692_v43, %v7175_v0  ;;  %v7176_v20 = vadd.f32 %v7049_v12, %v6422_v60  ;;  %v6423_v16 = vadd.f32 %v6297_v15, %v10556_v9 }
 0x2f6   : > { %v6301_v8 = vpop.f32.mrf.mxu1  ;;  %v7055_v28 = vpop.f32.mrf.mxu0 }
 0x2f7   : > { %7506 = vst [vmem:[%s10698_s20 + $0xa0] sm:$0xff] %v7442_v18  ;;  %v7443_v11 = vmax.f32 %v7379_v46, 0.0  ;;  %v7380_v29 = vadd.f32 %v10687_v63, %v7176_v20  ;;  %v7177_v7 = vadd.f32 %v7051_v61, %v6423_v16  ;;  %v6424_v41 = vadd.f32 %v6301_v8, %v10563_v19 }
 0x2f8   : > { %v6303_v22 = vpop.f32.mrf.mxu1  ;;  %v7057_v13 = vpop.f32.mrf.mxu0 }
 0x2f9   : > { %7507 = vst [vmem:[%s10698_s20 + $0xa8] sm:$0xff] %v7443_v11  ;;  %v7444_v14 = vmax.f32 %v7380_v29, 0.0  ;;  %v7381_v2 = vadd.f32 %v10692_v43, %v7177_v7  ;;  %v7178_v24 = vadd.f32 %v7055_v28, %v6424_v41  ;;  %v6425_v9 = vadd.f32 %v6303_v22, %v10566_v50 }
 0x2fa   : > { %v6305_v3 = vpop.f32.mrf.mxu1  ;;  %v7059_v30 = vpop.f32.mrf.mxu0 }
 0x2fb   : > { %7508 = vst [vmem:[%s10698_s20 + $0xb0] sm:$0xff] %v7444_v14  ;;  %v7445_v58 = vmax.f32 %v7381_v2, 0.0  ;;  %v7382_v39 = vadd.f32 %v10687_v63, %v7178_v24  ;;  %v7179_v10 = vadd.f32 %v7057_v13, %v6425_v9  ;;  %v6426_v19 = vadd.f32 %v6305_v3, %v10569_v36 }
 0x2fc   : > { %v6307_v5 = vpop.f32.mrf.mxu1  ;;  %v7061_v55 = vpop.f32.mrf.mxu0 }
 0x2fd   : > { %7509 = vst [vmem:[%s10698_s20 + $0xb8] sm:$0xff] %v7445_v58  ;;  %v7446_v54 = vmax.f32 %v7382_v39, 0.0  ;;  %v7383_v17 = vadd.f32 %v10692_v43, %v7179_v10  ;;  %v7180_v56 = vadd.f32 %v7059_v30, %v6426_v19  ;;  %v6427_v50 = vadd.f32 %v6307_v5, %v10572_v49 }
 0x2fe   : > { %v6311_v31 = vpop.f32.mrf.mxu1  ;;  %v7065_v23 = vpop.f32.mrf.mxu0 }
 0x2ff   : > { %7510 = vst [vmem:[%s10698_s20 + $0xc0] sm:$0xff] %v7446_v54  ;;  %v7447_v12 = vmax.f32 %v7383_v17, 0.0  ;;  %v7384_v40 = vadd.f32 %v10687_v63, %v7180_v56  ;;  %v7181_v35 = vadd.f32 %v7061_v55, %v6427_v50  ;;  %v6428_v36 = vadd.f32 %v6311_v31, %v10575_v21 }
 0x300   : > { %v6313_v0 = vpop.f32.mrf.mxu1  ;;  %v7067_v60 = vpop.f32.mrf.mxu0 }
 0x301   : > { %7511 = vst [vmem:[%s10698_s20 + $0xc8] sm:$0xff] %v7447_v12  ;;  %v7448_v15 = vmax.f32 %v7384_v40, 0.0  ;;  %v7385_v61 = vadd.f32 %v10692_v43, %v7181_v35  ;;  %v7182_v18 = vadd.f32 %v7065_v23, %v6428_v36  ;;  %v6429_v49 = vadd.f32 %v6313_v0, %v10578_v52 }
 0x302   : > { %v6315_v46 = vpop.f32.mrf.mxu1  ;;  %v7069_v20 = vpop.f32.mrf.mxu0 }
 0x303   : > { %7512 = vst [vmem:[%s10698_s20 + $0xd0] sm:$0xff] %v7448_v15  ;;  %v7449_v16 = vmax.f32 %v7385_v61, 0.0  ;;  %v7386_v8 = vadd.f32 %v10687_v63, %v7182_v18  ;;  %v7183_v28 = vadd.f32 %v7067_v60, %v6429_v49  ;;  %v6430_v21 = vadd.f32 %v6315_v46, %v10581_v53 }
 0x304   : > { %v6317_v11 = vpop.f32.mrf.mxu1  ;;  %v7071_v29 = vpop.f32.mrf.mxu0 }
 0x305   : > { %7513 = vst [vmem:[%s10698_s20 + $0xd8] sm:$0xff] %v7449_v16  ;;  %v7450_v7 = vmax.f32 %v7386_v8, 0.0  ;;  %v7387_v41 = vadd.f32 %v10692_v43, %v7183_v28  ;;  %v7184_v22 = vadd.f32 %v7069_v20, %v6430_v21  ;;  %v6431_v52 = vadd.f32 %v6317_v11, %v10584_v1 }
 0x306   : > { %v6321_v13 = vpop.f32.mrf.mxu1  ;;  %v7075_v14 = vpop.f32.mrf.mxu0 }
 0x307   : > { %7514 = vst [vmem:[%s10698_s20 + $0xe0] sm:$0xff] %v7450_v7  ;;  %v7451_v2 = vmax.f32 %v7387_v41, 0.0  ;;  %v7388_v24 = vadd.f32 %v10687_v63, %v7184_v22  ;;  %v7185_v9 = vadd.f32 %v7071_v29, %v6431_v52  ;;  %v6432_v53 = vadd.f32 %v6321_v13, %v10587_v48 }
 0x308   : > { %v6323_v3 = vpop.f32.mrf.mxu1  ;;  %v7077_v30 = vpop.f32.mrf.mxu0 }
 0x309   : > { %7515 = vst [vmem:[%s10698_s20 + $0xe8] sm:$0xff] %v7451_v2  ;;  %v7452_v58 = vmax.f32 %v7388_v24, 0.0  ;;  %v7389_v39 = vadd.f32 %v10692_v43, %v7185_v9  ;;  %v7186_v10 = vadd.f32 %v7075_v14, %v6432_v53  ;;  %v6433_v1 = vadd.f32 %v6323_v3, %v10590_v59 }
 0x30a   : > { %v6325_v19 = vpop.f32.mrf.mxu1  ;;  %v7079_v5 = vpop.f32.mrf.mxu0 }
 0x30b   : > { %7516 = vst [vmem:[%s10698_s20 + $0xf0] sm:$0xff] %v7452_v58  ;;  %v7453_v55 = vmax.f32 %v7389_v39, 0.0  ;;  %v7390_v54 = vadd.f32 %v10687_v63, %v7186_v10  ;;  %v7187_v17 = vadd.f32 %v7077_v30, %v6433_v1  ;;  %v6434_v48 = vadd.f32 %v6325_v19, %v10593_v33 }
 0x30c   : > { %v6327_v56 = vpop.f32.mrf.mxu1  ;;  %v7081_v50 = vpop.f32.mrf.mxu0 }
 0x30d   : > { %7517 = vst [vmem:[%s10698_s20 + $0xf8] sm:$0xff] %v7453_v55  ;;  %v7454_v31 = vmax.f32 %v7390_v54, 0.0  ;;  %v7391_v23 = vadd.f32 %v10692_v43, %v7187_v17  ;;  %v7188_v12 = vadd.f32 %v7079_v5, %v6434_v48  ;;  %v6435_v59 = vadd.f32 %v6327_v56, %v10596_v38 }
 0x30e   : > { %v6331_v40 = vpop.f32.mrf.mxu1  ;;  %v7085_v35 = vpop.f32.mrf.mxu0 }
 0x30f   : > { %7518 = vst [vmem:[%s10698_s20 + $0x100] sm:$0xff] %v7454_v31  ;;  %v7455_v36 = vmax.f32 %v7391_v23, 0.0  ;;  %v7392_v0 = vadd.f32 %v10687_v63, %v7188_v12  ;;  %v7189_v60 = vadd.f32 %v7081_v50, %v6435_v59  ;;  %v6436_v33 = vadd.f32 %v6331_v40, %v10599_v45 }
 0x310   : > { %v6333_v15 = vpop.f32.mrf.mxu1  ;;  %v7087_v61 = vpop.f32.mrf.mxu0 }
 0x311   : > { %7519 = vst [vmem:[%s10698_s20 + $0x108] sm:$0xff] %v7455_v36  ;;  %v7456_v18 = vmax.f32 %v7392_v0, 0.0  ;;  %v7393_v49 = vadd.f32 %v10692_v43, %v7189_v60  ;;  %v7190_v46 = vadd.f32 %v7085_v35, %v6436_v33  ;;  %v6437_v38 = vadd.f32 %v6333_v15, %v10602_v62 }
 0x312   : > { %v6335_v20 = vpop.f32.mrf.mxu1  ;;  %v7089_v16 = vpop.f32.mrf.mxu0 }
 0x313   : > { %7520 = vst [vmem:[%s10698_s20 + $0x110] sm:$0xff] %v7456_v18  ;;  %v7457_v8 = vmax.f32 %v7393_v49, 0.0  ;;  %v7394_v28 = vadd.f32 %v10687_v63, %v7190_v46  ;;  %v7191_v21 = vadd.f32 %v7087_v61, %v6437_v38  ;;  %v6438_v45 = vadd.f32 %v6335_v20, %v10605_v27 }
 0x314   : > { %v6337_v11 = vpop.f32.mrf.mxu1  ;;  %v7091_v29 = vpop.f32.mrf.mxu0 }
 0x315   : > { %7521 = vst [vmem:[%s10698_s20 + $0x118] sm:$0xff] %v7457_v8  ;;  %v7458_v7 = vmax.f32 %v7394_v28, 0.0  ;;  %v7395_v41 = vadd.f32 %v10692_v43, %v7191_v21  ;;  %v7192_v22 = vadd.f32 %v7089_v16, %v6438_v45  ;;  %v6439_v62 = vadd.f32 %v6337_v11, %v10608_v6  ;;  %v11180_v28 = vld [vmem:[#allocation37_spill] sm:$0xff] }
 0x316   : > { %v6341_v52 = vpop.f32.mrf.mxu1  ;;  %v7095_v13 = vpop.f32.mrf.mxu0 }
 0x317   : > { %7522 = vst [vmem:[%s10698_s20 + $0x120] sm:$0xff] %v7458_v7  ;;  %v7459_v14 = vmax.f32 %v7395_v41, 0.0  ;;  %v7396_v2 = vadd.f32 %v10687_v63, %v7192_v22  ;;  %v7193_v24 = vadd.f32 %v7091_v29, %v6439_v62  ;;  %v6440_v27 = vadd.f32 %v6341_v52, %v10611_v26  ;;  %v11181_v41 = vld [vmem:[#allocation38_spill] sm:$0xff] }
 0x318   : > { %v6343_v9 = vpop.f32.mrf.mxu1  ;;  %v7097_v53 = vpop.f32.mrf.mxu0 }
 0x319   : > { %7523 = vst [vmem:[%s10698_s20 + $0x128] sm:$0xff] %v7459_v14  ;;  %v7460_v3 = vmax.f32 %v7396_v2, 0.0  ;;  %v7397_v30 = vadd.f32 %v10692_v43, %v7193_v24  ;;  %v7194_v58 = vadd.f32 %v7095_v13, %v6440_v27  ;;  %v6441_v6 = vadd.f32 %v6343_v9, %v10614_v4  ;;  %v11182_v2 = vld [vmem:[#allocation40_spill] sm:$0xff] }
 0x31a   : > { %v6345_v39 = vpop.f32.mrf.mxu1  ;;  %v7099_v10 = vpop.f32.mrf.mxu0 }
 0x31b   : > { %7524 = vst [vmem:[%s10698_s20 + $0x130] sm:$0xff] %v7460_v3  ;;  %v7461_v1 = vmax.f32 %v7397_v30, 0.0  ;;  %v7398_v19 = vadd.f32 %v10687_v63, %v7194_v58  ;;  %v7195_v5 = vadd.f32 %v7097_v53, %v6441_v6  ;;  %v6442_v26 = vadd.f32 %v6345_v39, %v10617_v51  ;;  %v11183_v58 = vld [vmem:[#allocation42_spill] sm:$0xff] }
 0x31c   : > { %v6347_v55 = vpop.f32.mrf.mxu1  ;;  %v7101_v54 = vpop.f32.mrf.mxu0 }
 0x31d   : > { %7525 = vst [vmem:[%s10698_s20 + $0x138] sm:$0xff] %v7461_v1  ;;  %v7462_v17 = vmax.f32 %v7398_v19, 0.0  ;;  %v7399_v48 = vadd.f32 %v10692_v43, %v7195_v5  ;;  %v7196_v56 = vadd.f32 %v7099_v10, %v6442_v26  ;;  %v6443_v4 = vadd.f32 %v6347_v55, %v10620_v34  ;;  %v11184_v26 = vld [vmem:[#allocation43_spill] sm:$0xff] }
 0x31e   : > { %v6351_v50 = vpop.f32.mrf.mxu1  ;;  %v7105_v31 = vpop.f32.mrf.mxu0 }
 0x31f   : > { %7526 = vst [vmem:[%s10698_s20 + $0x140] sm:$0xff] %v7462_v17  ;;  %v7463_v23 = vmax.f32 %v7399_v48, 0.0  ;;  %v7400_v12 = vadd.f32 %v10687_v63, %v7196_v56  ;;  %v7197_v59 = vadd.f32 %v7101_v54, %v6443_v4  ;;  %v6444_v51 = vadd.f32 %v6351_v50, %v10623_v37  ;;  %v11185_v50 = vld [vmem:[#allocation44_spill] sm:$0xff] }
 0x320   : > { %v6353_v40 = vpop.f32.mrf.mxu1  ;;  %v7107_v35 = vpop.f32.mrf.mxu0 }
 0x321   : > { %7527 = vst [vmem:[%s10698_s20 + $0x148] sm:$0xff] %v7463_v23  ;;  %v7464_v36 = vmax.f32 %v7400_v12, 0.0  ;;  %v7401_v0 = vadd.f32 %v10692_v43, %v7197_v59  ;;  %v7198_v60 = vadd.f32 %v7105_v31, %v6444_v51  ;;  %v6445_v34 = vadd.f32 %v6353_v40, %v10626_v42 }
 0x322   : > { %v6355_v33 = vpop.f32.mrf.mxu1  ;;  %v7109_v15 = vpop.f32.mrf.mxu0 }
 0x323   : > { %7528 = vst [vmem:[%s10698_s20 + $0x150] sm:$0xff] %v7464_v36  ;;  %v7465_v61 = vmax.f32 %v7401_v0, 0.0  ;;  %v7402_v18 = vadd.f32 %v10687_v63, %v7198_v60  ;;  %v7199_v49 = vadd.f32 %v7107_v35, %v6445_v34  ;;  %v6446_v37 = vadd.f32 %v6355_v33, %v10629_v32  ;;  %v11186_v35 = vld [vmem:[#allocation45_spill] sm:$0xff] }
 0x324   : > { %v6357_v46 = vpop.f32.mrf.mxu1  ;;  %v7111_v38 = vpop.f32.mrf.mxu0 }
 0x325   : > { %7529 = vst [vmem:[%s10698_s20 + $0x158] sm:$0xff] %v7465_v61  ;;  %v7466_v20 = vmax.f32 %v7402_v18, 0.0  ;;  %v7403_v16 = vadd.f32 %v10692_v43, %v7199_v49  ;;  %v7200_v8 = vadd.f32 %v7109_v15, %v6446_v37  ;;  %v6447_v42 = vadd.f32 %v6357_v46, %v11180_v28  ;;  %v11187_v61 = vld [vmem:[#allocation46_spill] sm:$0xff] }
 0x326   : > { %v6361_v21 = vpop.f32.mrf.mxu1  ;;  %v7115_v45 = vpop.f32.mrf.mxu0 }
 0x327   : > { %7530 = vst [vmem:[%s10698_s20 + $0x160] sm:$0xff] %v7466_v20  ;;  %v7467_v11 = vmax.f32 %v7403_v16, 0.0  ;;  %v7404_v29 = vadd.f32 %v10687_v63, %v7200_v8  ;;  %v7201_v7 = vadd.f32 %v7111_v38, %v6447_v42  ;;  %v6448_v32 = vadd.f32 %v6361_v21, %v11181_v41  ;;  %v11188_v16 = vld [vmem:[#allocation47_spill] sm:$0xff] }
 0x328   : > { %v6363_v22 = vpop.f32.mrf.mxu1  ;;  %v7117_v62 = vpop.f32.mrf.mxu0 }
 0x329   : > { %7531 = vst [vmem:[%s10698_s20 + $0x168] sm:$0xff] %v7467_v11  ;;  %v7468_v52 = vmax.f32 %v7404_v29, 0.0  ;;  %v7405_v13 = vadd.f32 %v10692_v43, %v7201_v7  ;;  %v7202_v14 = vadd.f32 %v7115_v45, %v6448_v32  ;;  %v6449_v24 = vadd.f32 %v6363_v22, %v11182_v2 }
 0x32a   : > { %v6365_v27 = vpop.f32.mrf.mxu1  ;;  %v7119_v9 = vpop.f32.mrf.mxu0 }
 0x32b   : > { %7532 = vst [vmem:[%s10698_s20 + $0x170] sm:$0xff] %v7468_v52  ;;  %v7469_v53 = vmax.f32 %v7405_v13, 0.0  ;;  %v7406_v3 = vadd.f32 %v10687_v63, %v7202_v14  ;;  %v7203_v30 = vadd.f32 %v7117_v62, %v6449_v24  ;;  %v6450_v6 = vadd.f32 %v6365_v27, %v11183_v58  ;;  %v11189_v52 = vld [vmem:[#allocation48_spill] sm:$0xff] }
 0x32c   : > { %v6367_v39 = vpop.f32.mrf.mxu1  ;;  %v7121_v10 = vpop.f32.mrf.mxu0 }
 0x32d   : > { %7533 = vst [vmem:[%s10698_s20 + $0x178] sm:$0xff] %v7469_v53  ;;  %v7470_v1 = vmax.f32 %v7406_v3, 0.0  ;;  %v7407_v19 = vadd.f32 %v10692_v43, %v7203_v30  ;;  %v7204_v5 = vadd.f32 %v7119_v9, %v6450_v6  ;;  %v6451_v55 = vadd.f32 %v6367_v39, %v11184_v26 }
 0x32e   : > { %v6371_v54 = vpop.f32.mrf.mxu1  ;;  %v7125_v17 = vpop.f32.mrf.mxu0 }
 0x32f   : > { %7534 = vst [vmem:[%s10698_s20 + $0x180] sm:$0xff] %v7470_v1  ;;  %v7471_v48 = vmax.f32 %v7407_v19, 0.0  ;;  %v7408_v56 = vadd.f32 %v10687_v63, %v7204_v5  ;;  %v7205_v4 = vadd.f32 %v7121_v10, %v6451_v55  ;;  %v6452_v31 = vadd.f32 %v6371_v54, %v11185_v50 }
 0x330   : > { %v6373_v23 = vpop.f32.mrf.mxu1  ;;  %v7127_v12 = vpop.f32.mrf.mxu0 }
 0x331   : > { %7535 = vst [vmem:[%s10698_s20 + $0x188] sm:$0xff] %v7471_v48  ;;  %v7472_v59 = vmax.f32 %v7408_v56, 0.0  ;;  %v7409_v51 = vadd.f32 %v10692_v43, %v7205_v4  ;;  %v7206_v40 = vadd.f32 %v7125_v17, %v6452_v31  ;;  %v6453_v36 = vadd.f32 %v6373_v23, %v11186_v35  ;;  %v11190_v4 = vld [vmem:[#allocation39_spill] sm:$0xff] }
 0x332   : > { %v6375_v0 = vpop.f32.mrf.mxu1  ;;  %v7129_v60 = vpop.f32.mrf.mxu0 }
 0x333   : > { %7536 = vst [vmem:[%s10698_s20 + $0x190] sm:$0xff] %v7472_v59  ;;  %v7473_v34 = vmax.f32 %v7409_v51, 0.0  ;;  %v7410_v33 = vadd.f32 %v10687_v63, %v7206_v40  ;;  %v7207_v15 = vadd.f32 %v7127_v12, %v6453_v36  ;;  %v6454_v18 = vadd.f32 %v6375_v0, %v11187_v61  ;;  %v11191_v59 = vld [vmem:[#allocation41_spill] sm:$0xff] }
 0x334   : > { %v6377_v49 = vpop.f32.mrf.mxu1  ;;  %v7131_v37 = vpop.f32.mrf.mxu0 }
 0x335   : > { %7537 = vst [vmem:[%s10698_s20 + $0x198] sm:$0xff] %v7473_v34  ;;  %v7474_v46 = vmax.f32 %v7410_v33, 0.0  ;;  %v7411_v38 = vadd.f32 %v10692_v43, %v7207_v15  ;;  %v7208_v20 = vadd.f32 %v7129_v60, %v6454_v18  ;;  %v6455_v8 = vadd.f32 %v6377_v49, %v11188_v16  ;;  %v11192_v60 = vld [vmem:[#allocation9_spill] sm:$0xff] }
 0x336   : > { %v6381_v28 = vpop.f32.mrf.mxu1  ;;  %v7135_v42 = vpop.f32.mrf.mxu0 }
 0x337   : > { %7538 = vst [vmem:[%s10698_s20 + $0x1a0] sm:$0xff] %v7474_v46  ;;  %v7475_v21 = vmax.f32 %v7411_v38, 0.0  ;;  %v7412_v45 = vadd.f32 %v10687_v63, %v7208_v20  ;;  %v7209_v11 = vadd.f32 %v7131_v37, %v6455_v8  ;;  %v6456_v29 = vadd.f32 %v6381_v28, %v10659_v25 }
 0x338   : > { %v6383_v7 = vpop.f32.mrf.mxu1  ;;  %v7137_v41 = vpop.f32.mrf.mxu0 }
 0x339   : > { %7539 = vst [vmem:[%s10698_s20 + $0x1a8] sm:$0xff] %v7475_v21  ;;  %v7476_v32 = vmax.f32 %v7412_v45, 0.0  ;;  %v7413_v22 = vadd.f32 %v10692_v43, %v7209_v11  ;;  %v7210_v62 = vadd.f32 %v7135_v42, %v6456_v29  ;;  %v6457_v13 = vadd.f32 %v6383_v7, %v11189_v52 }
 0x33a   : > { %v6385_v14 = vpop.f32.mrf.mxu1  ;;  %v7139_v2 = vpop.f32.mrf.mxu0 }
 0x33b   : > { %7540 = vst [vmem:[%s10698_s20 + $0x1b0] sm:$0xff] %v7476_v32  ;;  %v7477_v24 = vmax.f32 %v7413_v22, 0.0  ;;  %v7414_v27 = vadd.f32 %v10687_v63, %v7210_v62  ;;  %v7211_v9 = vadd.f32 %v7137_v41, %v6457_v13  ;;  %v6458_v25 = vadd.f32 %v6385_v14, %v10665_v47 }
 0x33c   : > { %v6387_v53 = vpop.f32.mrf.mxu1  ;;  %v7141_v3 = vpop.f32.mrf.mxu0 }
 0x33d   : > { %7541 = vst [vmem:[%s10698_s20 + $0x1b8] sm:$0xff] %v7477_v24  ;;  %v7478_v30 = vmax.f32 %v7414_v27, 0.0  ;;  %v7415_v58 = vadd.f32 %v10692_v43, %v7211_v9  ;;  %v7212_v6 = vadd.f32 %v7139_v2, %v6458_v25  ;;  %v6459_v39 = vadd.f32 %v6387_v53, %v10668_v57 }
 0x33e   : > { %v6391_v10 = vpop.f32.mrf.mxu1  ;;  %v7145_v1 = vpop.f32.mrf.mxu0 }
 0x33f   : > { %7542 = vst [vmem:[%s10698_s20 + $0x1c0] sm:$0xff] %v7478_v30  ;;  %v7479_v19 = vmax.f32 %v7415_v58, 0.0  ;;  %v7416_v5 = vadd.f32 %v10687_v63, %v7212_v6  ;;  %v7213_v26 = vadd.f32 %v7141_v3, %v6459_v39  ;;  %v6460_v47 = vadd.f32 %v6391_v10, %v10671_v44 }
 0x340   : > { %v6393_v55 = vpop.f32.mrf.mxu1  ;;  %v7147_v54 = vpop.f32.mrf.mxu0 }
 0x341   : > { %7543 = vst [vmem:[%s10698_s20 + $0x1c8] sm:$0xff] %v7479_v19  ;;  %v7480_v17 = vmax.f32 %v7416_v5, 0.0  ;;  %v7417_v48 = vadd.f32 %v10692_v43, %v7213_v26  ;;  %v7214_v56 = vadd.f32 %v7145_v1, %v6460_v47  ;;  %v6461_v57 = vadd.f32 %v6393_v55, %v11190_v4 }
 0x342   : > { %v6395_v50 = vpop.f32.mrf.mxu1  ;;  %v7149_v31 = vpop.f32.mrf.mxu0 }
 0x343   : > { %7544 = vst [vmem:[%s10698_s20 + $0x1d0] sm:$0xff] %v7480_v17  ;;  %v7481_v23 = vmax.f32 %v7417_v48, 0.0  ;;  %v7418_v12 = vadd.f32 %v10687_v63, %v7214_v56  ;;  %v7215_v44 = vadd.f32 %v7147_v54, %v6461_v57  ;;  %v6462_v51 = vadd.f32 %v6395_v50, %v11191_v59 }
 0x344   : > { %v6397_v40 = vpop.f32.mrf.mxu1  ;;  %v7151_v33 = vpop.f32.mrf.mxu0 }
 0x345   : > { %7545 = vst [vmem:[%s10698_s20 + $0x1d8] sm:$0xff] %v7481_v23  ;;  %v7482_v35 = vmax.f32 %v7418_v12, 0.0  ;;  %v7419_v36 = vadd.f32 %v10692_v43, %v7215_v44  ;;  %v7216_v0 = vadd.f32 %v7149_v31, %v6462_v51  ;;  %v6463_v34 = vadd.f32 %v6397_v40, %v11192_v60 }
 0x347   : > { %7546 = vst [vmem:[%s10698_s20 + $0x1e0] sm:$0xff] %v7482_v35  ;;  %v7483_v15 = vmax.f32 %v7419_v36, 0.0  ;;  %v7420_v61 = vadd.f32 %v10687_v63, %v7216_v0  ;;  %v7217_v18 = vadd.f32 %v7151_v33, %v6463_v34 }
 0x349   : > { %7547 = vst [vmem:[%s10698_s20 + $0x1e8] sm:$0xff] %v7483_v15  ;;  %v7484_v49 = vmax.f32 %v7420_v61, 0.0  ;;  %v7421_v37 = vadd.f32 %v10692_v43, %v7217_v18 }
 0x34b   : > { %7548 = vst [vmem:[%s10698_s20 + $0x1f0] sm:$0xff] %v7484_v49  ;;  %v7485_v46 = vmax.f32 %v7421_v37, 0.0 }
 0x34d   : > { %7549 = vst [vmem:[%s10698_s20 + $0x1f8] sm:$0xff] %v7485_v46 }
 0x34e   : > { %8619 = shalt.err (!%p8616_p0)
}
 0x34f   : > { %s8620_s6 = scalar_lea.hbm %s10889_s28, 8192  ;;  %s8624_s9 = scalar_lea.hbm %s10940_s3, 16384 }
 0x350   : > { %p8621_p1 = scmp.ne.s32.totalorder %s10889_s28, %s8620_s6  ;;  %p8625_p4 = scmp.lt.s32.totalorder %s10889_s28, %s10940_s3 }
 0x351   : > { %p8626_p7 = scmp.lt.s32.totalorder %s8624_s9, %s8620_s6 }
 0x352   : > { %p8622_p2 = pnand %p8621_p1, %p8737_p5 }
 0x353   : > { %p8627_p6 = por %p8626_p7, %p8625_p4 }
 0x354   : > { %p8623_p3 = pneg %p8622_p2 }
 0x356   : > { %p8628_p8 = pnand %p8627_p6, %p8623_p3 }
 0x358   : > { %8631 = shalt.err (!%p8628_p8)
}
 0x359   : > { %s8677_s17 = smov 256   ;;  %s8678_s19 = smov 16  }
 0x35a   : > { %8265 = dma.vmem_to_hbm [thread:$0]  (%p8737_p5), %s10891_s25, 8192, %s10889_s28, %s10897_s16, %s8677_s17, %s8677_s17, %s8678_s19  }
 0x35b PF: > { %p8277_p9 = scmp.ge.s32.totalorder %s8670_s15, 2  ;;  %s7579_s20 = sand.u32 1, %s8658_s12  }
 0x35c   : > { %p11193_p10 = scmp.ne.s32.totalorder %s10944_s23, 0  ;;  %s7580_s24 = scalar_lea.sflag [#allocation5], %s7579_s20 }
 0x35e   : > { %p8272_p11 = pnand %p8277_p9, %p11193_p10 }
 0x360   : > { %p8273_p12 = pneg %p8272_p11 }
 0x362   : > { %8653 = dma.done.wait (%p8273_p12), %s7580_s24, 8192  }
 0x363   : > { %8655 = vsyncadd (%p8273_p12), %s7580_s24, 4294959104  ;;  %p14_p13 = scmp.ge.s32.totalorder %s8724_s18, 4   ;;  %s11194_s12 = smov %s8662_s13 }
 0x364   : > { %s11195_s13 = smov %s8666_s14  ;;  %s11196_s14 = smov %s8735_s21 }
 0x365   : > { %s11197_s15 = smov %s8724_s18  ;;  %16 = sbr.rel (!%p14_p13) target bundleno = 4 (0x4), region = 82 }
 0x36a   :  { %7585 = vsyncpa [#allocation4], 1 }
 0x36b   :  { %7587 = vsyncpa [#allocation4 + $0x1], 1 }
 0x36c   :  { %7588 = vsyncpa [#allocation5], 1 }
 0x36d   :  { %7590 = vsyncpa [#allocation5 + $0x1], 1 }

</bundles_post_ra>
